<compile_context>
chip_gen: v5e
topology: v5e:2x2
jax: 0.10.0
libtpu: 0.0.40
codegen_flags: <defaults>
</compile_context>

<pallas_src>
import functools
import numpy as np
import jax
import jax.numpy as jnp
from jax.experimental import pallas as pl
from jax.experimental.pallas import tpu as pltpu

STATE_DIM = 8      # >= 7 so the quaternion-normalization branch is exercised
ACTION_DIM = 4     # branch input dim is num_sensors * (state_dim + 4)
HIDDEN = 256       # hidden_dim (small for the demo; module default is 1024)
NUM_SENSORS = 32
BATCH = 64         # multiple of 16 -> TB=32, grid=(2,) (feeds both v7x TensorCores)


# ----------------------------------------------------------------------------- kernel
def _neural_operator_kernel(sa_ref, senT_ref,
                            w1_ref, b1_ref, w2_ref, b2_ref, w3_ref, b3_ref,
                            posw_ref, posb_ref, tw2_ref, tb2_ref,
                            wout_ref, bout_ref, out_ref,
                            *, state_dim, chunk_d, normalize_quat):
    f32, bf16 = jnp.float32, jnp.bfloat16

    sa = sa_ref[...]                       # [TB, Dp] f32: state || action || 0
    senT = senT_ref[...]                   # [3, N]   f32: sensor_locations^T
    TB = sa.shape[0]
    H = b1_ref.shape[1]                    # hidden
    D = w1_ref.shape[1] // H               # state_dim + action_dim
    h4p = tb2_ref.shape[1]                 # padded trunk width (multiple of 128)
    Sp = out_ref.shape[1]                  # padded state width (multiple of 128)

    # ---- sensor weights: pure f32 VPU, direct-difference distance (no MXU push) ----
    d2 = jnp.zeros((TB, senT.shape[1]), f32)
    for k in range(3):
        diff = senT[k:k + 1, :] - sa[:, k:k + 1]
        d2 = d2 + diff * diff
    w = jnp.exp(-2.0 * jnp.sqrt(d2))       # exp(-dist / 0.5), [TB, N]
    w_bf = w.astype(bf16)

    # ---- branch layer 1: chunked MXU pushes + lane-aligned VPU FMAs ----
    # (avoids materializing the full [TB, D*H] f32 intermediate at module-default H=1024)
    acc = None
    for c0 in range(0, D, chunk_d):
        c1 = min(c0 + chunk_d, D)
        Mc = jnp.dot(w_bf, w1_ref[:, c0 * H:c1 * H], preferred_element_type=f32)
        for d in range(c0, c1):
            term = sa[:, d:d + 1] * Mc[:, (d - c0) * H:(d - c0 + 1) * H]
            acc = term if acc is None else acc + term
    h1 = jnp.maximum(acc + b1_ref[...], 0.0)
    # TODO(synk): nn.Dropout(0.1) omitted (eval-mode identity).

    h2 = jnp.maximum(
        jnp.dot(h1.astype(bf16), w2_ref[...], preferred_element_type=f32) + b2_ref[...], 0.0)
    branch = jnp.dot(h2.astype(bf16), w3_ref[...], preferred_element_type=f32) + b3_ref[...]

    # ---- trunk-l1 / bias-l1 on pos: 3 f32 VPU FMAs (no K=3 MXU push, no bf16 pos cast) ----
    pb = (posb_ref[...]
          + sa[:, 0:1] * posw_ref[0:1, :]
          + sa[:, 1:2] * posw_ref[1:2, :]
          + sa[:, 2:3] * posw_ref[2:3, :])
    t1 = jnp.tanh(pb[:, 0:h4p])
    bh = jnp.maximum(pb[:, h4p:], 0.0)
    trunk = jnp.tanh(
        jnp.dot(t1.astype(bf16), tw2_ref[...], preferred_element_type=f32) + tb2_ref[...])

    inter = branch * trunk                 # [TB, h4p]

    # ---- fused output projection + bias-net tail (residual_weight folded in glue) ----
    # TODO(synk): on v5e a split K=128+128 form would avoid the concat copy; the single
    # K=256 push is kept since it matches the 256-deep v6e/v7x MXU.
    io = jnp.concatenate([inter, bh], axis=1).astype(bf16)         # [TB, h4p + h8p]
    delta = jnp.dot(io, wout_ref[...], preferred_element_type=f32) + bout_ref[...]

    # ---- residual: state lives in lanes 0..S-1 of sa (no second streamed input) ----
    lane = jax.lax.broadcasted_iota(jnp.int32, (TB, Sp), 1)
    nxt = jnp.where(lane < state_dim, sa[:, 0:Sp], 0.0) + delta    # padded lanes stay 0

    if normalize_quat:
        # normalize next_state[:, 3:7]; matches reference: quat / (||quat|| + 1e-8)
        qmask = (lane >= 3) & (lane < 7)
        qsum = jnp.sum(jnp.where(qmask, nxt * nxt, 0.0), axis=1, keepdims=True)
        qinv = pl.reciprocal(jnp.sqrt(qsum) + 1e-8, approx=True)   # EUP
        nxt = jnp.where(qmask, nxt * qinv, nxt)

    out_ref[...] = nxt


# ----------------------------------------------------------------------------- params / packing
def make_sensor_locations(num_sensors=NUM_SENSORS):
    sensors = []
    for p in np.linspace(0.0, np.pi, 2):
        for t in np.linspace(0.0, 2.0 * np.pi, num_sensors // 2):
            sensors.append([2.0 * np.sin(p) * np.cos(t),
                            2.0 * np.sin(p) * np.sin(t),
                            2.0 * np.cos(p)])
    return jnp.asarray(np.array(sensors[:num_sensors], dtype=np.float32))   # [N, 3]


def init_params(key, state_dim=STATE_DIM, action_dim=ACTION_DIM,
                hidden=HIDDEN, num_sensors=NUM_SENSORS):
    D = state_dim + action_dim
    h2, h4, h8 = hidden // 2, hidden // 4, hidden // 8
    ks = jax.random.split(key, 8)

    def lin(k, fan_in, fan_out):
        kw, kb = jax.random.split(k)
        bound = 1.0 / np.sqrt(fan_in)
        W = jax.random.uniform(kw, (fan_in, fan_out), jnp.float32, -bound, bound)
        b = jax.random.uniform(kb, (1, fan_out), jnp.float32, -bound, bound)
        return W, b

    p = {}
    p['bw1'], p['bb1'] = lin(ks[0], num_sensors * D, hidden)   # branch linear 1
    p['bw2'], p['bb2'] = lin(ks[1], hidden, h2)                # branch linear 2
    p['bw3'], p['bb3'] = lin(ks[2], h2, h4)                    # branch linear 3
    p['tw1'], p['tb1'] = lin(ks[3], 3, h4)                     # trunk linear 1
    p['tw2'], p['tb2'] = lin(ks[4], h4, h4)                    # trunk linear 2
    p['gw1'], p['gb1'] = lin(ks[5], 3, h8)                     # bias net linear 1
    p['gw2'], p['gb2'] = lin(ks[6], h8, state_dim)             # bias net linear 2
    p['ow'], p['ob'] = lin(ks[7], h4, state_dim)               # output projection
    p['rw'] = jnp.full((1, 1), 0.1, dtype=jnp.float32)         # residual_weight
    return p


def _pad128(n):
    return ((n + 127) // 128) * 128


def _pad_cols(x, width):
    return jnp.pad(x, ((0, 0), (0, width - x.shape[1])))


def _pad_rows(x, rows):
    return jnp.pad(x, ((0, rows - x.shape[0]), (0, 0)))


def pack_params(params, sensors):
    """One-time weight packing (pads / bf16 casts / folds) -- hoisted out of the forward path."""
    f32, bf16 = jnp.float32, jnp.bfloat16
    N = sensors.shape[0]
    H = params['bb1'].shape[1]
    S = params['gw2'].shape[1]
    D = params['bw1'].shape[0] // N
    A = D - S
    h2, h4, h8 = H // 2, H // 4, H // 8
    assert H % 128 == 0, "hidden_dim must be a multiple of 128 for lane-aligned slicing"

    Sp, Dp = _pad128(S), _pad128(D)
    h2p, h4p, h8p = _pad128(h2), _pad128(h4), _pad128(h8)

    senT = sensors.T.astype(f32)                                               # [3, N]
    # branch layer-1 weight reflattened [N*D, H] -> [N, D*H]: one weight tensor, chunked in-kernel
    w1flat = params['bw1'].reshape(N, D * H).astype(bf16)
    b1 = params['bb1'].astype(f32)
    w2 = _pad_cols(params['bw2'], h2p).astype(bf16)
    b2 = _pad_cols(params['bb2'], h2p).astype(f32)
    w3 = _pad_cols(_pad_rows(params['bw3'], h2p), h4p).astype(bf16)
    b3 = _pad_cols(params['bb3'], h4p).astype(f32)

    # fused [trunk-l1 | bias-l1] weight on pos -- kept f32 (consumed by VPU FMAs in-kernel)
    posw = jnp.concatenate([_pad_cols(params['tw1'], h4p),
                            _pad_cols(params['gw1'], h8p)], axis=1).astype(f32)   # [3, h4p+h8p]
    posb = jnp.concatenate([_pad_cols(params['tb1'], h4p),
                            _pad_cols(params['gb1'], h8p)], axis=1).astype(f32)

    tw2 = _pad_cols(_pad_rows(params['tw2'], h4p), h4p).astype(bf16)
    tb2 = _pad_cols(params['tb2'], h4p).astype(f32)

    # fused output projection + bias-net tail, residual_weight folded in
    rw = params['rw'][0, 0]
    owp = _pad_cols(_pad_rows(params['ow'], h4p), Sp)
    gw2p = _pad_cols(_pad_rows(params['gw2'], h8p), Sp)
    wout = (rw * jnp.concatenate([owp, gw2p], axis=0)).astype(bf16)            # [h4p+h8p, Sp]
    bout = (rw * (_pad_cols(params['ob'], Sp) + _pad_cols(params['gb2'], Sp))).astype(f32)

    weights = (senT, w1flat, b1, w2, b2, w3, b3, posw, posb, tw2, tb2, wout, bout)
    return dict(weights=weights, state_dim=S, action_dim=A, hidden=H,
                Sp=Sp, Dp=Dp, chunk_d=min(D, 4))


# ----------------------------------------------------------------------------- wrapper
def _choose_tiling(B):
    """TB multiple of 16 (bf16 sublane pack), capped at 256, and >=2 grid steps when possible."""
    def rup(n, m):
        return ((n + m - 1) // m) * m
    Bp = rup(max(B, 1), 16)
    grid = max(1, -(-Bp // 256))
    if grid == 1 and Bp >= 32:
        grid = 2                      # give v7x's second TensorCore a grid step
    TB = rup(-(-Bp // grid), 16)
    return TB, TB * grid, grid


def neural_operator_forward(state, action, packed):
    weights = packed['weights']
    S, A = packed['state_dim'], packed['action_dim']
    Sp, Dp = packed['Sp'], packed['Dp']
    B = state.shape[0]
    TB, Bp, grid_n = _choose_tiling(B)

    sa = jnp.concatenate([state.astype(jnp.float32), action.astype(jnp.float32)], axis=1)
    sa_pad = jnp.pad(sa, ((0, Bp - B), (0, Dp - (S + A))))        # [Bp, Dp]

    kernel = functools.partial(_neural_operator_kernel,
                               state_dim=S, chunk_d=packed['chunk_d'],
                               normalize_quat=(S >= 7))

    def run(resident_weights):
        if resident_weights:
            # whole weight tensors pinned in VMEM once -- no per-step double-buffering
            w_specs = [pl.BlockSpec(memory_space=pltpu.MemorySpace.VMEM)] * len(weights)
        else:
            # fallback: constant-index full blocks (still VMEM-resident, double-buffered)
            w_specs = [pl.BlockSpec(w.shape, lambda i: (0, 0)) for w in weights]
        return pl.pallas_call(
            kernel,
            out_shape=jax.ShapeDtypeStruct((Bp, Sp), jnp.float32),
            grid=(grid_n,),
            in_specs=[pl.BlockSpec((TB, Dp), lambda i: (i, 0))] + w_specs,
            out_specs=pl.BlockSpec((TB, Sp), lambda i: (i, 0)),
            compiler_params=pltpu.CompilerParams(
                dimension_semantics=("parallel",)),
        )(sa_pad, *weights)

    try:
        out = run(True)
    except Exception:
        out = run(False)
    return out[:B, :S]


# ----------------------------------------------------------------------------- reference
def reference_forward(state, action, params, sensors):
    """Pure-JAX port of the PyTorch forward (eval mode) for verification."""
    pos = state[:, :3]
    diff = sensors[None, :, :] - pos[:, None, :]
    dist = jnp.sqrt(jnp.sum(diff * diff, axis=2))               # [B, N]
    w = jnp.exp(-dist / 0.5)
    sa = jnp.concatenate([state, action], axis=1)               # [B, S+A]
    fe = (w[:, :, None] * sa[:, None, :]).reshape(state.shape[0], -1)
    h1 = jax.nn.relu(fe @ params['bw1'] + params['bb1'])
    h2 = jax.nn.relu(h1 @ params['bw2'] + params['bb2'])
    branch = h2 @ params['bw3'] + params['bb3']
    t1 = jnp.tanh(pos @ params['tw1'] + params['tb1'])
    trunk = jnp.tanh(t1 @ params['tw2'] + params['tb2'])
    out_delta = (branch * trunk) @ params['ow'] + params['ob']
    bh = jax.nn.relu(pos @ params['gw1'] + params['gb1'])
    bias = bh @ params['gw2'] + params['gb2']
    nxt = state + params['rw'] * (out_delta + bias)
    if state.shape[1] >= 7:
        quat = nxt[:, 3:7]
        qn = jnp.sqrt(jnp.sum(quat * quat, axis=1, keepdims=True))
        nxt = jnp.concatenate([nxt[:, :3], quat / (qn + 1e-8), nxt[:, 7:]], axis=1)
    return nxt


if __name__ == "__main__":
    key = jax.random.PRNGKey(0)
    k_state, k_action, k_params = jax.random.split(key, 3)

    state = jax.random.normal(k_state, (BATCH, STATE_DIM), dtype=jnp.float32)
    action = jax.random.normal(k_action, (BATCH, ACTION_DIM), dtype=jnp.float32)
    params = init_params(k_params)
    sensors = make_sensor_locations()

    packed = pack_params(params, sensors)   # one-time packing (hoisted out of the forward path)

    out = jax.block_until_ready(neural_operator_forward(state, action, packed))
    ref = jax.block_until_ready(reference_forward(state, action, params, sensors))
    np.testing.assert_allclose(np.asarray(out), np.asarray(ref), rtol=5e-2, atol=5e-2)

    print("KERNEL_OK")
</pallas_src>

<mosaic_0001>
module attributes {stable_mosaic.version = 11 : i64} {
  func.func @_neural_operator_kernel(%arg0: i32, %arg1: memref<32x128xf32, #tpu.memory_space<vmem>>, %arg2: memref<3x32xf32, #tpu.memory_space<vmem>>, %arg3: memref<32x3072xbf16, #tpu.memory_space<vmem>>, %arg4: memref<1x256xf32, #tpu.memory_space<vmem>>, %arg5: memref<256x128xbf16, #tpu.memory_space<vmem>>, %arg6: memref<1x128xf32, #tpu.memory_space<vmem>>, %arg7: memref<128x128xbf16, #tpu.memory_space<vmem>>, %arg8: memref<1x128xf32, #tpu.memory_space<vmem>>, %arg9: memref<3x256xf32, #tpu.memory_space<vmem>>, %arg10: memref<1x256xf32, #tpu.memory_space<vmem>>, %arg11: memref<128x128xbf16, #tpu.memory_space<vmem>>, %arg12: memref<1x128xf32, #tpu.memory_space<vmem>>, %arg13: memref<256x128xbf16, #tpu.memory_space<vmem>>, %arg14: memref<1x128xf32, #tpu.memory_space<vmem>>, %arg15: memref<32x128xf32, #tpu.memory_space<vmem>>) attributes {dimension_semantics = [#tpu.dimension_semantics<parallel>], iteration_bounds = array<i64: 2>, scalar_prefetch = 0 : i64, scratch_operands = 0 : i64, tpu.core_type = #tpu.core_type<tc>, window_params = [{transform_indices = @transform_0, window_bounds = array<i64: 32, 128>}, {pipeline_mode = #tpu.pipeline_mode<synchronous>, transform_indices = @transform_1, window_bounds = array<i64: 3, 32>}, {pipeline_mode = #tpu.pipeline_mode<synchronous>, transform_indices = @transform_2, window_bounds = array<i64: 32, 3072>}, {pipeline_mode = #tpu.pipeline_mode<synchronous>, transform_indices = @transform_3, window_bounds = array<i64: 1, 256>}, {pipeline_mode = #tpu.pipeline_mode<synchronous>, transform_indices = @transform_4, window_bounds = array<i64: 256, 128>}, {pipeline_mode = #tpu.pipeline_mode<synchronous>, transform_indices = @transform_5, window_bounds = array<i64: 1, 128>}, {pipeline_mode = #tpu.pipeline_mode<synchronous>, transform_indices = @transform_6, window_bounds = array<i64: 128, 128>}, {pipeline_mode = #tpu.pipeline_mode<synchronous>, transform_indices = @transform_7, window_bounds = array<i64: 1, 128>}, {pipeline_mode = #tpu.pipeline_mode<synchronous>, transform_indices = @transform_8, window_bounds = array<i64: 3, 256>}, {pipeline_mode = #tpu.pipeline_mode<synchronous>, transform_indices = @transform_9, window_bounds = array<i64: 1, 256>}, {pipeline_mode = #tpu.pipeline_mode<synchronous>, transform_indices = @transform_10, window_bounds = array<i64: 128, 128>}, {pipeline_mode = #tpu.pipeline_mode<synchronous>, transform_indices = @transform_11, window_bounds = array<i64: 1, 128>}, {pipeline_mode = #tpu.pipeline_mode<synchronous>, transform_indices = @transform_12, window_bounds = array<i64: 256, 128>}, {pipeline_mode = #tpu.pipeline_mode<synchronous>, transform_indices = @transform_13, window_bounds = array<i64: 1, 128>}, {transform_indices = @transform_14, window_bounds = array<i64: 32, 128>}]} {
    %c0 = arith.constant 0 : index
    %c0_0 = arith.constant 0 : index
    %0 = vector.load %arg1[%c0, %c0_0] : memref<32x128xf32, #tpu.memory_space<vmem>>, vector<32x128xf32>
    %c0_1 = arith.constant 0 : index
    %c0_2 = arith.constant 0 : index
    %1 = vector.load %arg2[%c0_1, %c0_2] : memref<3x32xf32, #tpu.memory_space<vmem>>, vector<3x32xf32>
    %cst = arith.constant 0.000000e+00 : f32
    %2 = vector.broadcast %cst : f32 to vector<32x32xf32>
    %3 = vector.extract_strided_slice %1 {offsets = [0, 0], sizes = [1, 32], strides = [1, 1]} : vector<3x32xf32> to vector<1x32xf32>
    %4 = vector.extract_strided_slice %0 {offsets = [0, 0], sizes = [32, 1], strides = [1, 1]} : vector<32x128xf32> to vector<32x1xf32>
    %5 = vector.broadcast %3 : vector<1x32xf32> to vector<32x32xf32>
    %6 = vector.broadcast %4 : vector<32x1xf32> to vector<32x32xf32>
    %7 = arith.subf %5, %6 : vector<32x32xf32>
    %8 = arith.mulf %7, %7 : vector<32x32xf32>
    %9 = arith.addf %2, %8 : vector<32x32xf32>
    %10 = vector.extract_strided_slice %1 {offsets = [1, 0], sizes = [1, 32], strides = [1, 1]} : vector<3x32xf32> to vector<1x32xf32>
    %11 = vector.extract_strided_slice %0 {offsets = [0, 1], sizes = [32, 1], strides = [1, 1]} : vector<32x128xf32> to vector<32x1xf32>
    %12 = vector.broadcast %10 : vector<1x32xf32> to vector<32x32xf32>
    %13 = vector.broadcast %11 : vector<32x1xf32> to vector<32x32xf32>
    %14 = arith.subf %12, %13 : vector<32x32xf32>
    %15 = arith.mulf %14, %14 : vector<32x32xf32>
    %16 = arith.addf %9, %15 : vector<32x32xf32>
    %17 = vector.extract_strided_slice %1 {offsets = [2, 0], sizes = [1, 32], strides = [1, 1]} : vector<3x32xf32> to vector<1x32xf32>
    %18 = vector.extract_strided_slice %0 {offsets = [0, 2], sizes = [32, 1], strides = [1, 1]} : vector<32x128xf32> to vector<32x1xf32>
    %19 = vector.broadcast %17 : vector<1x32xf32> to vector<32x32xf32>
    %20 = vector.broadcast %18 : vector<32x1xf32> to vector<32x32xf32>
    %21 = arith.subf %19, %20 : vector<32x32xf32>
    %22 = arith.mulf %21, %21 : vector<32x32xf32>
    %23 = arith.addf %16, %22 : vector<32x32xf32>
    %24 = math.sqrt %23 : vector<32x32xf32>
    %cst_3 = arith.constant -2.000000e+00 : f32
    %25 = vector.broadcast %cst_3 : f32 to vector<32x32xf32>
    %26 = arith.mulf %25, %24 : vector<32x32xf32>
    %27 = math.exp %26 : vector<32x32xf32>
    %28 = arith.truncf %27 : vector<32x32xf32> to vector<32x32xbf16>
    %c0_4 = arith.constant 0 : index
    %c0_5 = arith.constant 0 : index
    %29 = vector.load %arg3[%c0_4, %c0_5] : memref<32x3072xbf16, #tpu.memory_space<vmem>>, vector<32x1024xbf16>
    %cst_6 = arith.constant dense<0.000000e+00> : vector<32x1024xf32>
    %30 = tpu.matmul %28, %29, %cst_6 {dimension_numbers = #tpu.dot_dimension_numbers<[1], [0], [0], [1], [0, 0, 1, 1], [], []>} : vector<32x32xbf16>, vector<32x1024xbf16>, vector<32x1024xf32> -> vector<32x1024xf32>
    %31 = vector.extract_strided_slice %0 {offsets = [0, 0], sizes = [32, 1], strides = [1, 1]} : vector<32x128xf32> to vector<32x1xf32>
    %32 = vector.extract_strided_slice %30 {offsets = [0, 0], sizes = [32, 256], strides = [1, 1]} : vector<32x1024xf32> to vector<32x256xf32>
    %33 = vector.broadcast %31 : vector<32x1xf32> to vector<32x256xf32>
    %34 = arith.mulf %33, %32 : vector<32x256xf32>
    %35 = vector.extract_strided_slice %0 {offsets = [0, 1], sizes = [32, 1], strides = [1, 1]} : vector<32x128xf32> to vector<32x1xf32>
    %36 = vector.extract_strided_slice %30 {offsets = [0, 256], sizes = [32, 256], strides = [1, 1]} : vector<32x1024xf32> to vector<32x256xf32>
    %37 = vector.broadcast %35 : vector<32x1xf32> to vector<32x256xf32>
    %38 = arith.mulf %37, %36 : vector<32x256xf32>
    %39 = arith.addf %34, %38 : vector<32x256xf32>
    %40 = vector.extract_strided_slice %0 {offsets = [0, 2], sizes = [32, 1], strides = [1, 1]} : vector<32x128xf32> to vector<32x1xf32>
    %41 = vector.extract_strided_slice %30 {offsets = [0, 512], sizes = [32, 256], strides = [1, 1]} : vector<32x1024xf32> to vector<32x256xf32>
    %42 = vector.broadcast %40 : vector<32x1xf32> to vector<32x256xf32>
    %43 = arith.mulf %42, %41 : vector<32x256xf32>
    %44 = arith.addf %39, %43 : vector<32x256xf32>
    %45 = vector.extract_strided_slice %0 {offsets = [0, 3], sizes = [32, 1], strides = [1, 1]} : vector<32x128xf32> to vector<32x1xf32>
    %46 = vector.extract_strided_slice %30 {offsets = [0, 768], sizes = [32, 256], strides = [1, 1]} : vector<32x1024xf32> to vector<32x256xf32>
    %47 = vector.broadcast %45 : vector<32x1xf32> to vector<32x256xf32>
    %48 = arith.mulf %47, %46 : vector<32x256xf32>
    %49 = arith.addf %44, %48 : vector<32x256xf32>
    %c0_7 = arith.constant 0 : index
    %c1024 = arith.constant 1024 : index
    %50 = vector.load %arg3[%c0_7, %c1024] : memref<32x3072xbf16, #tpu.memory_space<vmem>>, vector<32x1024xbf16>
    %cst_8 = arith.constant dense<0.000000e+00> : vector<32x1024xf32>
    %51 = tpu.matmul %28, %50, %cst_8 {dimension_numbers = #tpu.dot_dimension_numbers<[1], [0], [0], [1], [0, 0, 1, 1], [], []>} : vector<32x32xbf16>, vector<32x1024xbf16>, vector<32x1024xf32> -> vector<32x1024xf32>
    %52 = vector.extract_strided_slice %0 {offsets = [0, 4], sizes = [32, 1], strides = [1, 1]} : vector<32x128xf32> to vector<32x1xf32>
    %53 = vector.extract_strided_slice %51 {offsets = [0, 0], sizes = [32, 256], strides = [1, 1]} : vector<32x1024xf32> to vector<32x256xf32>
    %54 = vector.broadcast %52 : vector<32x1xf32> to vector<32x256xf32>
    %55 = arith.mulf %54, %53 : vector<32x256xf32>
    %56 = arith.addf %49, %55 : vector<32x256xf32>
    %57 = vector.extract_strided_slice %0 {offsets = [0, 5], sizes = [32, 1], strides = [1, 1]} : vector<32x128xf32> to vector<32x1xf32>
    %58 = vector.extract_strided_slice %51 {offsets = [0, 256], sizes = [32, 256], strides = [1, 1]} : vector<32x1024xf32> to vector<32x256xf32>
    %59 = vector.broadcast %57 : vector<32x1xf32> to vector<32x256xf32>
    %60 = arith.mulf %59, %58 : vector<32x256xf32>
    %61 = arith.addf %56, %60 : vector<32x256xf32>
    %62 = vector.extract_strided_slice %0 {offsets = [0, 6], sizes = [32, 1], strides = [1, 1]} : vector<32x128xf32> to vector<32x1xf32>
    %63 = vector.extract_strided_slice %51 {offsets = [0, 512], sizes = [32, 256], strides = [1, 1]} : vector<32x1024xf32> to vector<32x256xf32>
    %64 = vector.broadcast %62 : vector<32x1xf32> to vector<32x256xf32>
    %65 = arith.mulf %64, %63 : vector<32x256xf32>
    %66 = arith.addf %61, %65 : vector<32x256xf32>
    %67 = vector.extract_strided_slice %0 {offsets = [0, 7], sizes = [32, 1], strides = [1, 1]} : vector<32x128xf32> to vector<32x1xf32>
    %68 = vector.extract_strided_slice %51 {offsets = [0, 768], sizes = [32, 256], strides = [1, 1]} : vector<32x1024xf32> to vector<32x256xf32>
    %69 = vector.broadcast %67 : vector<32x1xf32> to vector<32x256xf32>
    %70 = arith.mulf %69, %68 : vector<32x256xf32>
    %71 = arith.addf %66, %70 : vector<32x256xf32>
    %c0_9 = arith.constant 0 : index
    %c2048 = arith.constant 2048 : index
    %72 = vector.load %arg3[%c0_9, %c2048] : memref<32x3072xbf16, #tpu.memory_space<vmem>>, vector<32x1024xbf16>
    %cst_10 = arith.constant dense<0.000000e+00> : vector<32x1024xf32>
    %73 = tpu.matmul %28, %72, %cst_10 {dimension_numbers = #tpu.dot_dimension_numbers<[1], [0], [0], [1], [0, 0, 1, 1], [], []>} : vector<32x32xbf16>, vector<32x1024xbf16>, vector<32x1024xf32> -> vector<32x1024xf32>
    %74 = vector.extract_strided_slice %0 {offsets = [0, 8], sizes = [32, 1], strides = [1, 1]} : vector<32x128xf32> to vector<32x1xf32>
    %75 = vector.extract_strided_slice %73 {offsets = [0, 0], sizes = [32, 256], strides = [1, 1]} : vector<32x1024xf32> to vector<32x256xf32>
    %76 = vector.broadcast %74 : vector<32x1xf32> to vector<32x256xf32>
    %77 = arith.mulf %76, %75 : vector<32x256xf32>
    %78 = arith.addf %71, %77 : vector<32x256xf32>
    %79 = vector.extract_strided_slice %0 {offsets = [0, 9], sizes = [32, 1], strides = [1, 1]} : vector<32x128xf32> to vector<32x1xf32>
    %80 = vector.extract_strided_slice %73 {offsets = [0, 256], sizes = [32, 256], strides = [1, 1]} : vector<32x1024xf32> to vector<32x256xf32>
    %81 = vector.broadcast %79 : vector<32x1xf32> to vector<32x256xf32>
    %82 = arith.mulf %81, %80 : vector<32x256xf32>
    %83 = arith.addf %78, %82 : vector<32x256xf32>
    %84 = vector.extract_strided_slice %0 {offsets = [0, 10], sizes = [32, 1], strides = [1, 1]} : vector<32x128xf32> to vector<32x1xf32>
    %85 = vector.extract_strided_slice %73 {offsets = [0, 512], sizes = [32, 256], strides = [1, 1]} : vector<32x1024xf32> to vector<32x256xf32>
    %86 = vector.broadcast %84 : vector<32x1xf32> to vector<32x256xf32>
    %87 = arith.mulf %86, %85 : vector<32x256xf32>
    %88 = arith.addf %83, %87 : vector<32x256xf32>
    %89 = vector.extract_strided_slice %0 {offsets = [0, 11], sizes = [32, 1], strides = [1, 1]} : vector<32x128xf32> to vector<32x1xf32>
    %90 = vector.extract_strided_slice %73 {offsets = [0, 768], sizes = [32, 256], strides = [1, 1]} : vector<32x1024xf32> to vector<32x256xf32>
    %91 = vector.broadcast %89 : vector<32x1xf32> to vector<32x256xf32>
    %92 = arith.mulf %91, %90 : vector<32x256xf32>
    %93 = arith.addf %88, %92 : vector<32x256xf32>
    %c0_11 = arith.constant 0 : index
    %c0_12 = arith.constant 0 : index
    %94 = vector.load %arg4[%c0_11, %c0_12] : memref<1x256xf32, #tpu.memory_space<vmem>>, vector<1x256xf32>
    %95 = vector.broadcast %94 : vector<1x256xf32> to vector<32x256xf32>
    %96 = arith.addf %93, %95 : vector<32x256xf32>
    %cst_13 = arith.constant 0.000000e+00 : f32
    %97 = vector.broadcast %cst_13 : f32 to vector<32x256xf32>
    %98 = arith.maximumf %96, %97 : vector<32x256xf32>
    %99 = arith.truncf %98 : vector<32x256xf32> to vector<32x256xbf16>
    %c0_14 = arith.constant 0 : index
    %c0_15 = arith.constant 0 : index
    %100 = vector.load %arg5[%c0_14, %c0_15] : memref<256x128xbf16, #tpu.memory_space<vmem>>, vector<256x128xbf16>
    %cst_16 = arith.constant dense<0.000000e+00> : vector<32x128xf32>
    %101 = tpu.matmul %99, %100, %cst_16 {dimension_numbers = #tpu.dot_dimension_numbers<[1], [0], [0], [1], [0, 0, 1, 1], [], []>} : vector<32x256xbf16>, vector<256x128xbf16>, vector<32x128xf32> -> vector<32x128xf32>
    %c0_17 = arith.constant 0 : index
    %c0_18 = arith.constant 0 : index
    %102 = vector.load %arg6[%c0_17, %c0_18] : memref<1x128xf32, #tpu.memory_space<vmem>>, vector<1x128xf32>
    %103 = vector.broadcast %102 : vector<1x128xf32> to vector<32x128xf32>
    %104 = arith.addf %101, %103 : vector<32x128xf32>
    %cst_19 = arith.constant 0.000000e+00 : f32
    %105 = vector.broadcast %cst_19 : f32 to vector<32x128xf32>
    %106 = arith.maximumf %104, %105 : vector<32x128xf32>
    %107 = arith.truncf %106 : vector<32x128xf32> to vector<32x128xbf16>
    %c0_20 = arith.constant 0 : index
    %c0_21 = arith.constant 0 : index
    %108 = vector.load %arg7[%c0_20, %c0_21] : memref<128x128xbf16, #tpu.memory_space<vmem>>, vector<128x128xbf16>
    %cst_22 = arith.constant dense<0.000000e+00> : vector<32x128xf32>
    %109 = tpu.matmul %107, %108, %cst_22 {dimension_numbers = #tpu.dot_dimension_numbers<[1], [0], [0], [1], [0, 0, 1, 1], [], []>} : vector<32x128xbf16>, vector<128x128xbf16>, vector<32x128xf32> -> vector<32x128xf32>
    %c0_23 = arith.constant 0 : index
    %c0_24 = arith.constant 0 : index
    %110 = vector.load %arg8[%c0_23, %c0_24] : memref<1x128xf32, #tpu.memory_space<vmem>>, vector<1x128xf32>
    %111 = vector.broadcast %110 : vector<1x128xf32> to vector<32x128xf32>
    %112 = arith.addf %109, %111 : vector<32x128xf32>
    %c0_25 = arith.constant 0 : index
    %c0_26 = arith.constant 0 : index
    %113 = vector.load %arg10[%c0_25, %c0_26] : memref<1x256xf32, #tpu.memory_space<vmem>>, vector<1x256xf32>
    %114 = vector.extract_strided_slice %0 {offsets = [0, 0], sizes = [32, 1], strides = [1, 1]} : vector<32x128xf32> to vector<32x1xf32>
    %c0_27 = arith.constant 0 : index
    %c0_28 = arith.constant 0 : index
    %115 = vector.load %arg9[%c0_27, %c0_28] : memref<3x256xf32, #tpu.memory_space<vmem>>, vector<1x256xf32>
    %116 = vector.broadcast %114 : vector<32x1xf32> to vector<32x256xf32>
    %117 = vector.broadcast %115 : vector<1x256xf32> to vector<32x256xf32>
    %118 = arith.mulf %116, %117 : vector<32x256xf32>
    %119 = vector.broadcast %113 : vector<1x256xf32> to vector<32x256xf32>
    %120 = arith.addf %119, %118 : vector<32x256xf32>
    %121 = vector.extract_strided_slice %0 {offsets = [0, 1], sizes = [32, 1], strides = [1, 1]} : vector<32x128xf32> to vector<32x1xf32>
    %c1 = arith.constant 1 : index
    %c0_29 = arith.constant 0 : index
    %122 = vector.load %arg9[%c1, %c0_29] : memref<3x256xf32, #tpu.memory_space<vmem>>, vector<1x256xf32>
    %123 = vector.broadcast %121 : vector<32x1xf32> to vector<32x256xf32>
    %124 = vector.broadcast %122 : vector<1x256xf32> to vector<32x256xf32>
    %125 = arith.mulf %123, %124 : vector<32x256xf32>
    %126 = arith.addf %120, %125 : vector<32x256xf32>
    %127 = vector.extract_strided_slice %0 {offsets = [0, 2], sizes = [32, 1], strides = [1, 1]} : vector<32x128xf32> to vector<32x1xf32>
    %c2 = arith.constant 2 : index
    %c0_30 = arith.constant 0 : index
    %128 = vector.load %arg9[%c2, %c0_30] : memref<3x256xf32, #tpu.memory_space<vmem>>, vector<1x256xf32>
    %129 = vector.broadcast %127 : vector<32x1xf32> to vector<32x256xf32>
    %130 = vector.broadcast %128 : vector<1x256xf32> to vector<32x256xf32>
    %131 = arith.mulf %129, %130 : vector<32x256xf32>
    %132 = arith.addf %126, %131 : vector<32x256xf32>
    %133 = vector.extract_strided_slice %132 {offsets = [0, 0], sizes = [32, 128], strides = [1, 1]} : vector<32x256xf32> to vector<32x128xf32>
    %134 = math.tanh %133 : vector<32x128xf32>
    %135 = vector.extract_strided_slice %132 {offsets = [0, 128], sizes = [32, 128], strides = [1, 1]} : vector<32x256xf32> to vector<32x128xf32>
    %cst_31 = arith.constant 0.000000e+00 : f32
    %136 = vector.broadcast %cst_31 : f32 to vector<32x128xf32>
    %137 = arith.maximumf %135, %136 : vector<32x128xf32>
    %138 = arith.truncf %134 : vector<32x128xf32> to vector<32x128xbf16>
    %c0_32 = arith.constant 0 : index
    %c0_33 = arith.constant 0 : index
    %139 = vector.load %arg11[%c0_32, %c0_33] : memref<128x128xbf16, #tpu.memory_space<vmem>>, vector<128x128xbf16>
    %cst_34 = arith.constant dense<0.000000e+00> : vector<32x128xf32>
    %140 = tpu.matmul %138, %139, %cst_34 {dimension_numbers = #tpu.dot_dimension_numbers<[1], [0], [0], [1], [0, 0, 1, 1], [], []>} : vector<32x128xbf16>, vector<128x128xbf16>, vector<32x128xf32> -> vector<32x128xf32>
    %c0_35 = arith.constant 0 : index
    %c0_36 = arith.constant 0 : index
    %141 = vector.load %arg12[%c0_35, %c0_36] : memref<1x128xf32, #tpu.memory_space<vmem>>, vector<1x128xf32>
    %142 = vector.broadcast %141 : vector<1x128xf32> to vector<32x128xf32>
    %143 = arith.addf %140, %142 : vector<32x128xf32>
    %144 = math.tanh %143 : vector<32x128xf32>
    %145 = arith.mulf %112, %144 : vector<32x128xf32>
    %146 = tpu.concatenate %145, %137 in 1 : vector<32x128xf32>, vector<32x128xf32> -> vector<32x256xf32>
    %147 = arith.truncf %146 : vector<32x256xf32> to vector<32x256xbf16>
    %c0_37 = arith.constant 0 : index
    %c0_38 = arith.constant 0 : index
    %148 = vector.load %arg13[%c0_37, %c0_38] : memref<256x128xbf16, #tpu.memory_space<vmem>>, vector<256x128xbf16>
    %cst_39 = arith.constant dense<0.000000e+00> : vector<32x128xf32>
    %149 = tpu.matmul %147, %148, %cst_39 {dimension_numbers = #tpu.dot_dimension_numbers<[1], [0], [0], [1], [0, 0, 1, 1], [], []>} : vector<32x256xbf16>, vector<256x128xbf16>, vector<32x128xf32> -> vector<32x128xf32>
    %c0_40 = arith.constant 0 : index
    %c0_41 = arith.constant 0 : index
    %150 = vector.load %arg14[%c0_40, %c0_41] : memref<1x128xf32, #tpu.memory_space<vmem>>, vector<1x128xf32>
    %151 = vector.broadcast %150 : vector<1x128xf32> to vector<32x128xf32>
    %152 = arith.addf %149, %151 : vector<32x128xf32>
    %153 = tpu.iota {dimensions = array<i32: 1>} : vector<32x128xi32>
    %c8_i32 = arith.constant 8 : i32
    %154 = vector.broadcast %c8_i32 : i32 to vector<32x128xi32>
    %155 = arith.cmpi slt, %153, %154 : vector<32x128xi32>
    %cst_42 = arith.constant 0.000000e+00 : f32
    %156 = vector.broadcast %cst_42 : f32 to vector<32x128xf32>
    %157 = arith.select %155, %0, %156 : vector<32x128xi1>, vector<32x128xf32>
    %158 = arith.addf %157, %152 : vector<32x128xf32>
    %c3_i32 = arith.constant 3 : i32
    %159 = vector.broadcast %c3_i32 : i32 to vector<32x128xi32>
    %160 = arith.cmpi sge, %153, %159 : vector<32x128xi32>
    %c7_i32 = arith.constant 7 : i32
    %161 = vector.broadcast %c7_i32 : i32 to vector<32x128xi32>
    %162 = arith.cmpi slt, %153, %161 : vector<32x128xi32>
    %163 = arith.andi %160, %162 : vector<32x128xi1>
    %164 = arith.mulf %158, %158 : vector<32x128xf32>
    %cst_43 = arith.constant 0.000000e+00 : f32
    %165 = vector.broadcast %cst_43 : f32 to vector<32x128xf32>
    %166 = arith.select %163, %164, %165 : vector<32x128xi1>, vector<32x128xf32>
    %cst_44 = arith.constant dense<0.000000e+00> : vector<32xf32>
    %167 = vector.multi_reduction <add>, %166, %cst_44 [1] : vector<32x128xf32> to vector<32xf32>
    %168 = vector.shape_cast %167 : vector<32xf32> to vector<32x1xf32>
    %169 = math.sqrt %168 : vector<32x1xf32>
    %cst_45 = arith.constant 9.99999993E-9 : f32
    %170 = vector.broadcast %cst_45 : f32 to vector<32x1xf32>
    %171 = arith.addf %169, %170 : vector<32x1xf32>
    %172 = tpu.reciprocal %171 {approx = true} : vector<32x1xf32> -> vector<32x1xf32>
    %173 = vector.broadcast %172 : vector<32x1xf32> to vector<32x128xf32>
    %174 = arith.mulf %158, %173 : vector<32x128xf32>
    %175 = arith.select %163, %174, %158 : vector<32x128xi1>, vector<32x128xf32>
    %c0_46 = arith.constant 0 : index
    %c0_47 = arith.constant 0 : index
    %176 = vector.load %arg15[%c0_46, %c0_47] : memref<32x128xf32, #tpu.memory_space<vmem>>, vector<32x128xf32>
    tpu.vector_store %arg15[%c0_46, %c0_47], %175 {strides = array<i32>} : memref<32x128xf32, #tpu.memory_space<vmem>>, vector<32x128xf32>,
    return
  }
  func.func @transform_0(%arg0: i32) -> (i32, i32) {
    %c0_i32 = arith.constant 0 : i32
    %c0_i32_0 = arith.constant 0 : i32
    return %arg0, %c0_i32 : i32, i32
  }
  func.func @transform_1(%arg0: i32) -> (i32, i32) {
    %c0_i32 = arith.constant 0 : i32
    %c0_i32_0 = arith.constant 0 : i32
    %c0_i32_1 = arith.constant 0 : i32
    return %c0_i32, %c0_i32_0 : i32, i32
  }
  func.func @transform_2(%arg0: i32) -> (i32, i32) {
    %c0_i32 = arith.constant 0 : i32
    %c0_i32_0 = arith.constant 0 : i32
    %c0_i32_1 = arith.constant 0 : i32
    return %c0_i32, %c0_i32_0 : i32, i32
  }
  func.func @transform_3(%arg0: i32) -> (i32, i32) {
    %c0_i32 = arith.constant 0 : i32
    %c0_i32_0 = arith.constant 0 : i32
    %c0_i32_1 = arith.constant 0 : i32
    return %c0_i32, %c0_i32_0 : i32, i32
  }
  func.func @transform_4(%arg0: i32) -> (i32, i32) {
    %c0_i32 = arith.constant 0 : i32
    %c0_i32_0 = arith.constant 0 : i32
    %c0_i32_1 = arith.constant 0 : i32
    return %c0_i32, %c0_i32_0 : i32, i32
  }
  func.func @transform_5(%arg0: i32) -> (i32, i32) {
    %c0_i32 = arith.constant 0 : i32
    %c0_i32_0 = arith.constant 0 : i32
    %c0_i32_1 = arith.constant 0 : i32
    return %c0_i32, %c0_i32_0 : i32, i32
  }
  func.func @transform_6(%arg0: i32) -> (i32, i32) {
    %c0_i32 = arith.constant 0 : i32
    %c0_i32_0 = arith.constant 0 : i32
    %c0_i32_1 = arith.constant 0 : i32
    return %c0_i32, %c0_i32_0 : i32, i32
  }
  func.func @transform_7(%arg0: i32) -> (i32, i32) {
    %c0_i32 = arith.constant 0 : i32
    %c0_i32_0 = arith.constant 0 : i32
    %c0_i32_1 = arith.constant 0 : i32
    return %c0_i32, %c0_i32_0 : i32, i32
  }
  func.func @transform_8(%arg0: i32) -> (i32, i32) {
    %c0_i32 = arith.constant 0 : i32
    %c0_i32_0 = arith.constant 0 : i32
    %c0_i32_1 = arith.constant 0 : i32
    return %c0_i32, %c0_i32_0 : i32, i32
  }
  func.func @transform_9(%arg0: i32) -> (i32, i32) {
    %c0_i32 = arith.constant 0 : i32
    %c0_i32_0 = arith.constant 0 : i32
    %c0_i32_1 = arith.constant 0 : i32
    return %c0_i32, %c0_i32_0 : i32, i32
  }
  func.func @transform_10(%arg0: i32) -> (i32, i32) {
    %c0_i32 = arith.constant 0 : i32
    %c0_i32_0 = arith.constant 0 : i32
    %c0_i32_1 = arith.constant 0 : i32
    return %c0_i32, %c0_i32_0 : i32, i32
  }
  func.func @transform_11(%arg0: i32) -> (i32, i32) {
    %c0_i32 = arith.constant 0 : i32
    %c0_i32_0 = arith.constant 0 : i32
    %c0_i32_1 = arith.constant 0 : i32
    return %c0_i32, %c0_i32_0 : i32, i32
  }
  func.func @transform_12(%arg0: i32) -> (i32, i32) {
    %c0_i32 = arith.constant 0 : i32
    %c0_i32_0 = arith.constant 0 : i32
    %c0_i32_1 = arith.constant 0 : i32
    return %c0_i32, %c0_i32_0 : i32, i32
  }
  func.func @transform_13(%arg0: i32) -> (i32, i32) {
    %c0_i32 = arith.constant 0 : i32
    %c0_i32_0 = arith.constant 0 : i32
    %c0_i32_1 = arith.constant 0 : i32
    return %c0_i32, %c0_i32_0 : i32, i32
  }
  func.func @transform_14(%arg0: i32) -> (i32, i32) {
    %c0_i32 = arith.constant 0 : i32
    %c0_i32_0 = arith.constant 0 : i32
    return %arg0, %c0_i32 : i32, i32
  }
}

module attributes {stable_mosaic.version = 11 : i64} {
  func.func @_neural_operator_kernel(%arg0: i32, %arg1: memref<32x128xf32, #tpu.memory_space<vmem>>, %arg2: memref<3x32xf32, #tpu.memory_space<vmem>>, %arg3: memref<32x3072xbf16, #tpu.memory_space<vmem>>, %arg4: memref<1x256xf32, #tpu.memory_space<vmem>>, %arg5: memref<256x128xbf16, #tpu.memory_space<vmem>>, %arg6: memref<1x128xf32, #tpu.memory_space<vmem>>, %arg7: memref<128x128xbf16, #tpu.memory_space<vmem>>, %arg8: memref<1x128xf32, #tpu.memory_space<vmem>>, %arg9: memref<3x256xf32, #tpu.memory_space<vmem>>, %arg10: memref<1x256xf32, #tpu.memory_space<vmem>>, %arg11: memref<128x128xbf16, #tpu.memory_space<vmem>>, %arg12: memref<1x128xf32, #tpu.memory_space<vmem>>, %arg13: memref<256x128xbf16, #tpu.memory_space<vmem>>, %arg14: memref<1x128xf32, #tpu.memory_space<vmem>>, %arg15: memref<32x128xf32, #tpu.memory_space<vmem>>) attributes {dimension_semantics = [#tpu.dimension_semantics<parallel>], iteration_bounds = array<i64: 2>, scalar_prefetch = 0 : i64, scratch_operands = 0 : i64, tpu.core_type = #tpu.core_type<tc>, window_params = [{transform_indices = @transform_0, window_bounds = array<i64: 32, 128>}, {pipeline_mode = #tpu.pipeline_mode<synchronous>, transform_indices = @transform_1, window_bounds = array<i64: 3, 32>}, {pipeline_mode = #tpu.pipeline_mode<synchronous>, transform_indices = @transform_2, window_bounds = array<i64: 32, 3072>}, {pipeline_mode = #tpu.pipeline_mode<synchronous>, transform_indices = @transform_3, window_bounds = array<i64: 1, 256>}, {pipeline_mode = #tpu.pipeline_mode<synchronous>, transform_indices = @transform_4, window_bounds = array<i64: 256, 128>}, {pipeline_mode = #tpu.pipeline_mode<synchronous>, transform_indices = @transform_5, window_bounds = array<i64: 1, 128>}, {pipeline_mode = #tpu.pipeline_mode<synchronous>, transform_indices = @transform_6, window_bounds = array<i64: 128, 128>}, {pipeline_mode = #tpu.pipeline_mode<synchronous>, transform_indices = @transform_7, window_bounds = array<i64: 1, 128>}, {pipeline_mode = #tpu.pipeline_mode<synchronous>, transform_indices = @transform_8, window_bounds = array<i64: 3, 256>}, {pipeline_mode = #tpu.pipeline_mode<synchronous>, transform_indices = @transform_9, window_bounds = array<i64: 1, 256>}, {pipeline_mode = #tpu.pipeline_mode<synchronous>, transform_indices = @transform_10, window_bounds = array<i64: 128, 128>}, {pipeline_mode = #tpu.pipeline_mode<synchronous>, transform_indices = @transform_11, window_bounds = array<i64: 1, 128>}, {pipeline_mode = #tpu.pipeline_mode<synchronous>, transform_indices = @transform_12, window_bounds = array<i64: 256, 128>}, {pipeline_mode = #tpu.pipeline_mode<synchronous>, transform_indices = @transform_13, window_bounds = array<i64: 1, 128>}, {transform_indices = @transform_14, window_bounds = array<i64: 32, 128>}]} {
    %c0 = arith.constant 0 : index
    %c0_0 = arith.constant 0 : index
    %0 = vector.load %arg1[%c0, %c0_0] : memref<32x128xf32, #tpu.memory_space<vmem>>, vector<32x128xf32>
    %c0_1 = arith.constant 0 : index
    %c0_2 = arith.constant 0 : index
    %1 = vector.load %arg2[%c0_1, %c0_2] : memref<3x32xf32, #tpu.memory_space<vmem>>, vector<3x32xf32>
    %cst = arith.constant 0.000000e+00 : f32
    %2 = vector.broadcast %cst : f32 to vector<32x32xf32>
    %3 = vector.extract_strided_slice %1 {offsets = [0, 0], sizes = [1, 32], strides = [1, 1]} : vector<3x32xf32> to vector<1x32xf32>
    %4 = vector.extract_strided_slice %0 {offsets = [0, 0], sizes = [32, 1], strides = [1, 1]} : vector<32x128xf32> to vector<32x1xf32>
    %5 = vector.broadcast %3 : vector<1x32xf32> to vector<32x32xf32>
    %6 = vector.broadcast %4 : vector<32x1xf32> to vector<32x32xf32>
    %7 = arith.subf %5, %6 : vector<32x32xf32>
    %8 = arith.mulf %7, %7 : vector<32x32xf32>
    %9 = arith.addf %2, %8 : vector<32x32xf32>
    %10 = vector.extract_strided_slice %1 {offsets = [1, 0], sizes = [1, 32], strides = [1, 1]} : vector<3x32xf32> to vector<1x32xf32>
    %11 = vector.extract_strided_slice %0 {offsets = [0, 1], sizes = [32, 1], strides = [1, 1]} : vector<32x128xf32> to vector<32x1xf32>
    %12 = vector.broadcast %10 : vector<1x32xf32> to vector<32x32xf32>
    %13 = vector.broadcast %11 : vector<32x1xf32> to vector<32x32xf32>
    %14 = arith.subf %12, %13 : vector<32x32xf32>
    %15 = arith.mulf %14, %14 : vector<32x32xf32>
    %16 = arith.addf %9, %15 : vector<32x32xf32>
    %17 = vector.extract_strided_slice %1 {offsets = [2, 0], sizes = [1, 32], strides = [1, 1]} : vector<3x32xf32> to vector<1x32xf32>
    %18 = vector.extract_strided_slice %0 {offsets = [0, 2], sizes = [32, 1], strides = [1, 1]} : vector<32x128xf32> to vector<32x1xf32>
    %19 = vector.broadcast %17 : vector<1x32xf32> to vector<32x32xf32>
    %20 = vector.broadcast %18 : vector<32x1xf32> to vector<32x32xf32>
    %21 = arith.subf %19, %20 : vector<32x32xf32>
    %22 = arith.mulf %21, %21 : vector<32x32xf32>
    %23 = arith.addf %16, %22 : vector<32x32xf32>
    %24 = math.sqrt %23 : vector<32x32xf32>
    %cst_3 = arith.constant -2.000000e+00 : f32
    %25 = vector.broadcast %cst_3 : f32 to vector<32x32xf32>
    %26 = arith.mulf %25, %24 : vector<32x32xf32>
    %27 = math.exp %26 : vector<32x32xf32>
    %28 = arith.truncf %27 : vector<32x32xf32> to vector<32x32xbf16>
    %c0_4 = arith.constant 0 : index
    %c0_5 = arith.constant 0 : index
    %29 = vector.load %arg3[%c0_4, %c0_5] : memref<32x3072xbf16, #tpu.memory_space<vmem>>, vector<32x1024xbf16>
    %cst_6 = arith.constant dense<0.000000e+00> : vector<32x1024xf32>
    %30 = tpu.matmul %28, %29, %cst_6 {dimension_numbers = #tpu.dot_dimension_numbers<[1], [0], [0], [1], [0, 0, 1, 1], [], []>} : vector<32x32xbf16>, vector<32x1024xbf16>, vector<32x1024xf32> -> vector<32x1024xf32>
    %31 = vector.extract_strided_slice %0 {offsets = [0, 0], sizes = [32, 1], strides = [1, 1]} : vector<32x128xf32> to vector<32x1xf32>
    %32 = vector.extract_strided_slice %30 {offsets = [0, 0], sizes = [32, 256], strides = [1, 1]} : vector<32x1024xf32> to vector<32x256xf32>
    %33 = vector.broadcast %31 : vector<32x1xf32> to vector<32x256xf32>
    %34 = arith.mulf %33, %32 : vector<32x256xf32>
    %35 = vector.extract_strided_slice %0 {offsets = [0, 1], sizes = [32, 1], strides = [1, 1]} : vector<32x128xf32> to vector<32x1xf32>
    %36 = vector.extract_strided_slice %30 {offsets = [0, 256], sizes = [32, 256], strides = [1, 1]} : vector<32x1024xf32> to vector<32x256xf32>
    %37 = vector.broadcast %35 : vector<32x1xf32> to vector<32x256xf32>
    %38 = arith.mulf %37, %36 : vector<32x256xf32>
    %39 = arith.addf %34, %38 : vector<32x256xf32>
    %40 = vector.extract_strided_slice %0 {offsets = [0, 2], sizes = [32, 1], strides = [1, 1]} : vector<32x128xf32> to vector<32x1xf32>
    %41 = vector.extract_strided_slice %30 {offsets = [0, 512], sizes = [32, 256], strides = [1, 1]} : vector<32x1024xf32> to vector<32x256xf32>
    %42 = vector.broadcast %40 : vector<32x1xf32> to vector<32x256xf32>
    %43 = arith.mulf %42, %41 : vector<32x256xf32>
    %44 = arith.addf %39, %43 : vector<32x256xf32>
    %45 = vector.extract_strided_slice %0 {offsets = [0, 3], sizes = [32, 1], strides = [1, 1]} : vector<32x128xf32> to vector<32x1xf32>
    %46 = vector.extract_strided_slice %30 {offsets = [0, 768], sizes = [32, 256], strides = [1, 1]} : vector<32x1024xf32> to vector<32x256xf32>
    %47 = vector.broadcast %45 : vector<32x1xf32> to vector<32x256xf32>
    %48 = arith.mulf %47, %46 : vector<32x256xf32>
    %49 = arith.addf %44, %48 : vector<32x256xf32>
    %c0_7 = arith.constant 0 : index
    %c1024 = arith.constant 1024 : index
    %50 = vector.load %arg3[%c0_7, %c1024] : memref<32x3072xbf16, #tpu.memory_space<vmem>>, vector<32x1024xbf16>
    %cst_8 = arith.constant dense<0.000000e+00> : vector<32x1024xf32>
    %51 = tpu.matmul %28, %50, %cst_8 {dimension_numbers = #tpu.dot_dimension_numbers<[1], [0], [0], [1], [0, 0, 1, 1], [], []>} : vector<32x32xbf16>, vector<32x1024xbf16>, vector<32x1024xf32> -> vector<32x1024xf32>
    %52 = vector.extract_strided_slice %0 {offsets = [0, 4], sizes = [32, 1], strides = [1, 1]} : vector<32x128xf32> to vector<32x1xf32>
    %53 = vector.extract_strided_slice %51 {offsets = [0, 0], sizes = [32, 256], strides = [1, 1]} : vector<32x1024xf32> to vector<32x256xf32>
    %54 = vector.broadcast %52 : vector<32x1xf32> to vector<32x256xf32>
    %55 = arith.mulf %54, %53 : vector<32x256xf32>
    %56 = arith.addf %49, %55 : vector<32x256xf32>
    %57 = vector.extract_strided_slice %0 {offsets = [0, 5], sizes = [32, 1], strides = [1, 1]} : vector<32x128xf32> to vector<32x1xf32>
    %58 = vector.extract_strided_slice %51 {offsets = [0, 256], sizes = [32, 256], strides = [1, 1]} : vector<32x1024xf32> to vector<32x256xf32>
    %59 = vector.broadcast %57 : vector<32x1xf32> to vector<32x256xf32>
    %60 = arith.mulf %59, %58 : vector<32x256xf32>
    %61 = arith.addf %56, %60 : vector<32x256xf32>
    %62 = vector.extract_strided_slice %0 {offsets = [0, 6], sizes = [32, 1], strides = [1, 1]} : vector<32x128xf32> to vector<32x1xf32>
    %63 = vector.extract_strided_slice %51 {offsets = [0, 512], sizes = [32, 256], strides = [1, 1]} : vector<32x1024xf32> to vector<32x256xf32>
    %64 = vector.broadcast %62 : vector<32x1xf32> to vector<32x256xf32>
    %65 = arith.mulf %64, %63 : vector<32x256xf32>
    %66 = arith.addf %61, %65 : vector<32x256xf32>
    %67 = vector.extract_strided_slice %0 {offsets = [0, 7], sizes = [32, 1], strides = [1, 1]} : vector<32x128xf32> to vector<32x1xf32>
    %68 = vector.extract_strided_slice %51 {offsets = [0, 768], sizes = [32, 256], strides = [1, 1]} : vector<32x1024xf32> to vector<32x256xf32>
    %69 = vector.broadcast %67 : vector<32x1xf32> to vector<32x256xf32>
    %70 = arith.mulf %69, %68 : vector<32x256xf32>
    %71 = arith.addf %66, %70 : vector<32x256xf32>
    %c0_9 = arith.constant 0 : index
    %c2048 = arith.constant 2048 : index
    %72 = vector.load %arg3[%c0_9, %c2048] : memref<32x3072xbf16, #tpu.memory_space<vmem>>, vector<32x1024xbf16>
    %cst_10 = arith.constant dense<0.000000e+00> : vector<32x1024xf32>
    %73 = tpu.matmul %28, %72, %cst_10 {dimension_numbers = #tpu.dot_dimension_numbers<[1], [0], [0], [1], [0, 0, 1, 1], [], []>} : vector<32x32xbf16>, vector<32x1024xbf16>, vector<32x1024xf32> -> vector<32x1024xf32>
    %74 = vector.extract_strided_slice %0 {offsets = [0, 8], sizes = [32, 1], strides = [1, 1]} : vector<32x128xf32> to vector<32x1xf32>
    %75 = vector.extract_strided_slice %73 {offsets = [0, 0], sizes = [32, 256], strides = [1, 1]} : vector<32x1024xf32> to vector<32x256xf32>
    %76 = vector.broadcast %74 : vector<32x1xf32> to vector<32x256xf32>
    %77 = arith.mulf %76, %75 : vector<32x256xf32>
    %78 = arith.addf %71, %77 : vector<32x256xf32>
    %79 = vector.extract_strided_slice %0 {offsets = [0, 9], sizes = [32, 1], strides = [1, 1]} : vector<32x128xf32> to vector<32x1xf32>
    %80 = vector.extract_strided_slice %73 {offsets = [0, 256], sizes = [32, 256], strides = [1, 1]} : vector<32x1024xf32> to vector<32x256xf32>
    %81 = vector.broadcast %79 : vector<32x1xf32> to vector<32x256xf32>
    %82 = arith.mulf %81, %80 : vector<32x256xf32>
    %83 = arith.addf %78, %82 : vector<32x256xf32>
    %84 = vector.extract_strided_slice %0 {offsets = [0, 10], sizes = [32, 1], strides = [1, 1]} : vector<32x128xf32> to vector<32x1xf32>
    %85 = vector.extract_strided_slice %73 {offsets = [0, 512], sizes = [32, 256], strides = [1, 1]} : vector<32x1024xf32> to vector<32x256xf32>
    %86 = vector.broadcast %84 : vector<32x1xf32> to vector<32x256xf32>
    %87 = arith.mulf %86, %85 : vector<32x256xf32>
    %88 = arith.addf %83, %87 : vector<32x256xf32>
    %89 = vector.extract_strided_slice %0 {offsets = [0, 11], sizes = [32, 1], strides = [1, 1]} : vector<32x128xf32> to vector<32x1xf32>
    %90 = vector.extract_strided_slice %73 {offsets = [0, 768], sizes = [32, 256], strides = [1, 1]} : vector<32x1024xf32> to vector<32x256xf32>
    %91 = vector.broadcast %89 : vector<32x1xf32> to vector<32x256xf32>
    %92 = arith.mulf %91, %90 : vector<32x256xf32>
    %93 = arith.addf %88, %92 : vector<32x256xf32>
    %c0_11 = arith.constant 0 : index
    %c0_12 = arith.constant 0 : index
    %94 = vector.load %arg4[%c0_11, %c0_12] : memref<1x256xf32, #tpu.memory_space<vmem>>, vector<1x256xf32>
    %95 = vector.broadcast %94 : vector<1x256xf32> to vector<32x256xf32>
    %96 = arith.addf %93, %95 : vector<32x256xf32>
    %cst_13 = arith.constant 0.000000e+00 : f32
    %97 = vector.broadcast %cst_13 : f32 to vector<32x256xf32>
    %98 = arith.maximumf %96, %97 : vector<32x256xf32>
    %99 = arith.truncf %98 : vector<32x256xf32> to vector<32x256xbf16>
    %c0_14 = arith.constant 0 : index
    %c0_15 = arith.constant 0 : index
    %100 = vector.load %arg5[%c0_14, %c0_15] : memref<256x128xbf16, #tpu.memory_space<vmem>>, vector<256x128xbf16>
    %cst_16 = arith.constant dense<0.000000e+00> : vector<32x128xf32>
    %101 = tpu.matmul %99, %100, %cst_16 {dimension_numbers = #tpu.dot_dimension_numbers<[1], [0], [0], [1], [0, 0, 1, 1], [], []>} : vector<32x256xbf16>, vector<256x128xbf16>, vector<32x128xf32> -> vector<32x128xf32>
    %c0_17 = arith.constant 0 : index
    %c0_18 = arith.constant 0 : index
    %102 = vector.load %arg6[%c0_17, %c0_18] : memref<1x128xf32, #tpu.memory_space<vmem>>, vector<1x128xf32>
    %103 = vector.broadcast %102 : vector<1x128xf32> to vector<32x128xf32>
    %104 = arith.addf %101, %103 : vector<32x128xf32>
    %cst_19 = arith.constant 0.000000e+00 : f32
    %105 = vector.broadcast %cst_19 : f32 to vector<32x128xf32>
    %106 = arith.maximumf %104, %105 : vector<32x128xf32>
    %107 = arith.truncf %106 : vector<32x128xf32> to vector<32x128xbf16>
    %c0_20 = arith.constant 0 : index
    %c0_21 = arith.constant 0 : index
    %108 = vector.load %arg7[%c0_20, %c0_21] : memref<128x128xbf16, #tpu.memory_space<vmem>>, vector<128x128xbf16>
    %cst_22 = arith.constant dense<0.000000e+00> : vector<32x128xf32>
    %109 = tpu.matmul %107, %108, %cst_22 {dimension_numbers = #tpu.dot_dimension_numbers<[1], [0], [0], [1], [0, 0, 1, 1], [], []>} : vector<32x128xbf16>, vector<128x128xbf16>, vector<32x128xf32> -> vector<32x128xf32>
    %c0_23 = arith.constant 0 : index
    %c0_24 = arith.constant 0 : index
    %110 = vector.load %arg8[%c0_23, %c0_24] : memref<1x128xf32, #tpu.memory_space<vmem>>, vector<1x128xf32>
    %111 = vector.broadcast %110 : vector<1x128xf32> to vector<32x128xf32>
    %112 = arith.addf %109, %111 : vector<32x128xf32>
    %c0_25 = arith.constant 0 : index
    %c0_26 = arith.constant 0 : index
    %113 = vector.load %arg10[%c0_25, %c0_26] : memref<1x256xf32, #tpu.memory_space<vmem>>, vector<1x256xf32>
    %114 = vector.extract_strided_slice %0 {offsets = [0, 0], sizes = [32, 1], strides = [1, 1]} : vector<32x128xf32> to vector<32x1xf32>
    %c0_27 = arith.constant 0 : index
    %c0_28 = arith.constant 0 : index
    %115 = vector.load %arg9[%c0_27, %c0_28] : memref<3x256xf32, #tpu.memory_space<vmem>>, vector<1x256xf32>
    %116 = vector.broadcast %114 : vector<32x1xf32> to vector<32x256xf32>
    %117 = vector.broadcast %115 : vector<1x256xf32> to vector<32x256xf32>
    %118 = arith.mulf %116, %117 : vector<32x256xf32>
    %119 = vector.broadcast %113 : vector<1x256xf32> to vector<32x256xf32>
    %120 = arith.addf %119, %118 : vector<32x256xf32>
    %121 = vector.extract_strided_slice %0 {offsets = [0, 1], sizes = [32, 1], strides = [1, 1]} : vector<32x128xf32> to vector<32x1xf32>
    %c1 = arith.constant 1 : index
    %c0_29 = arith.constant 0 : index
    %122 = vector.load %arg9[%c1, %c0_29] : memref<3x256xf32, #tpu.memory_space<vmem>>, vector<1x256xf32>
    %123 = vector.broadcast %121 : vector<32x1xf32> to vector<32x256xf32>
    %124 = vector.broadcast %122 : vector<1x256xf32> to vector<32x256xf32>
    %125 = arith.mulf %123, %124 : vector<32x256xf32>
    %126 = arith.addf %120, %125 : vector<32x256xf32>
    %127 = vector.extract_strided_slice %0 {offsets = [0, 2], sizes = [32, 1], strides = [1, 1]} : vector<32x128xf32> to vector<32x1xf32>
    %c2 = arith.constant 2 : index
    %c0_30 = arith.constant 0 : index
    %128 = vector.load %arg9[%c2, %c0_30] : memref<3x256xf32, #tpu.memory_space<vmem>>, vector<1x256xf32>
    %129 = vector.broadcast %127 : vector<32x1xf32> to vector<32x256xf32>
    %130 = vector.broadcast %128 : vector<1x256xf32> to vector<32x256xf32>
    %131 = arith.mulf %129, %130 : vector<32x256xf32>
    %132 = arith.addf %126, %131 : vector<32x256xf32>
    %133 = vector.extract_strided_slice %132 {offsets = [0, 0], sizes = [32, 128], strides = [1, 1]} : vector<32x256xf32> to vector<32x128xf32>
    %134 = math.tanh %133 : vector<32x128xf32>
    %135 = vector.extract_strided_slice %132 {offsets = [0, 128], sizes = [32, 128], strides = [1, 1]} : vector<32x256xf32> to vector<32x128xf32>
    %cst_31 = arith.constant 0.000000e+00 : f32
    %136 = vector.broadcast %cst_31 : f32 to vector<32x128xf32>
    %137 = arith.maximumf %135, %136 : vector<32x128xf32>
    %138 = arith.truncf %134 : vector<32x128xf32> to vector<32x128xbf16>
    %c0_32 = arith.constant 0 : index
    %c0_33 = arith.constant 0 : index
    %139 = vector.load %arg11[%c0_32, %c0_33] : memref<128x128xbf16, #tpu.memory_space<vmem>>, vector<128x128xbf16>
    %cst_34 = arith.constant dense<0.000000e+00> : vector<32x128xf32>
    %140 = tpu.matmul %138, %139, %cst_34 {dimension_numbers = #tpu.dot_dimension_numbers<[1], [0], [0], [1], [0, 0, 1, 1], [], []>} : vector<32x128xbf16>, vector<128x128xbf16>, vector<32x128xf32> -> vector<32x128xf32>
    %c0_35 = arith.constant 0 : index
    %c0_36 = arith.constant 0 : index
    %141 = vector.load %arg12[%c0_35, %c0_36] : memref<1x128xf32, #tpu.memory_space<vmem>>, vector<1x128xf32>
    %142 = vector.broadcast %141 : vector<1x128xf32> to vector<32x128xf32>
    %143 = arith.addf %140, %142 : vector<32x128xf32>
    %144 = math.tanh %143 : vector<32x128xf32>
    %145 = arith.mulf %112, %144 : vector<32x128xf32>
    %146 = tpu.concatenate %145, %137 in 1 : vector<32x128xf32>, vector<32x128xf32> -> vector<32x256xf32>
    %147 = arith.truncf %146 : vector<32x256xf32> to vector<32x256xbf16>
    %c0_37 = arith.constant 0 : index
    %c0_38 = arith.constant 0 : index
    %148 = vector.load %arg13[%c0_37, %c0_38] : memref<256x128xbf16, #tpu.memory_space<vmem>>, vector<256x128xbf16>
    %cst_39 = arith.constant dense<0.000000e+00> : vector<32x128xf32>
    %149 = tpu.matmul %147, %148, %cst_39 {dimension_numbers = #tpu.dot_dimension_numbers<[1], [0], [0], [1], [0, 0, 1, 1], [], []>} : vector<32x256xbf16>, vector<256x128xbf16>, vector<32x128xf32> -> vector<32x128xf32>
    %c0_40 = arith.constant 0 : index
    %c0_41 = arith.constant 0 : index
    %150 = vector.load %arg14[%c0_40, %c0_41] : memref<1x128xf32, #tpu.memory_space<vmem>>, vector<1x128xf32>
    %151 = vector.broadcast %150 : vector<1x128xf32> to vector<32x128xf32>
    %152 = arith.addf %149, %151 : vector<32x128xf32>
    %153 = tpu.iota {dimensions = array<i32: 1>} : vector<32x128xi32>
    %c8_i32 = arith.constant 8 : i32
    %154 = vector.broadcast %c8_i32 : i32 to vector<32x128xi32>
    %155 = arith.cmpi slt, %153, %154 : vector<32x128xi32>
    %cst_42 = arith.constant 0.000000e+00 : f32
    %156 = vector.broadcast %cst_42 : f32 to vector<32x128xf32>
    %157 = arith.select %155, %0, %156 : vector<32x128xi1>, vector<32x128xf32>
    %158 = arith.addf %157, %152 : vector<32x128xf32>
    %c3_i32 = arith.constant 3 : i32
    %159 = vector.broadcast %c3_i32 : i32 to vector<32x128xi32>
    %160 = arith.cmpi sge, %153, %159 : vector<32x128xi32>
    %c7_i32 = arith.constant 7 : i32
    %161 = vector.broadcast %c7_i32 : i32 to vector<32x128xi32>
    %162 = arith.cmpi slt, %153, %161 : vector<32x128xi32>
    %163 = arith.andi %160, %162 : vector<32x128xi1>
    %164 = arith.mulf %158, %158 : vector<32x128xf32>
    %cst_43 = arith.constant 0.000000e+00 : f32
    %165 = vector.broadcast %cst_43 : f32 to vector<32x128xf32>
    %166 = arith.select %163, %164, %165 : vector<32x128xi1>, vector<32x128xf32>
    %cst_44 = arith.constant dense<0.000000e+00> : vector<32xf32>
    %167 = vector.multi_reduction <add>, %166, %cst_44 [1] : vector<32x128xf32> to vector<32xf32>
    %168 = vector.shape_cast %167 : vector<32xf32> to vector<32x1xf32>
    %169 = math.sqrt %168 : vector<32x1xf32>
    %cst_45 = arith.constant 9.99999993E-9 : f32
    %170 = vector.broadcast %cst_45 : f32 to vector<32x1xf32>
    %171 = arith.addf %169, %170 : vector<32x1xf32>
    %172 = tpu.reciprocal %171 {approx = true} : vector<32x1xf32> -> vector<32x1xf32>
    %173 = vector.broadcast %172 : vector<32x1xf32> to vector<32x128xf32>
    %174 = arith.mulf %158, %173 : vector<32x128xf32>
    %175 = arith.select %163, %174, %158 : vector<32x128xi1>, vector<32x128xf32>
    %c0_46 = arith.constant 0 : index
    %c0_47 = arith.constant 0 : index
    %176 = vector.load %arg15[%c0_46, %c0_47] : memref<32x128xf32, #tpu.memory_space<vmem>>, vector<32x128xf32>
    tpu.vector_store %arg15[%c0_46, %c0_47], %175 {strides = array<i32>} : memref<32x128xf32, #tpu.memory_space<vmem>>, vector<32x128xf32>,
    return
  }
  func.func @transform_0(%arg0: i32) -> (i32, i32) {
    %c0_i32 = arith.constant 0 : i32
    %c0_i32_0 = arith.constant 0 : i32
    return %arg0, %c0_i32 : i32, i32
  }
  func.func @transform_1(%arg0: i32) -> (i32, i32) {
    %c0_i32 = arith.constant 0 : i32
    %c0_i32_0 = arith.constant 0 : i32
    %c0_i32_1 = arith.constant 0 : i32
    return %c0_i32, %c0_i32_0 : i32, i32
  }
  func.func @transform_2(%arg0: i32) -> (i32, i32) {
    %c0_i32 = arith.constant 0 : i32
    %c0_i32_0 = arith.constant 0 : i32
    %c0_i32_1 = arith.constant 0 : i32
    return %c0_i32, %c0_i32_0 : i32, i32
  }
  func.func @transform_3(%arg0: i32) -> (i32, i32) {
    %c0_i32 = arith.constant 0 : i32
    %c0_i32_0 = arith.constant 0 : i32
    %c0_i32_1 = arith.constant 0 : i32
    return %c0_i32, %c0_i32_0 : i32, i32
  }
  func.func @transform_4(%arg0: i32) -> (i32, i32) {
    %c0_i32 = arith.constant 0 : i32
    %c0_i32_0 = arith.constant 0 : i32
    %c0_i32_1 = arith.constant 0 : i32
    return %c0_i32, %c0_i32_0 : i32, i32
  }
  func.func @transform_5(%arg0: i32) -> (i32, i32) {
    %c0_i32 = arith.constant 0 : i32
    %c0_i32_0 = arith.constant 0 : i32
    %c0_i32_1 = arith.constant 0 : i32
    return %c0_i32, %c0_i32_0 : i32, i32
  }
  func.func @transform_6(%arg0: i32) -> (i32, i32) {
    %c0_i32 = arith.constant 0 : i32
    %c0_i32_0 = arith.constant 0 : i32
    %c0_i32_1 = arith.constant 0 : i32
    return %c0_i32, %c0_i32_0 : i32, i32
  }
  func.func @transform_7(%arg0: i32) -> (i32, i32) {
    %c0_i32 = arith.constant 0 : i32
    %c0_i32_0 = arith.constant 0 : i32
    %c0_i32_1 = arith.constant 0 : i32
    return %c0_i32, %c0_i32_0 : i32, i32
  }
  func.func @transform_8(%arg0: i32) -> (i32, i32) {
    %c0_i32 = arith.constant 0 : i32
    %c0_i32_0 = arith.constant 0 : i32
    %c0_i32_1 = arith.constant 0 : i32
    return %c0_i32, %c0_i32_0 : i32, i32
  }
  func.func @transform_9(%arg0: i32) -> (i32, i32) {
    %c0_i32 = arith.constant 0 : i32
    %c0_i32_0 = arith.constant 0 : i32
    %c0_i32_1 = arith.constant 0 : i32
    return %c0_i32, %c0_i32_0 : i32, i32
  }
  func.func @transform_10(%arg0: i32) -> (i32, i32) {
    %c0_i32 = arith.constant 0 : i32
    %c0_i32_0 = arith.constant 0 : i32
    %c0_i32_1 = arith.constant 0 : i32
    return %c0_i32, %c0_i32_0 : i32, i32
  }
  func.func @transform_11(%arg0: i32) -> (i32, i32) {
    %c0_i32 = arith.constant 0 : i32
    %c0_i32_0 = arith.constant 0 : i32
    %c0_i32_1 = arith.constant 0 : i32
    return %c0_i32, %c0_i32_0 : i32, i32
  }
  func.func @transform_12(%arg0: i32) -> (i32, i32) {
    %c0_i32 = arith.constant 0 : i32
    %c0_i32_0 = arith.constant 0 : i32
    %c0_i32_1 = arith.constant 0 : i32
    return %c0_i32, %c0_i32_0 : i32, i32
  }
  func.func @transform_13(%arg0: i32) -> (i32, i32) {
    %c0_i32 = arith.constant 0 : i32
    %c0_i32_0 = arith.constant 0 : i32
    %c0_i32_1 = arith.constant 0 : i32
    return %c0_i32, %c0_i32_0 : i32, i32
  }
  func.func @transform_14(%arg0: i32) -> (i32, i32) {
    %c0_i32 = arith.constant 0 : i32
    %c0_i32_0 = arith.constant 0 : i32
    return %arg0, %c0_i32 : i32, i32
  }
}

</mosaic_0001>

<bundles_post_ra>
// kernel: tpu_custom_call.1
= control target key start
LH: loop header
LB: loop body
LE: loop exit
PB: predicated region body
PF: predicated region fallthrough
CT: control target
= control target key end

     0   :  { %s4922_s0 = inlined_call_operand.hbm [shape: f32[64,128], index: 0, kind: input, shape index: {}]   ;;  %s4923_s1 = inlined_call_operand.hbm [shape: f32[3,32], index: 1, kind: input, shape index: {}]   ;;  %s4924_s2 = inlined_call_operand.hbm [shape: bf16[32,3072], index: 2, kind: input, shape index: {}]   ;;  %s4925_s3 = inlined_call_operand.vmem [shape: f32[1,256], index: 3, kind: input, shape index: {}]   ;;  %s4926_s4 = inlined_call_operand.hbm [shape: bf16[256,128], index: 4, kind: input, shape index: {}]   ;;  %s4927_s5 = inlined_call_operand.hbm [shape: f32[1,128], index: 5, kind: input, shape index: {}]   ;;  %s4928_s6 = inlined_call_operand.hbm [shape: bf16[128,128], index: 6, kind: input, shape index: {}]   ;;  %s4929_s7 = inlined_call_operand.vmem [shape: f32[1,128], index: 7, kind: input, shape index: {}]   ;;  %s4930_s8 = inlined_call_operand.hbm [shape: f32[3,256], index: 8, kind: input, shape index: {}]   ;;  %s4931_s9 = inlined_call_operand.vmem [shape: f32[1,256], index: 9, kind: input, shape index: {}]   ;;  %s4932_s10 = inlined_call_operand.hbm [shape: bf16[128,128], index: 10, kind: input, shape index: {}]   ;;  %s4933_s11 = inlined_call_operand.vmem [shape: f32[1,128], index: 11, kind: input, shape index: {}]   ;;  %s4934_s12 = inlined_call_operand.hbm [shape: bf16[256,128], index: 12, kind: input, shape index: {}]   ;;  %s4935_s13 = inlined_call_operand.vmem [shape: f32[1,128], index: 13, kind: input, shape index: {}]   ;;  %s4936_s14 = inlined_call_operand.hbm [shape: f32[64,128], index: 14, kind: output, shape index: {}]  }
   0x1   :  { %4938 = sst [smem:[#allocation25_spill]] %s4923_s1 }
   0x2   :  { %4939 = sst [smem:[#allocation26_spill]] %s4924_s2 }
   0x3   :  { %4940 = sst [smem:[#allocation27_spill]] %s4926_s4 }
   0x4   :  { %4941 = sst [smem:[#allocation28_spill]] %s4927_s5 }
   0x5   :  { %4942 = sst [smem:[#allocation29_spill]] %s4928_s6 }
   0x6   :  { %4943 = sst [smem:[#allocation30_spill]] %s4930_s8 }
   0x7   :  { %4944 = sst [smem:[#allocation31_spill]] %s4932_s10 }
   0x8   :  { %4945 = sst [smem:[#allocation32_spill]] %s4935_s13 }
   0x9   :  { %4946 = sst [smem:[#allocation33_spill]] %s4936_s14 }
   0xa   :  { %19 = vsyncpa [#allocation3], 0 }
   0xb   :  { %21 = vsyncpa [#allocation3 + $0x1], 0 }
   0xc   :  { %22 = vsyncpa [#allocation6], 0 }
   0xd   :  { %23 = vsyncpa [#allocation9], 0 }
   0xe   :  { %24 = vsyncpa [#allocation12], 0 }
   0xf   :  { %25 = vsyncpa [#allocation15], 0 }
  0x10   :  { %26 = vsyncpa [#allocation4], 0 }
  0x11   :  { %28 = vsyncpa [#allocation4 + $0x1], 0  ;;  %s4032_s29 = smov 0   ;;  %s4034_s30 = smov 0  }
  0x12   :  { %s4036_s15 = smov 0   ;;  %s4038_s16 = smov 0  }
  0x13 LB: > { %s4947_s1 = sld [smem:[#allocation25_spill]]  ;;  %s4056_s20 = sadd.s32 4294967295, %s3927_s16   ;;  %s3927_s16 = sphi %s4038_s16, %s4971_s16   ;;  %s3923_s15 = sphi %s4036_s15, %s4970_s15   ;;  %s3919_s30 = sphi %s4034_s30, %s4969_s30   ;;  %s3915_s29 = sphi %s4032_s29, %s4968_s29  }
  0x14   : > { %p2760_p0 = scmp.ge.s32.totalorder %s3927_s16, 1  ;;  %p55_p1 = scmp.eq.s32.totalorder %s4056_s20, 0 }
  0x15   : > { %p364_p2 = scmp.lt.s32.totalorder %s3927_s16, 3  ;;  %s3929_s22 = smov [#allocation5]  }
  0x16   : > { %s378_s23 = sshll.u32 %s3929_s22, 4  ;;  %s4949_s4 = sld [smem:[#allocation27_spill]]  ;;  %s379_s23 = int_to_ptr.vmem [resolvable:$true] %s378_s23 }
  0x17   : > { %p4061_p3 = pnand %p2760_p0, %p364_p2  ;;  %s3930_s28 = smov [#allocation8]  }
  0x18   : > { %s406_s17 = sshll.u32 %s3930_s28, 4  ;;  %s3931_s18 = smov 64   ;;  %s407_s17 = int_to_ptr.vmem [resolvable:$true] %s406_s17 }
  0x19   : > { %s376_s19 = sshll.u32 %s4947_s1, 4  ;;  %p3359_p5 = pneg %p4061_p3  ;;  %s377_s19 = int_to_ptr.hbm [resolvable:$true] %s376_s19 }
  0x1a   : > { %s3932_s22 = smov 4   ;;  %s4951_s6 = sld [smem:[#allocation29_spill]] }
  0x1b   : > { %p4073_p6 = pnand %p3359_p5, %p55_p1  ;;  %s4952_s10 = sld [smem:[#allocation31_spill]] }
  0x1c   : > { %s404_s26 = sshll.u32 %s4949_s4, 4  ;;  %s3933_s4 = smov [#allocation11]   ;;  %s405_s26 = int_to_ptr.hbm [resolvable:$true] %s404_s26 }
  0x1d   : > { %3362 = dma.hbm_to_vmem [thread:$0]  (!%p4073_p6), %s377_s19, 64, %s379_s23, [#allocation6]  }
  0x1e   : > { %3368 = dma.hbm_to_vmem [thread:$0]  (!%p4073_p6), %s405_s26, 2048, %s407_s17, [#allocation9], %s3931_s18, %s3931_s18, %s3932_s22  }
  0x1f   : > { %s432_s14 = sshll.u32 %s3933_s4, 4  ;;  %s3934_s23 = smov [#allocation14]   ;;  %s433_s14 = int_to_ptr.vmem [resolvable:$true] %s432_s14 }
  0x20   : > { %s430_s1 = sshll.u32 %s4951_s6, 4  ;;  %s464_s26 = sshll.u32 %s3934_s23, 4  ;;  %s431_s1 = int_to_ptr.hbm [resolvable:$true] %s430_s1  ;;  %s465_s26 = int_to_ptr.vmem [resolvable:$true] %s464_s26 }
  0x21   : > { %s462_s19 = sshll.u32 %s4952_s10, 4  ;;  %s4953_s2 = sld [smem:[#allocation26_spill]]  ;;  %s463_s19 = int_to_ptr.hbm [resolvable:$true] %s462_s19 }
  0x22   : > { %3374 = dma.hbm_to_vmem [thread:$0]  (!%p4073_p6), %s431_s1, 1024, %s433_s14, [#allocation12], %s3931_s18, %s3931_s18, %s3932_s22  }
  0x23   : > { %3380 = dma.hbm_to_vmem [thread:$0]  (!%p4073_p6), %s463_s19, 1024, %s465_s26, [#allocation15], %s3931_s18, %s3931_s18, %s3932_s22  }
  0x24   : > { %s3935_s4 = smov [#allocation7]   ;;  %s4954_s5 = sld [smem:[#allocation28_spill]] }
  0x25   : > { %s389_s13 = sshll.u32 %s3935_s4, 4  ;;  %s3936_s23 = smov 1536   ;;  %s390_s13 = int_to_ptr.vmem [resolvable:$true] %s389_s13 }
  0x26   : > { %s3937_s6 = smov 96   ;;  %s3938_s17 = smov [#allocation10]  }
  0x27   : > { %s387_s25 = sshll.u32 %s4953_s2, 4  ;;  %s421_s24 = sshll.u32 %s3938_s17, 4  ;;  %s388_s25 = int_to_ptr.hbm [resolvable:$true] %s387_s25  ;;  %s422_s24 = int_to_ptr.vmem [resolvable:$true] %s421_s24 }
  0x28   : > { %3365 = dma.hbm_to_vmem [thread:$0]  (!%p4073_p6), %s388_s25, 6144, %s390_s13, [#allocation6], %s3936_s23, %s3936_s23, %s3937_s6  }
  0x29   : > { %s4955_s8 = sld [smem:[#allocation30_spill]]  ;;  %s479_s6 = sshll.u32 %s4934_s12, 4  ;;  %s480_s6 = int_to_ptr.hbm [resolvable:$true] %s479_s6 }
  0x2a   : > { %s419_s14 = sshll.u32 %s4954_s5, 4  ;;  %s3939_s25 = smov [#allocation13]   ;;  %s420_s14 = int_to_ptr.hbm [resolvable:$true] %s419_s14 }
  0x2b   : > { %3371 = dma.hbm_to_vmem [thread:$0]  (!%p4073_p6), %s420_s14, 16, %s422_s24, [#allocation9]  }
  0x2c   : > { %s450_s13 = sshll.u32 %s3939_s25, 4  ;;  %s3940_s2 = smov [#allocation16]   ;;  %s451_s13 = int_to_ptr.vmem [resolvable:$true] %s450_s13 }
  0x2d   : > { %s481_s10 = sshll.u32 %s3940_s2, 4  ;;  %s2759_s28 = sadd.s32 4294967294, %s3927_s16   ;;  %s482_s10 = int_to_ptr.vmem [resolvable:$true] %s481_s10 }
  0x2e   : > { %3383 = dma.hbm_to_vmem [thread:$0]  (!%p4073_p6), %s480_s6, 2048, %s482_s10, [#allocation15], %s3931_s18, %s3931_s18, %s3932_s22  }
  0x2f   : > { %s448_s19 = sshll.u32 %s4955_s8, 4  ;;  %s4125_s1 = sadd.s32 1, %s3927_s16   ;;  %s449_s19 = int_to_ptr.hbm [resolvable:$true] %s448_s19 }
  0x30   : > { %3377 = dma.hbm_to_vmem [thread:$0]  (!%p4073_p6), %s449_s19, 128, %s451_s13, [#allocation12]  }
  0x31   : > { %s38_s14 = ssub.s32 %s3927_s16, %s4125_s1  ;;  %s41_s23 = sadd.s32 1, %s3923_s15 }
  0x32   : > { %p39_p7 = scmp.eq.s32.totalorder %s38_s14, 0  ;;  %p48_p8 = scmp.ne.s32.totalorder %s3923_s15, %s3919_s30 }
  0x33   : > { %p49_p9 = scmp.eq.s32.totalorder %s3927_s16, 0  ;;  %p54_p10 = scmp.ne.s32.totalorder %s3919_s30, %s3915_s29 }
  0x34   : > { %s4136_s17 = scalar_select %p39_p7, %s3923_s15, %s41_s23  }
  0x35   : > { %p4138_p11 = por %p49_p9, %p48_p8  ;;  %p4144_p12 = por %p55_p1, %p54_p10 }
  0x36   : > { %p351_p13 = scmp.eq.s32.totalorder %s4056_s20, 1  ;;  %p357_p0 = scmp.eq.s32.totalorder %s2759_s28, 1 }
  0x37   : > { %p3400_p2 = scmp.lt.s32.totalorder %s3927_s16, 2  ;;  %s498_s22 = sand.u32 1, %s3923_s15  }
  0x38   : > { %p4151_p5 = por %p351_p13, %p48_p8  ;;  %p4155_p6 = por %p357_p0, %p54_p10 }
  0x39   : > { %s2770_s26 = sshll.u32 %s498_s22, 5  ;;  %s3221_s4 = sshll.u32 %s3927_s16, 5 }
  0x3a   : > { %s507_s13 = scalar_lea.hbm %s4922_s0, %s3221_s4  ;;  %s502_s2 = scalar_lea.vmem [#allocation2], %s2770_s26 }
  0x3b   : > { %s510_s10 = sshll.u32 %s502_s2, 4  ;;  %s508_s14 = sshll.u32 %s507_s13, 4  ;;  %s511_s10 = int_to_ptr.vmem [resolvable:$true] %s510_s10  ;;  %s509_s14 = int_to_ptr.hbm [resolvable:$true] %s508_s14 }
  0x3c   : > { %p4165_p7 = pnand %p3400_p2, %p4138_p11  ;;  %s499_s23 = scalar_lea.sflag [#allocation3], %s498_s22 }
  0x3d   : > { %s3815_s5 = sshra.s32 %s509_s14, 4  ;;  %s3822_s6 = scalar_lea.hbm %s4922_s0, 64  ;;  %s3816_s5 = int_to_ptr.hbm [resolvable:$true] %s3815_s5 }
  0x3e   : > { %s3817_s8 = scalar_lea.hbm %s3816_s5, 32  ;;  %p3819_p9 = pneg %p4165_p7 }
  0x3f   : > { %p3818_p8 = scmp.ne.s32.totalorder %s3816_s5, %s3817_s8  ;;  %p3823_p11 = scmp.lt.s32.totalorder %s3816_s5, %s4922_s0 }
  0x40   : > { %p3824_p0 = scmp.lt.s32.totalorder %s3822_s6, %s3817_s8 }
  0x41   : > { %p3820_p10 = pnand %p3819_p9, %p3818_p8 }
  0x42   : > { %p3825_p2 = por %p3824_p0, %p3823_p11 }
  0x43   : > { %p3821_p13 = pneg %p3820_p10 }
  0x45   : > { %p3826_p4 = pnand %p3825_p2, %p3821_p13 }
  0x47   : > { %3829 = shalt.err (!%p3826_p4)
}
  0x48   : > { %s3941_s22 = smov 128   ;;  %s3942_s13 = smov 8  }
  0x49   : > { %3387 = dma.hbm_to_vmem [thread:$0]  (!%p4165_p7), %s509_s14, 512, %s511_s10, %s499_s23, %s3941_s22, %s3941_s22, %s3942_s13  }
  0x4a   : > { %522 = sbr.rel (%p4061_p3) target bundleno = 1187 (0x4a3), region = 76 }
  0x4f   : > { %s4182_s2 = sand.u32 1, %s3919_s30  }
  0x50   : > { %s2774_s5 = sshll.u32 %s4182_s2, 5  ;;  %s525_s8 = scalar_lea.sflag [#allocation3], %s4182_s2 }
  0x51   : > { %s4188_s26 = scalar_lea.vmem [#allocation2], %s2774_s5 }
  0x52   : > { %3890 = dma.done.wait (%p4144_p12), %s525_s8, 512  }
  0x53   : > { %3892 = vsyncadd (%p4144_p12), %s525_s8, 4294966784 }
  0x54   : > { %3894 = dma.done.wait (%p55_p1), [#allocation6], 6208  }
  0x55   : > { %3896 = vsyncadd (%p55_p1), [#allocation6], 4294961088 }
  0x56   : > { %3898 = dma.done.wait (%p55_p1), [#allocation9], 2064  }
  0x57   : > { %3900 = vsyncadd (%p55_p1), [#allocation9], 4294965232 }
  0x58   : > { %3902 = dma.done.wait (%p55_p1), [#allocation12], 1152  }
  0x59   : > { %3904 = vsyncadd (%p55_p1), [#allocation12], 4294966144 }
  0x5a   : > { %3906 = dma.done.wait (%p55_p1), [#allocation15], 3072  }
  0x5b   : > { %3908 = vsyncadd (%p55_p1), [#allocation15], 4294964224  ;;  %v3943_v0 = vmov 1   ;;  %v3944_v1 = vmov 0   ;;  %v3945_v2 = vmov 2   ;;  %v4211_v3 = vld [vmem:[%s4188_s26 + $0x10] sm:$0xff] }
  0x5c   : > { %3471 = vset.pattern.permute.xlu1 %v3943_v0  ;;  %3470 = vset.pattern.permute.xlu0 %v3944_v1  ;;  %v4217_v4 = vld [vmem:[%s4188_s26 + $0x18] sm:$0xff]  ;;  %v4223_v5 = vld [vmem:[%s4188_s26] sm:$0xff]  ;;  %v4226_v6 = vld [vmem:[%s4188_s26 + $0x8] sm:$0xff]  ;;  %vm871_vm4 = vcmask 261120   ;;  %s4963_s8 = sld [smem:[#allocation32_spill]] }
  0x5d   : > { %3472 = vset.pattern.permute.xlu2 %v3945_v2  ;;  %665 = vperm.xlu1 %3471, %v4211_v3   ;;  %v621_v7 = vld [vmem:[#allocation5] sm:$0x7]  ;;  %v2144_v10 = vld [vmem:[#allocation13] ss:$4 sm:$0x3]  ;;  %s4966_s10 = sld [smem:[#allocation33_spill]] }
  0x5e   : > { %635 = vperm.xlu0 %3470, %v4211_v3   ;;  %694 = vperm.xlu2 %3472, %v4211_v3   ;;  %v4236_v9 = vperm.slane %v621_v7, 2  ;;  %v2172_v11 = vld [vmem:[#allocation13 + $0x1] ss:$4 sm:$0x3]  ;;  %v4238_v12 = vperm.slane %v621_v7, 1  ;;  %v4240_v13 = vperm.slane %v621_v7, 0 }
  0x5f   : > { %v2143_v14 = vld [vmem:[%s4931_s9] sm:$0x3]  ;;  %v4245_v15 = vperm.slane %v2144_v10, 1  ;;  %v4249_v17 = vperm.slane %v2172_v11, 1  ;;  %v2818_v42 = vld [vmem:[#allocation7 + $0xc0] sm:$0xf] }
  0x60   : > { %v4259_v22 = vperm.slane %v2143_v14, 1  ;;  %v3234_v43 = vld [vmem:[#allocation7 + $0x11c] sm:$0xf0]  ;;  %v3230_v44 = vld [vmem:[#allocation7 + $0xc4] sm:$0xf] }
  0x61   : > { %v2819_v46 = vor.u32 %v3234_v43, %v2818_v42  ;;  %v2820_v47 = vld [vmem:[#allocation7 + $0x120] sm:$0xf0]  ;;  %v2786_v58 = vld [vmem:[#allocation7] sm:$0xf] }
  0x62   : > { %v2823_v51 = vor.u32 %v3230_v44, %v2820_v47  ;;  %v2195_v53 = vld [vmem:[#allocation13 + $0x2] ss:$4 sm:$0x3]  ;;  %v3226_v59 = vld [vmem:[#allocation7 + $0x5c] sm:$0xf0] }
  0x63   : > { %3319 = vmatpush.bf16.msra.mxu2 %v2819_v46  ;;  %884 = vmatpush.bf16.msra.mxu0 %v2819_v46  ;;  %v2787_v63 = vor.u32 %v3226_v59, %v2786_v58  ;;  %v2788_v7 = vld [vmem:[#allocation7 + $0x60] sm:$0xf0]  ;;  %v2198_v11 = vperm.slane %v2195_v53, 1  ;;  %s3865_s22 = scalar_lea.hbm %s4966_s10, 64 }
  0x64   : > { %3321 = vmatpush.bf16.msra.mxu3 %v2823_v51  ;;  %903 = vmatpush.bf16.msra.mxu1 %v2823_v51 }
  0x65   : > { %669 = vperm.xlu1 %3471, %v4217_v4  }
  0x66   : > { %640 = vperm.xlu0 %3470, %v4217_v4   ;;  %698 = vperm.xlu2 %3472, %v4217_v4  }
  0x67   : > { %3320 = vmatpush.bf16.msra.mxu2 %v2787_v63  ;;  %885 = vmatpush.bf16.msra.mxu0 %v2787_v63 }
  0x6d   : > { %3473 = vset.pattern.permute.xlu1 %v3944_v1 }
  0x6e   : > { %625 = vperm.xlu0 %3470, %v4223_v5   ;;  %630 = vperm.xlu1 %3473, %v4226_v6  }
  0x6f   : > { %3474 = vset.pattern.permute.xlu2 %v3943_v0 }
  0x70   : > { %657 = vperm.xlu2 %3474, %v4223_v5  }
  0x76   : > { %3475 = vset.pattern.permute.xlu0 %v3943_v0  ;;  %3476 = vset.pattern.permute.xlu1 %v3945_v2 }
  0x77   : > { %661 = vperm.xlu0 %3475, %v4226_v6   ;;  %686 = vperm.xlu1 %3476, %v4223_v5  }
  0x78   : > { %3477 = vset.pattern.permute.xlu2 %v3945_v2  ;;  %v3222_v2 = vld [vmem:[#allocation7 + $0x4] sm:$0xf] }
  0x79   : > { %690 = vperm.xlu2 %3477, %v4226_v6  }
  0xb8   : > { %v4234_v8 = vpop.permute.xlu2 %694 }
  0xb9   : > { %v703_v16 = vsub.f32 %v4236_v9, %v4234_v8 }
  0xbb   : > { %v707_v25 = vmul.f32 %v703_v16, %v703_v16 }
  0xc0   : > { %v4263_v24 = vpop.permute.xlu2 %698 }
  0xc1   : > { %v704_v35 = vsub.f32 %v4236_v9, %v4263_v24 }
  0xc3   : > { %v708_v49 = vmul.f32 %v704_v35, %v704_v35 }
  0xca   : > { %v4283_v38 = vpop.permute.xlu2 %657 }
  0xcb   : > { %v2179_v60 = vmul.f32 %v4249_v17, %v4283_v38  ;;  %v672_v16 = vsub.f32 %v4238_v12, %v4283_v38 }
  0xcf   : > { %v4251_v18 = vpop.permute.xlu1 %665 }
  0xd0   : > { %v4253_v19 = vpop.permute.xlu0 %635  ;;  %v674_v20 = vsub.f32 %v4238_v12, %v4251_v18  ;;  %v2183_v27 = vmul.f32 %v4249_v17, %v4251_v18 }
  0xd1   : > { %v645_v21 = vsub.f32 %v4240_v13, %v4253_v19  ;;  %v2155_v23 = vmul.f32 %v4245_v15, %v4253_v19 }
  0xd2   : > { %v678_v26 = vmul.f32 %v674_v20, %v674_v20 }
  0xd3   : > { %v649_v28 = vmul.f32 %v645_v21, %v645_v21  ;;  %v2168_v30 = vadd.f32 %v4259_v22, %v2155_v23  ;;  %v4302_v1 = vpop.permute.xlu2 %690 }
  0xd5   : > { %v682_v29 = vadd.f32 %v678_v26, %v649_v28  ;;  %v4270_v32 = vadd.f32 %v2183_v27, %v2168_v30  ;;  %v2791_v26 = vor.u32 %v3222_v2, %v2788_v7 }
  0xd7   : > { %v4268_v31 = vadd.f32 %v707_v25, %v682_v29  ;;  %v4272_v33 = vpop.permute.xlu1 %669  ;;  %v702_v25 = vsub.f32 %v4236_v9, %v4302_v1  ;;  %3322 = vmatpush.bf16.msra.mxu3 %v2791_v26  ;;  %904 = vmatpush.bf16.msra.mxu1 %v2791_v26  ;;  %v2206_v29 = vmul.f32 %v2198_v11, %v4234_v8 }
  0xd8   : > { %v4274_v34 = vpop.permute.xlu0 %640  ;;  %v675_v36 = vsub.f32 %v4238_v12, %v4272_v33  ;;  %v2185_v45 = vmul.f32 %v4249_v17, %v4272_v33 }
  0xd9   : > { %3519 = vrsqrt.f32 %v4268_v31  ;;  %v646_v37 = vsub.f32 %v4240_v13, %v4274_v34  ;;  %v2157_v39 = vmul.f32 %v4245_v15, %v4274_v34  ;;  %v706_v42 = vmul.f32 %v702_v25, %v702_v25  ;;  %v3227_v25 = vld [vmem:[#allocation7 + $0x64] sm:$0xf0] }
  0xda   : > { %v679_v40 = vmul.f32 %v675_v36, %v675_v36  ;;  %v676_v36 = vmul.f32 %v672_v16, %v672_v16  ;;  %vm744_vm0 = vcmp.eq.f32.partialorder %v4268_v31, inf  ;;  %v747_v46 = vand.u32 2147483648, %v4268_v31 }
  0xdb   : > { %v650_v41 = vmul.f32 %v646_v37, %v646_v37  ;;  %v2170_v48 = vadd.f32 %v4259_v22, %v2157_v39  ;;  %v2208_v37 = vmul.f32 %v2198_v11, %v4263_v24  ;;  %vm746_vm1 = vcmp.eq.f32.partialorder %v4268_v31, 0.0 }
  0xdd   : > { %v683_v50 = vadd.f32 %v679_v40, %v650_v41  ;;  %v2193_v54 = vadd.f32 %v2185_v45, %v2170_v48 }
  0xdf   : > { %v3520_v52 = vpop.eup %3519  ;;  %v4291_v56 = vadd.f32 %v708_v49, %v683_v50  ;;  %v2216_v59 = vadd.f32 %v2208_v37, %v2193_v54  ;;  %v3231_v54 = vld [vmem:[#allocation7 + $0xcc] sm:$0xf] }
  0xe0   : > { %v738_v55 = vmul.f32 %v3520_v52, %v4268_v31  ;;  %v4293_v57 = vpop.permute.xlu0 %625  ;;  %v4299_v62 = vpop.permute.xlu1 %630 }
  0xe1   : > { %v2151_v61 = vmul.f32 %v4245_v15, %v4293_v57  ;;  %3521 = vrsqrt.f32 %v4291_v56  ;;  %v2153_v20 = vmul.f32 %v4245_v15, %v4299_v62  ;;  %v643_v21 = vsub.f32 %v4240_v13, %v4293_v57 }
  0xe2   : > { %v739_v0 = vmul.f32 %v3520_v52, %v738_v55  ;;  %v644_v15 = vsub.f32 %v4240_v13, %v4299_v62  ;;  %vm756_vm2 = vcmp.eq.f32.partialorder %v4291_v56, inf  ;;  %vm758_vm3 = vcmp.eq.f32.partialorder %v4291_v56, 0.0 }
  0xe3   : > { %v2164_v10 = vadd.f32 %v4259_v22, %v2151_v61  ;;  %v2166_v28 = vadd.f32 %v4259_v22, %v2153_v20  ;;  %v647_v40 = vmul.f32 %v643_v21, %v643_v21  ;;  %v2204_v22 = vmul.f32 %v2198_v11, %v4302_v1  ;;  %v2828_v20 = vld [vmem:[#allocation7 + $0x128] sm:$0xf0] }
  0xe4   : > { %v740_v14 = vmul.f32 0.5, %v739_v0  ;;  %v648_v51 = vmul.f32 %v644_v15, %v644_v15  ;;  %v2214_v61 = vadd.f32 %v2206_v29, %v4270_v32 }
  0xe5   : > { %v2187_v23 = vadd.f32 %v2179_v60, %v2164_v10  ;;  %v2826_v10 = vld [vmem:[#allocation7 + $0xc8] sm:$0xf] }
  0xe6   : > { %v741_v27 = vsub.f32 1.5, %v740_v14  ;;  %v2223_v29 = vmax.f32 %v2214_v61, 0.0  ;;  %v2804_v61 = vld [vmem:[#allocation7 + $0x70] sm:$0xf0] }
  0xe7   : > { %v3522_v30 = vpop.eup %3521 }
  0xe8   : > { %v742_v35 = vmul.f32 %v3520_v52, %v741_v27  ;;  %v750_v39 = vmul.f32 %v3522_v30, %v4291_v56  ;;  %v3223_v27 = vld [vmem:[#allocation7 + $0xc] sm:$0xf] }
  0xe9   : > { %v4319_v41 = vpop.permute.xlu0 %661  ;;  %v4328_v45 = vpop.permute.xlu1 %686 }
  0xea   : > { %v743_v43 = vmul.f32 %v742_v35, %v4268_v31  ;;  %v673_v44 = vsub.f32 %v4238_v12, %v4319_v41  ;;  %v2181_v13 = vmul.f32 %v4249_v17, %v4319_v41  ;;  %v751_v47 = vmul.f32 %v3522_v30, %v750_v39 }
  0xeb   : > { %v701_v48 = vsub.f32 %v4236_v9, %v4328_v45  ;;  %v2202_v49 = vmul.f32 %v2198_v11, %v4328_v45  ;;  %v680_v12 = vadd.f32 %v676_v36, %v647_v40  ;;  %v3235_v11 = vld [vmem:[#allocation7 + $0x124] sm:$0xf0]  ;;  %v2831_v36 = vor.u32 %v3231_v54, %v2828_v20 }
  0xec   : > { %v745_v50 = vsel %vm744_vm0, %v4268_v31, %v743_v43  ;;  %v677_v52 = vmul.f32 %v673_v44, %v673_v44  ;;  %v2189_v53 = vadd.f32 %v2181_v13, %v2166_v28  ;;  %v752_v55 = vmul.f32 0.5, %v751_v47  ;;  %v2796_v28 = vld [vmem:[#allocation7 + $0x68] sm:$0xf0] }
  0xed   : > { %v705_v58 = vmul.f32 %v701_v48, %v701_v48  ;;  %v2210_v60 = vadd.f32 %v2202_v49, %v2187_v23  ;;  %v748_v63 = vsel %vm746_vm1, %v747_v46, %v745_v50  ;;  %v2224_v31 = vmax.f32 %v2216_v59, 0.0  ;;  %v2794_v23 = vld [vmem:[#allocation7 + $0x8] sm:$0xf]  ;;  %941 = vmatpush.bf16.msrb.mxu3 %v2831_v36  ;;  %v2834_v46 = vld [vmem:[#allocation7 + $0xd0] sm:$0xf] }
  0xee   : > { %v681_v17 = vadd.f32 %v677_v52, %v648_v51  ;;  %v753_v0 = vsub.f32 1.5, %v752_v55  ;;  %v2212_v2 = vadd.f32 %v2204_v22, %v2189_v53  ;;  %v763_v21 = vmul.f32 -2.0, %v748_v63  ;;  %v3236_v49 = vld [vmem:[#allocation7 + $0x12c] sm:$0xf0]  ;;  %v2836_v50 = vld [vmem:[#allocation7 + $0x130] sm:$0xf0] }
  0xef   : > { %v4337_v9 = vadd.f32 %v705_v58, %v680_v12  ;;  %v2221_v16 = vmax.f32 %v2210_v60, 0.0  ;;  %v2827_v35 = vor.u32 %v3235_v11, %v2826_v10  ;;  %v4350_v39 = vpack.c.bf16 %v2224_v31, %v2223_v29  ;;  %v2802_v12 = vld [vmem:[#allocation7 + $0x10] sm:$0xf]  ;;  %v3224_v60 = vld [vmem:[#allocation7 + $0x14] sm:$0xf] }
  0xf0   : > { %v4339_v7 = vadd.f32 %v706_v42, %v681_v17  ;;  %v754_v14 = vmul.f32 %v3522_v30, %v753_v0  ;;  %v2222_v26 = vmax.f32 %v2212_v2, 0.0  ;;  %v759_v30 = vand.u32 2147483648, %v4291_v56  ;;  %v3228_v17 = vld [vmem:[#allocation7 + $0x6c] sm:$0xf0]  ;;  %v3233_v31 = vld [vmem:[#allocation7 + $0xdc] sm:$0xf] }
  0xf1   : > { %3523 = vrsqrt.f32 %v4337_v9  ;;  %4961 = vst [vmem:[#allocation24_spill] sm:$0xff] %v4350_v39  ;;  %v769_v40 = vmul.f32 1.442695, %v763_v21  ;;  %922 = vmatpush.bf16.msrb.mxu2 %v2827_v35  ;;  %v2795_v22 = vor.u32 %v3227_v25, %v2794_v23  ;;  %v2799_v43 = vor.u32 %v3223_v27, %v2796_v28  ;;  %v2844_v21 = vld [vmem:[#allocation7 + $0x138] sm:$0xf0] }
  0xf2   : > { %v755_v32 = vmul.f32 %v754_v14, %v4291_v56  ;;  %3525 = vrsqrt.f32 %v4339_v7  ;;  %v4348_v37 = vpack.c.bf16 %v2222_v26, %v2221_v16  ;;  %v3946_v48 = vmov 3   ;;  %v2842_v14 = vld [vmem:[#allocation7 + $0xd8] sm:$0xf] }
  0xf3   : > { %3478 = vset.pattern.permute.xlu1 %v3946_v48  ;;  %3479 = vset.pattern.permute.xlu2 %v3946_v48  ;;  %v2835_v53 = vor.u32 %v3236_v49, %v2834_v46  ;;  %3527 = vpow2.f32 %v769_v40  ;;  %v2803_v63 = vor.u32 %v3228_v17, %v2802_v12  ;;  %v2807_v0 = vor.u32 %v3224_v60, %v2804_v61  ;;  %v3237_v16 = vld [vmem:[#allocation7 + $0x134] sm:$0xf0]  ;;  %v3225_v49 = vld [vmem:[#allocation7 + $0x1c] sm:$0xf]  ;;  %v2906_v17 = vld [vmem:[#allocation7 + $0xe8] sm:$0xf] }
  0xf4   : > { %v757_v15 = vsel %vm756_vm2, %v4291_v56, %v755_v32  ;;  %v3232_v56 = vld [vmem:[#allocation7 + $0xd4] sm:$0xf]  ;;  %1071 = vperm.xlu1 %3478, %v4223_v5   ;;  %1075 = vperm.xlu2 %3479, %v4226_v6   ;;  %v3947_v11 = vmov 4   ;;  %v2843_v27 = vor.u32 %v3237_v16, %v2842_v14  ;;  %v2847_v28 = vor.u32 %v3233_v31, %v2844_v21  ;;  %v3251_v60 = vld [vmem:[#allocation7 + $0x144] sm:$0xf0] }
  0xf5   : > { %v760_v42 = vsel %vm758_vm3, %v759_v30, %v757_v15  ;;  %v2839_v55 = vor.u32 %v3232_v56, %v2836_v50  ;;  %923 = vmatpush.bf16.msrb.mxu2 %v2795_v22  ;;  %942 = vmatpush.bf16.msrb.mxu3 %v2799_v43  ;;  %vm720_vm5 = vcmp.eq.f32.partialorder %v4337_v9, inf  ;;  %v723_v36 = vand.u32 2147483648, %v4337_v9  ;;  %v2812_v56 = vld [vmem:[#allocation7 + $0x78] sm:$0xf0]  ;;  %v3247_v61 = vld [vmem:[#allocation7 + $0xec] sm:$0xf] }
  0xf6   : > { %v764_v13 = vmul.f32 -2.0, %v760_v42  ;;  %960 = vmatpush.bf16.msrb.mxu0 %v2835_v53  ;;  %3480 = vset.pattern.permute.xlu0 %v3947_v11  ;;  %vm722_vm6 = vcmp.eq.f32.partialorder %v4337_v9, 0.0  ;;  %vm732_vm7 = vcmp.eq.f32.partialorder %v4339_v7, inf  ;;  %vm734_vm8 = vcmp.eq.f32.partialorder %v4339_v7, 0.0  ;;  %v2866_v21 = vld [vmem:[#allocation7 + $0x20] sm:$0xf] }
  0xf7   : > { %v3524_v44 = vpop.eup %3523  ;;  %979 = vmatpush.bf16.msrb.mxu1 %v2839_v55  ;;  %1351 = vperm.xlu0 %3480, %v4223_v5   ;;  %v735_v22 = vand.u32 2147483648, %v4339_v7  ;;  %v3948_v50 = vmov 5   ;;  %v2815_v53 = vor.u32 %v3225_v49, %v2812_v56  ;;  %v2924_v49 = vld [vmem:[#allocation7 + $0x158] sm:$0xf0]  ;;  %v2914_v56 = vld [vmem:[#allocation7 + $0xf0] sm:$0xf] }
  0xf8   : > { %v714_v47 = vmul.f32 %v3524_v44, %v4337_v9  ;;  %v3526_v51 = vpop.eup %3525  ;;  %v771_v52 = vmul.f32 1.442695, %v764_v13  ;;  %v3229_v13 = vld [vmem:[#allocation7 + $0x74] sm:$0xf0] }
  0xf9   : > { %v726_v59 = vmul.f32 %v3526_v51, %v4339_v7  ;;  %v3528_v23 = vpop.eup %3527 }
  0xfa   : > { %v715_v58 = vmul.f32 %v3524_v44, %v714_v47  ;;  %3529 = vpow2.f32 %v771_v52  ;;  %961 = vmatpush.bf16.msrb.mxu0 %v2803_v63  ;;  %v2907_v63 = vor.u32 %v3251_v60, %v2906_v17  ;;  %v2882_v60 = vld [vmem:[#allocation7 + $0x30] sm:$0xf] }
  0xfb   : > { %v727_v10 = vmul.f32 %v3526_v51, %v726_v59  ;;  %980 = vmatpush.bf16.msrb.mxu1 %v2807_v0  ;;  %v3949_v59 = vmov 7   ;;  %v2908_v0 = vld [vmem:[#allocation7 + $0x148] sm:$0xf0] }
  0xfc   : > { %v716_v2 = vmul.f32 0.5, %v715_v58  ;;  %3481 = vset.pattern.permute.xlu1 %v3947_v11  ;;  %3482 = vset.pattern.permute.xlu2 %v3948_v50  ;;  %v2911_v14 = vor.u32 %v3247_v61, %v2908_v0  ;;  %v3244_v61 = vld [vmem:[#allocation7 + $0x8c] sm:$0xf0]  ;;  %v2884_v0 = vld [vmem:[#allocation7 + $0x90] sm:$0xf0] }
  0xfd   : > { %v728_v20 = vmul.f32 0.5, %v727_v10  ;;  %1355 = vperm.xlu1 %3481, %v4226_v6   ;;  %1383 = vperm.xlu2 %3482, %v4223_v5   ;;  %v3250_v10 = vld [vmem:[#allocation7 + $0x13c] sm:$0xf0] }
  0xfe   : > { %v717_v54 = vsub.f32 1.5, %v716_v2  ;;  %v2898_v2 = vld [vmem:[#allocation7 + $0xe0] sm:$0xf] }
  0xff   : > { %v729_v32 = vsub.f32 1.5, %v728_v20  ;;  %v2899_v16 = vor.u32 %v3250_v10, %v2898_v2  ;;  %v2900_v20 = vld [vmem:[#allocation7 + $0x140] sm:$0xf0]  ;;  %v2883_v2 = vor.u32 %v3244_v61, %v2882_v60  ;;  %v2994_v60 = vld [vmem:[#allocation7 + $0x110] sm:$0xf] }
 0x100   : > { %v718_v25 = vmul.f32 %v3524_v44, %v717_v54  ;;  %v3530_v26 = vpop.eup %3529  ;;  %v2810_v44 = vld [vmem:[#allocation7 + $0x18] sm:$0xf]  ;;  %v3246_v54 = vld [vmem:[#allocation7 + $0xe4] sm:$0xf]  ;;  %v3268_v61 = vld [vmem:[#allocation7 + $0x16c] sm:$0xf0] }
 0x101   : > { %v4361_v29 = vpack.c.bf16 %v3530_v26, %v3528_v23  ;;  %v730_v35 = vmul.f32 %v3526_v51, %v729_v32  ;;  %v2811_v47 = vor.u32 %v3229_v13, %v2810_v44  ;;  %v2903_v31 = vor.u32 %v3246_v54, %v2900_v20  ;;  %v3242_v23 = vld [vmem:[#allocation7 + $0x7c] sm:$0xf0]  ;;  %v2868_v26 = vld [vmem:[#allocation7 + $0x80] sm:$0xf0]  ;;  %v2922_v44 = vld [vmem:[#allocation7 + $0xf8] sm:$0xf] }
 0x102   : > { %v719_v30 = vmul.f32 %v718_v25, %v4337_v9  ;;  %v3238_v25 = vld [vmem:[#allocation7 + $0x24] sm:$0xf]  ;;  %v2867_v32 = vor.u32 %v3242_v23, %v2866_v21  ;;  %v3253_v13 = vld [vmem:[#allocation7 + $0x154] sm:$0xf0]  ;;  %v3241_v54 = vld [vmem:[#allocation7 + $0x3c] sm:$0xf] }
 0x103   : > { %v731_v40 = vmul.f32 %v730_v35, %v4339_v7  ;;  %2849 = vmatmul.msk.bf16.vlgmr.msra.gmra.mxu2 %vm871_vm4, %v4361_v29  ;;  %2851 = vmatmul.msk.bf16.vlgmr.msra.gmra.mxu3 %vm871_vm4, %v4361_v29  ;;  %v3243_v35 = vld [vmem:[#allocation7 + $0x84] sm:$0xf0] }
 0x104   : > { %v721_v15 = vsel %vm720_vm5, %v4337_v9, %v719_v30  ;;  %998 = vmatpush.bf16.msra.mxu2 %v2843_v27  ;;  %1017 = vmatpush.bf16.msra.mxu3 %v2847_v28  ;;  %v2871_v27 = vor.u32 %v3238_v25, %v2868_v26  ;;  %v3950_v28 = vmov 8   ;;  %v2874_v30 = vld [vmem:[#allocation7 + $0x28] sm:$0xf]  ;;  %v2988_v25 = vld [vmem:[#allocation7 + $0x168] sm:$0xf0] }
 0x105   : > { %v724_v42 = vsel %vm722_vm6, %v723_v36, %v721_v15  ;;  %v733_v9 = vsel %vm732_vm7, %v4339_v7, %v731_v40  ;;  %3483 = vset.pattern.permute.xlu1 %v3948_v50  ;;  %v3239_v36 = vld [vmem:[#allocation7 + $0x2c] sm:$0xf]  ;;  %v3951_v15 = vmov 9   ;;  %v2875_v40 = vor.u32 %v3243_v35, %v2874_v30  ;;  %v3266_v26 = vld [vmem:[#allocation7 + $0x15c] sm:$0xf0] }
 0x106   : > { %v761_v43 = vmul.f32 -2.0, %v724_v42  ;;  %v736_v46 = vsel %vm734_vm8, %v735_v22, %v733_v9  ;;  %1387 = vperm.xlu1 %3483, %v4226_v6   ;;  %v2876_v42 = vld [vmem:[#allocation7 + $0x88] sm:$0xf0]  ;;  %v3953_v9 = vmov 10   ;;  %v3262_v35 = vld [vmem:[#allocation7 + $0x104] sm:$0xf] }
 0x107   : > { %v762_v52 = vmul.f32 -2.0, %v736_v46  ;;  %v2879_v22 = vor.u32 %v3239_v36, %v2876_v42  ;;  %v2923_v46 = vor.u32 %v3253_v13, %v2922_v44  ;;  %v2980_v36 = vld [vmem:[#allocation7 + $0x160] sm:$0xf0] }
 0x108   : > { %v765_v51 = vmul.f32 1.442695, %v761_v43  ;;  %999 = vmatpush.bf16.msra.mxu2 %v2811_v47  ;;  %1018 = vmatpush.bf16.msra.mxu3 %v2815_v53  ;;  %v3952_v43 = vmov 6   ;;  %v3249_v47 = vld [vmem:[#allocation7 + $0xfc] sm:$0xf]  ;;  %v2983_v42 = vor.u32 %v3262_v35, %v2980_v36 }
 0x109   : > { %v767_v55 = vmul.f32 1.442695, %v762_v52  ;;  %3484 = vset.pattern.permute.xlu2 %v3952_v43  ;;  %3485 = vset.pattern.permute.xlu0 %v3952_v43  ;;  %v3252_v52 = vld [vmem:[#allocation7 + $0x14c] sm:$0xf0]  ;;  %v3248_v53 = vld [vmem:[#allocation7 + $0xf4] sm:$0xf] }
 0x10a   : > { %3531 = vpow2.f32 %v765_v51  ;;  %1415 = vperm.xlu2 %3484, %v4223_v5   ;;  %1419 = vperm.xlu0 %3485, %v4226_v6   ;;  %v2927_v51 = vor.u32 %v3249_v47, %v2924_v49  ;;  %v3254_v44 = vld [vmem:[#allocation7 + $0x44] sm:$0xf]  ;;  %v3259_v49 = vld [vmem:[#allocation7 + $0xa4] sm:$0xf0] }
 0x10b   : > { %3533 = vpow2.f32 %v767_v55  ;;  %v2916_v55 = vld [vmem:[#allocation7 + $0x150] sm:$0xf0]  ;;  %v2948_v13 = vld [vmem:[#allocation7 + $0xa0] sm:$0xf0] }
 0x10c   : > { %v2919_v17 = vor.u32 %v3248_v53, %v2916_v55  ;;  %v2951_v47 = vor.u32 %v3254_v44, %v2948_v13  ;;  %v3265_v53 = vld [vmem:[#allocation7 + $0x11c] sm:$0xf] }
 0x10e   : > { %3486 = vset.pattern.permute.xlu1 %v3949_v59 }
 0x10f   : > { %1447 = vperm.xlu1 %3486, %v4223_v5  }
 0x110   : > { %v3532_v7 = vpop.eup %3531 }
 0x111   : > { %v3534_v12 = vpop.eup %3533 }
 0x112   : > { %v4382_v58 = vpack.c.bf16 %v3534_v12, %v3532_v7  ;;  %3487 = vset.pattern.permute.xlu2 %v3949_v59  ;;  %3490 = vset.pattern.permute.xlu0 %v3951_v15  ;;  %v3954_v7 = vmov 11   ;;  %v2915_v12 = vor.u32 %v3252_v52, %v2914_v56 }
 0x113   : > { %1451 = vperm.xlu2 %3487, %v4226_v6   ;;  %1759 = vperm.xlu0 %3490, %v4223_v5  }
 0x114   : > { %2848 = vmatmul.msk.bf16.vlgmr.msra.gmra.mxu0 %vm871_vm4, %v4382_v58  ;;  %2850 = vmatmul.msk.bf16.vlgmr.msra.gmra.mxu1 %vm871_vm4, %v4382_v58 }
 0x115   : > { %2852 = vmatmul.msk.bf16.vlgmr.msrb.gmra.mxu2 %vm871_vm4, %v4382_v58  ;;  %2854 = vmatmul.msk.bf16.vlgmr.msrb.gmra.mxu3 %vm871_vm4, %v4382_v58 }
 0x116   : > { %1242 = vmatpush.bf16.msrb.mxu2 %v2907_v63  ;;  %1261 = vmatpush.bf16.msrb.mxu3 %v2911_v14  ;;  %v3240_v63 = vld [vmem:[#allocation7 + $0x34] sm:$0xf]  ;;  %v2890_v14 = vld [vmem:[#allocation7 + $0x38] sm:$0xf] }
 0x117   : > { %1204 = vmatpush.bf16.msra.mxu0 %v2899_v16  ;;  %1223 = vmatpush.bf16.msra.mxu1 %v2903_v31  ;;  %v2887_v10 = vor.u32 %v3240_v63, %v2884_v0  ;;  %v3245_v16 = vld [vmem:[#allocation7 + $0x94] sm:$0xf0]  ;;  %v2892_v31 = vld [vmem:[#allocation7 + $0x98] sm:$0xf0]  ;;  %v3264_v63 = vld [vmem:[#allocation7 + $0x114] sm:$0xf]  ;;  %v2995_v0 = vor.u32 %v3268_v61, %v2994_v60 }
 0x118   : > { %3488 = vset.pattern.permute.xlu1 %v3950_v28  ;;  %v2891_v20 = vor.u32 %v3245_v16, %v2890_v14  ;;  %v2895_v21 = vor.u32 %v3241_v54, %v2892_v31  ;;  %v2962_v14 = vld [vmem:[#allocation7 + $0x50] sm:$0xf]  ;;  %v3256_v54 = vld [vmem:[#allocation7 + $0x54] sm:$0xf] }
 0x119   : > { %1727 = vperm.xlu1 %3488, %v4223_v5   ;;  %v3260_v16 = vld [vmem:[#allocation7 + $0xac] sm:$0xf0]  ;;  %v2964_v31 = vld [vmem:[#allocation7 + $0xb0] sm:$0xf0] }
 0x11a   : > { %1243 = vmatpush.bf16.msrb.mxu2 %v2875_v40  ;;  %1262 = vmatpush.bf16.msrb.mxu3 %v2879_v22  ;;  %v2946_v40 = vld [vmem:[#allocation7 + $0x40] sm:$0xf]  ;;  %v3298_v60 = vld [vmem:[#allocation14 + $0x20] sm:$0xff] }
 0x11b   : > { %1205 = vmatpush.bf16.msra.mxu0 %v2867_v32  ;;  %1224 = vmatpush.bf16.msra.mxu1 %v2871_v27  ;;  %v2978_v32 = vld [vmem:[#allocation7 + $0x100] sm:$0xf] }
 0x11c   : > { %3489 = vset.pattern.permute.xlu2 %v3950_v28  ;;  %3495 = vset.pattern.permute.xlu0 %v3946_v48  ;;  %v2979_v30 = vor.u32 %v3266_v26, %v2978_v32  ;;  %v3258_v22 = vld [vmem:[#allocation7 + $0x9c] sm:$0xf0] }
 0x11d   : > { %1731 = vperm.xlu2 %3489, %v4226_v6   ;;  %1083 = vperm.xlu0 %3495, %v4217_v4  }
 0x121   : > { %3491 = vset.pattern.permute.xlu1 %v3951_v15 }
 0x122   : > { %1763 = vperm.xlu1 %3491, %v4226_v6  }
 0x124   : > { %2856 = vmatmul.msk.bf16.vlgmr.msrb.gmra.mxu0 %vm871_vm4, %v4382_v58  ;;  %2858 = vmatmul.msk.bf16.vlgmr.msrb.gmra.mxu1 %vm871_vm4, %v4382_v58 }
 0x125   : > { %2853 = vmatmul.msk.bf16.gmra.mxu2 %vm871_vm4, %v4361_v29  ;;  %2855 = vmatmul.msk.bf16.gmra.mxu3 %vm871_vm4, %v4361_v29 }
 0x126   : > { %1280 = vmatpush.bf16.msrb.mxu0 %v2915_v12  ;;  %1299 = vmatpush.bf16.msrb.mxu1 %v2919_v17  ;;  %v3004_v12 = vld [vmem:[#allocation7 + $0x178] sm:$0xf0] }
 0x127   : > { %3492 = vset.pattern.permute.xlu2 %v3953_v9  ;;  %3500 = vset.pattern.permute.xlu0 %v3948_v50 }
 0x128   : > { %1791 = vperm.xlu2 %3492, %v4223_v5   ;;  %1391 = vperm.xlu0 %3500, %v4211_v3  }
 0x12a   : > { %3493 = vset.pattern.permute.xlu1 %v3953_v9  ;;  %1281 = vmatpush.bf16.msrb.mxu0 %v2883_v2  ;;  %v2996_v2 = vld [vmem:[#allocation7 + $0x170] sm:$0xf0] }
 0x12b   : > { %1795 = vperm.xlu1 %3493, %v4226_v6   ;;  %1300 = vmatpush.bf16.msrb.mxu1 %v2887_v10  ;;  %v2999_v10 = vor.u32 %v3264_v63, %v2996_v2 }
 0x130   : > { %3494 = vset.pattern.permute.xlu2 %v3946_v48  ;;  %3505 = vset.pattern.permute.xlu0 %v3949_v59  ;;  %v3267_v48 = vld [vmem:[#allocation7 + $0x164] sm:$0xf0] }
 0x131   : > { %1079 = vperm.xlu2 %3494, %v4211_v3   ;;  %1459 = vperm.xlu0 %3505, %v4217_v4  }
 0x133   : > { %3496 = vset.pattern.permute.xlu1 %v3954_v7 }
 0x134   : > { %2857 = vmatmul.msk.bf16.gmra.mxu0 %vm871_vm4, %v4361_v29  ;;  %2859 = vmatmul.msk.bf16.gmra.mxu1 %vm871_vm4, %v4361_v29 }
 0x135   : > { %2860 = vmatmul.msk.bf16.vlgmr.msra.gmra.mxu2 %vm871_vm4, %v4382_v58  ;;  %2862 = vmatmul.msk.bf16.vlgmr.msra.gmra.mxu3 %vm871_vm4, %v4382_v58 }
 0x136   : > { %1318 = vmatpush.bf16.msra.mxu2 %v2923_v46  ;;  %1823 = vperm.xlu1 %3496, %v4223_v5   ;;  %v2986_v5 = vld [vmem:[#allocation7 + $0x108] sm:$0xf]  ;;  %v2947_v46 = vor.u32 %v3258_v22, %v2946_v40 }
 0x137   : > { %1337 = vmatpush.bf16.msra.mxu3 %v2927_v51  ;;  %v2987_v23 = vor.u32 %v3267_v48, %v2986_v5  ;;  %v2956_v51 = vld [vmem:[#allocation7 + $0xa8] sm:$0xf0]  ;;  %v2970_v48 = vld [vmem:[#allocation7 + $0x58] sm:$0xf] }
 0x139   : > { %3497 = vset.pattern.permute.xlu2 %v3954_v7  ;;  %3510 = vset.pattern.permute.xlu0 %v3953_v9 }
 0x13a   : > { %1319 = vmatpush.bf16.msra.mxu2 %v2891_v20  ;;  %1827 = vperm.xlu2 %3497, %v4226_v6   ;;  %v2954_v6 = vld [vmem:[#allocation7 + $0x48] sm:$0xf]  ;;  %v2963_v20 = vor.u32 %v3260_v16, %v2962_v14 }
 0x13b   : > { %1338 = vmatpush.bf16.msra.mxu3 %v2895_v21  ;;  %1799 = vperm.xlu0 %3510, %v4211_v3   ;;  %v2955_v56 = vor.u32 %v3259_v49, %v2954_v6  ;;  %v2967_v21 = vor.u32 %v3256_v54, %v2964_v31  ;;  %v3297_v16 = vld [vmem:[#allocation14 + $0x18] sm:$0xff] }
 0x13e   : > { %3498 = vset.pattern.permute.xlu1 %v3947_v11 }
 0x13f   : > { %1359 = vperm.xlu1 %3498, %v4211_v3  }
 0x142   : > { %3499 = vset.pattern.permute.xlu2 %v3947_v11  ;;  %v3255_v11 = vld [vmem:[#allocation7 + $0x4c] sm:$0xf] }
 0x143   : > { %1363 = vperm.xlu2 %3499, %v4217_v4   ;;  %3514 = vset.pattern.permute.xlu0 %v3954_v7  ;;  %v2959_v52 = vor.u32 %v3255_v11, %v2956_v51 }
 0x144   : > { %2928 = vmatmul.msk.bf16.vlgmr.msra.gmra.mxu0 %vm871_vm4, %v4382_v58  ;;  %2930 = vmatmul.msk.bf16.vlgmr.msra.gmra.mxu1 %vm871_vm4, %v4382_v58 }
 0x145   : > { %2861 = vmatmul.msk.bf16.gmra.mxu2 %vm871_vm4, %v4361_v29  ;;  %2863 = vmatmul.msk.bf16.gmra.mxu3 %vm871_vm4, %v4361_v29 }
 0x146   : > { %1580 = vmatpush.bf16.msra.mxu0 %v2979_v30  ;;  %1599 = vmatpush.bf16.msra.mxu1 %v2983_v42 }
 0x147   : > { %3501 = vset.pattern.permute.xlu1 %v3948_v50  ;;  %v3263_v50 = vld [vmem:[#allocation7 + $0x10c] sm:$0xf] }
 0x148   : > { %1395 = vperm.xlu1 %3501, %v4217_v4   ;;  %v2991_v27 = vor.u32 %v3263_v50, %v2988_v25  ;;  %v3261_v50 = vld [vmem:[#allocation7 + $0xb4] sm:$0xf0] }
 0x149   : > { %v2971_v26 = vor.u32 %v3261_v50, %v2970_v48 }
 0x14a   : > { %1581 = vmatpush.bf16.msra.mxu0 %v2947_v46  ;;  %1600 = vmatpush.bf16.msra.mxu1 %v2951_v47 }
 0x14b   : > { %3502 = vset.pattern.permute.xlu2 %v3952_v43 }
 0x14c   : > { %1423 = vperm.xlu2 %3502, %v4211_v3  }
 0x150   : > { %3503 = vset.pattern.permute.xlu1 %v3952_v43  ;;  %v3002_v43 = vld [vmem:[#allocation7 + $0x118] sm:$0xf] }
 0x151   : > { %1427 = vperm.xlu1 %3503, %v4217_v4  }
 0x154   : > { %2929 = vmatmul.msk.bf16.gmra.mxu0 %vm871_vm4, %v4361_v29  ;;  %2931 = vmatmul.msk.bf16.gmra.mxu1 %vm871_vm4, %v4361_v29 }
 0x155   : > { %2932 = vmatmul.msk.bf16.vlgmr.msrb.gmra.mxu2 %vm871_vm4, %v4382_v58  ;;  %2934 = vmatmul.msk.bf16.vlgmr.msrb.gmra.mxu3 %vm871_vm4, %v4382_v58 }
 0x156   : > { %1618 = vmatpush.bf16.msrb.mxu2 %v2987_v23  ;;  %1637 = vmatpush.bf16.msrb.mxu3 %v2991_v27  ;;  %v3257_v23 = vld [vmem:[#allocation7 + $0x5c] sm:$0xf] }
 0x157   : > { %3504 = vset.pattern.permute.xlu2 %v3949_v59  ;;  %v3007_v59 = vor.u32 %v3265_v53, %v3004_v12  ;;  %v2972_v27 = vld [vmem:[#allocation7 + $0xb8] sm:$0xf0] }
 0x158   : > { %1455 = vperm.xlu2 %3504, %v4211_v3   ;;  %v2975_v30 = vor.u32 %v3257_v23, %v2972_v27  ;;  %v3296_v27 = vld [vmem:[#allocation14 + $0x10] sm:$0xff] }
 0x159   : > { %3506 = vset.pattern.permute.xlu1 %v3950_v28 }
 0x15a   : > { %1735 = vperm.xlu1 %3506, %v4211_v3   ;;  %1619 = vmatpush.bf16.msrb.mxu2 %v2955_v56  ;;  %v3300_v56 = vld [vmem:[#allocation14 + $0x30] sm:$0xff] }
 0x15b   : > { %1638 = vmatpush.bf16.msrb.mxu3 %v2959_v52 }
 0x160   : > { %3507 = vset.pattern.permute.xlu2 %v3950_v28  ;;  %v4507_v28 = vpop.permute.xlu2 %1075 }
 0x161   : > { %1739 = vperm.xlu2 %3507, %v4217_v4  }
 0x162   : > { %3508 = vset.pattern.permute.xlu1 %v3951_v15 }
 0x163   : > { %1767 = vperm.xlu1 %3508, %v4211_v3  }
 0x164   : > { %2936 = vmatmul.msk.bf16.vlgmr.msrb.gmra.mxu0 %vm871_vm4, %v4382_v58  ;;  %2938 = vmatmul.msk.bf16.vlgmr.msrb.gmra.mxu1 %vm871_vm4, %v4382_v58 }
 0x165   : > { %2933 = vmatmul.msk.bf16.gmra.mxu2 %vm871_vm4, %v4361_v29  ;;  %2935 = vmatmul.msk.bf16.gmra.mxu3 %vm871_vm4, %v4361_v29 }
 0x166   : > { %v4495_v17 = vpop.permute.xlu1 %1071  ;;  %1656 = vmatpush.bf16.msrb.mxu0 %v2995_v0  ;;  %1675 = vmatpush.bf16.msrb.mxu1 %v2999_v10 }
 0x168   : > { %v4518_v40 = vpop.permute.xlu2 %1383 }
 0x169   : > { %3509 = vset.pattern.permute.xlu2 %v3951_v15 }
 0x16a   : > { %1657 = vmatpush.bf16.msrb.mxu0 %v2963_v20  ;;  %1676 = vmatpush.bf16.msrb.mxu1 %v2967_v21 }
 0x16b   : > { %3511 = vset.pattern.permute.xlu1 %v3953_v9  ;;  %v3269_v9 = vld [vmem:[#allocation7 + $0x174] sm:$0xf0]  ;;  %1771 = vperm.xlu2 %3509, %v4217_v4  }
 0x16c   : > { %1803 = vperm.xlu1 %3511, %v4217_v4   ;;  %v3003_v55 = vor.u32 %v3269_v9, %v3002_v43  ;;  %v3299_v9 = vld [vmem:[#allocation14 + $0x28] sm:$0xff] }
 0x16f   : > { %v4509_v5 = vpop.permute.xlu1 %1355 }
 0x170   : > { %v4539_v11 = vpop.permute.xlu2 %1415 }
 0x173   : > { %3512 = vset.pattern.permute.xlu2 %v3954_v7 }
 0x174   : > { %2937 = vmatmul.msk.bf16.gmra.mxu0 %vm871_vm4, %v4361_v29  ;;  %2939 = vmatmul.msk.bf16.gmra.mxu1 %vm871_vm4, %v4361_v29 }
 0x175   : > { %2940 = vmatmul.msk.bf16.vlgmr.msra.gmra.mxu2 %vm871_vm4, %v4382_v58  ;;  %2942 = vmatmul.msk.bf16.vlgmr.msra.gmra.mxu3 %vm871_vm4, %v4382_v58 }
 0x176   : > { %1694 = vmatpush.bf16.msra.mxu2 %v3003_v55  ;;  %1713 = vmatpush.bf16.msra.mxu3 %v3007_v59 }
 0x177   : > { %3513 = vset.pattern.permute.xlu1 %v3954_v7  ;;  %1831 = vperm.xlu2 %3512, %v4211_v3  }
 0x178   : > { %1835 = vperm.xlu1 %3513, %v4217_v4   ;;  %v4520_v42 = vpop.permute.xlu1 %1387  ;;  %v3301_v4 = vld [vmem:[#allocation14 + $0x38] sm:$0xff]  ;;  %v4551_v10 = vpop.permute.xlu2 %1451 }
 0x17a   : > { %1695 = vmatpush.bf16.msra.mxu2 %v2971_v26  ;;  %1714 = vmatpush.bf16.msra.mxu3 %v2975_v30 }
 0x181   : > { %v4541_v43 = vpop.permute.xlu1 %1447 }
 0x184   : > { %3008 = vmatmul.msk.bf16.vlgmr.msra.gmra.mxu0 %vm871_vm4, %v4382_v58  ;;  %3010 = vmatmul.msk.bf16.vlgmr.msra.gmra.mxu1 %vm871_vm4, %v4382_v58 }
 0x185   : > { %2941 = vmatmul.msk.bf16.gmra.mxu2 %vm871_vm4, %v4361_v29  ;;  %2943 = vmatmul.msk.bf16.gmra.mxu3 %vm871_vm4, %v4361_v29 }
 0x186   : > { %v892_v25 = vpop.f32.mrf.mxu2  ;;  %v911_v32 = vpop.f32.mrf.mxu3 }
 0x187   : > { %v1034_v31 = vmul.f32 %v892_v25, %v4253_v19  ;;  %v1035_v21 = vmul.f32 %v911_v32, %v4253_v19 }
 0x18b   : > { %v4557_v14 = vpop.permute.xlu1 %1727 }
 0x18e   : > { %v4513_v35 = vpop.f32.mrf.mxu2  ;;  %v4515_v36 = vpop.f32.mrf.mxu3 }
 0x191   : > { %v887_v22 = vpop.f32.mrf.mxu0  ;;  %v906_v44 = vpop.f32.mrf.mxu1 }
 0x192   : > { %v1030_v3 = vmul.f32 %v887_v22, %v4293_v57  ;;  %v1031_v13 = vmul.f32 %v906_v44, %v4293_v57  ;;  %v3295_v44 = vld [vmem:[#allocation14 + $0x8] sm:$0xff] }
 0x194   : > { %3009 = vmatmul.msk.bf16.gmra.mxu0 %vm871_vm4, %v4361_v29  ;;  %3011 = vmatmul.msk.bf16.gmra.mxu1 %vm871_vm4, %v4361_v29 }
 0x195   : > { %3012 = vmatmul.msk.bf16.vlgmr.msrb.gmra.mxu2 %vm871_vm4, %v4382_v58  ;;  %3014 = vmatmul.msk.bf16.vlgmr.msrb.gmra.mxu3 %vm871_vm4, %v4382_v58 }
 0x196   : > { %2295 = vmatpush.bf16.msrb.mxu3 %v3301_v4  ;;  %v4565_v4 = vpop.permute.xlu2 %1731 }
 0x198   : > { %v925_v15 = vpop.f32.mrf.mxu2  ;;  %v944_v7 = vpop.f32.mrf.mxu3 }
 0x199   : > { %v1038_v46 = vmul.f32 %v925_v15, %v4283_v38  ;;  %v1039_v47 = vmul.f32 %v944_v7, %v4283_v38  ;;  %v4535_v6 = vpop.f32.mrf.mxu0  ;;  %v4537_v49 = vpop.f32.mrf.mxu1 }
 0x19a   : > { %2296 = vmatpush.bf16.msrb.mxu3 %v3300_v56  ;;  %v1352_v15 = vpop.permute.xlu0 %1351  ;;  %v4567_v7 = vpop.permute.xlu1 %1763  ;;  %v3294_v56 = vld [vmem:[#allocation14] sm:$0xff] }
 0x19b   : > { %v1046_v51 = vadd.f32 %v1038_v46, %v1030_v3  ;;  %v1047_v52 = vadd.f32 %v1039_v47, %v1031_v13  ;;  %v1037_v3 = vmul.f32 %v4515_v36, %v4274_v34 }
 0x19e   : > { %2297 = vmatpush.bf16.msrb.mxu3 %v3299_v9 }
 0x1a0   : > { %v4543_v53 = vpop.f32.mrf.mxu2  ;;  %v946_v55 = vpop.f32.mrf.mxu3 }
 0x1a1   : > { %v963_v12 = vpop.f32.mrf.mxu0  ;;  %v982_v59 = vpop.f32.mrf.mxu1 }
 0x1a2   : > { %v1054_v61 = vmul.f32 %v963_v12, %v4328_v45  ;;  %v1055_v63 = vmul.f32 %v982_v59, %v4328_v45  ;;  %2298 = vmatpush.bf16.msrb.mxu3 %v3298_v60 }
 0x1a4   : > { %v1062_v0 = vadd.f32 %v1054_v61, %v1046_v51  ;;  %v1063_v2 = vadd.f32 %v1055_v63, %v1047_v52  ;;  %3016 = vmatmul.msk.bf16.vlgmr.msrb.gmra.mxu0 %vm871_vm4, %v4382_v58  ;;  %3018 = vmatmul.msk.bf16.vlgmr.msrb.gmra.mxu1 %vm871_vm4, %v4382_v58  ;;  %v3567_v61 = vld [vmem:[#allocation13] ss:$4 sm:$0x3] }
 0x1a5   : > { %3013 = vmatmul.msk.bf16.gmra.mxu2 %vm871_vm4, %v4361_v29  ;;  %3015 = vmatmul.msk.bf16.gmra.mxu3 %vm871_vm4, %v4361_v29  ;;  %v4590_v63 = vperm.slane %v3567_v61, 0 }
 0x1a6   : > { %2299 = vmatpush.bf16.msrb.mxu3 %v3297_v16 }
 0x1a8   : > { %v930_v54 = vpop.f32.mrf.mxu2  ;;  %v949_v20 = vpop.f32.mrf.mxu3 }
 0x1a9   : > { %v1042_v48 = vmul.f32 %v930_v54, %v4251_v18  ;;  %v1043_v50 = vmul.f32 %v949_v20, %v4251_v18  ;;  %v4563_v23 = vpop.f32.mrf.mxu0  ;;  %v984_v26 = vpop.f32.mrf.mxu1 }
 0x1aa   : > { %2300 = vmatpush.bf16.msrb.mxu3 %v3296_v27 }
 0x1ab   : > { %v1050_v30 = vadd.f32 %v1042_v48, %v1034_v31  ;;  %v1051_v22 = vadd.f32 %v1043_v50, %v1035_v21  ;;  %v4598_v21 = vpop.permute.xlu0 %1419  ;;  %v2150_v48 = vmul.f32 %v4590_v63, %v4293_v57  ;;  %v1033_v57 = vmul.f32 %v4537_v49, %v4299_v62 }
 0x1ae   : > { %2301 = vmatpush.bf16.msrb.mxu3 %v3295_v44  ;;  %v3568_v44 = vld [vmem:[#allocation13 + $0x1] ss:$4 sm:$0x3] }
 0x1b0   : > { %v4569_v25 = vpop.f32.mrf.mxu2  ;;  %v951_v32 = vpop.f32.mrf.mxu3 }
 0x1b1   : > { %v1045_v13 = vmul.f32 %v951_v32, %v4272_v33  ;;  %v968_v46 = vpop.f32.mrf.mxu0  ;;  %v987_v47 = vpop.f32.mrf.mxu1  ;;  %v4607_v32 = vperm.slane %v3568_v44, 0 }
 0x1b2   : > { %v1058_v51 = vmul.f32 %v968_v46, %v4234_v8  ;;  %v1059_v52 = vmul.f32 %v987_v47, %v4234_v8  ;;  %2302 = vmatpush.bf16.msrb.mxu3 %v3294_v56 }
 0x1b3   : > { %v4576_v9 = vadd.f32 %v1045_v13, %v1037_v3  ;;  %v3569_v3 = vld [vmem:[%s4931_s9] sm:$0x3]  ;;  %v2178_v47 = vmul.f32 %v4607_v32, %v4283_v38  ;;  %v1040_v38 = vmul.f32 %v4543_v53, %v4319_v41 }
 0x1b4   : > { %v4578_v12 = vadd.f32 %v1058_v51, %v1050_v30  ;;  %v4580_v59 = vadd.f32 %v1059_v52, %v1051_v22  ;;  %3017 = vmatmul.msk.bf16.gmra.mxu0 %vm871_vm4, %v4361_v29  ;;  %3019 = vmatmul.msk.bf16.gmra.mxu1 %vm871_vm4, %v4361_v29  ;;  %v4603_v30 = vpop.permute.xlu2 %1791  ;;  %v4605_v22 = vpop.permute.xlu1 %1795  ;;  %v4614_v13 = vperm.slane %v3569_v3, 0 }
 0x1b5   : > { %3020 = vmatmul.msk.bf16.vlgmr.msra.gmra.mxu2 %vm871_vm4, %v4382_v58  ;;  %3022 = vmatmul.msk.bf16.vlgmr.msra.gmra.mxu3 %vm871_vm4, %v4382_v58  ;;  %v1041_v58 = vmul.f32 %v946_v55, %v4319_v41  ;;  %v1057_v55 = vmul.f32 %v984_v26, %v4302_v1 }
 0x1b6   : > { %v2163_v56 = vadd.f32 %v4614_v13, %v2150_v48 }
 0x1b7   : > { %v1049_v51 = vadd.f32 %v1041_v58, %v1033_v57 }
 0x1b8   : > { %v1001_v36 = vpop.f32.mrf.mxu2  ;;  %v1020_v60 = vpop.f32.mrf.mxu3 }
 0x1b9   : > { %v1086_v16 = vmul.f32 %v4495_v17, %v1001_v36  ;;  %v1087_v54 = vmul.f32 %v4495_v17, %v1020_v60  ;;  %v4594_v20 = vpop.f32.mrf.mxu0  ;;  %v4596_v31 = vpop.f32.mrf.mxu1  ;;  %v2152_v17 = vmul.f32 %v4590_v63, %v4299_v62  ;;  %v1065_v61 = vadd.f32 %v1057_v55, %v1049_v51 }
 0x1ba   : > { %v4642_v51 = vpop.permute.xlu0 %1759 }
 0x1bb   : > { %v1094_v50 = vadd.f32 %v1086_v16, %v1062_v0  ;;  %v1095_v27 = vadd.f32 %v1087_v54, %v1063_v2  ;;  %v2180_v0 = vmul.f32 %v4607_v32, %v4319_v41  ;;  %v3570_v2 = vld [vmem:[#allocation13 + $0x2] ss:$4 sm:$0x3]  ;;  %v2165_v52 = vadd.f32 %v4614_v13, %v2152_v17 }
 0x1bc   : > { %v4621_v46 = vperm.slane %v3570_v2, 0  ;;  %v2186_v17 = vadd.f32 %v2178_v47, %v2163_v56  ;;  %v1032_v2 = vmul.f32 %v4535_v6, %v4299_v62  ;;  %v1080_v41 = vpop.permute.xlu2 %1079  ;;  %v4648_v53 = vpop.permute.xlu1 %1823 }
 0x1bd   : > { %v2188_v3 = vadd.f32 %v2180_v0, %v2165_v52 }
 0x1be   : > { %v2201_v49 = vmul.f32 %v4621_v46, %v4328_v45  ;;  %v2203_v26 = vmul.f32 %v4621_v46, %v4302_v1  ;;  %v1056_v45 = vmul.f32 %v4563_v23, %v4302_v1  ;;  %v1048_v6 = vadd.f32 %v1040_v38, %v1032_v2 }
 0x1bf   : > { %v1060_v38 = vmul.f32 %v4594_v20, %v4263_v24 }
 0x1c0   : > { %v1003_v36 = vpop.f32.mrf.mxu2  ;;  %v1022_v60 = vpop.f32.mrf.mxu3  ;;  %v2209_v0 = vadd.f32 %v2201_v49, %v2186_v17  ;;  %v2211_v62 = vadd.f32 %v2203_v26, %v2188_v3  ;;  %v1064_v23 = vadd.f32 %v1056_v45, %v1048_v6  ;;  %v1036_v3 = vmul.f32 %v4513_v35, %v4274_v34 }
 0x1c1   : > { %v1089_v16 = vmul.f32 %v4507_v28, %v1022_v60  ;;  %v1207_v54 = vpop.f32.mrf.mxu0  ;;  %v1226_v44 = vpop.f32.mrf.mxu1  ;;  %v1088_v1 = vmul.f32 %v4507_v28, %v1003_v36  ;;  %v1044_v28 = vmul.f32 %v4569_v25, %v4272_v33  ;;  %v2184_v35 = vmul.f32 %v4607_v32, %v4272_v33 }
 0x1c2   : > { %v1366_v48 = vmul.f32 %v1352_v15, %v1207_v54  ;;  %v1367_v58 = vmul.f32 %v1352_v15, %v1226_v44  ;;  %3535 = vtanh.f32 %v2209_v0 }
 0x1c3   : > { %v1097_v57 = vadd.f32 %v1089_v16, %v1065_v61  ;;  %3537 = vtanh.f32 %v2211_v62  ;;  %v2154_v16 = vmul.f32 %v4590_v63, %v4253_v19 }
 0x1c4   : > { %v4638_v39 = vadd.f32 %v1366_v48, %v1094_v50  ;;  %v4640_v55 = vadd.f32 %v1367_v58, %v1095_v27  ;;  %v2156_v27 = vmul.f32 %v4590_v63, %v4274_v34  ;;  %v4667_v48 = vpop.permute.xlu2 %1827  ;;  %v1052_v58 = vadd.f32 %v1044_v28, %v1036_v3  ;;  %v1360_v17 = vpop.permute.xlu1 %1359 }
 0x1c5   : > { %3021 = vmatmul.msk.bf16.gmra.mxu2 %vm871_vm4, %v4361_v29  ;;  %3023 = vmatmul.msk.bf16.gmra.mxu3 %vm871_vm4, %v4361_v29  ;;  %v1096_v29 = vadd.f32 %v1088_v1, %v1064_v23  ;;  %v2182_v63 = vmul.f32 %v4607_v32, %v4251_v18  ;;  %v2167_v34 = vadd.f32 %v4614_v13, %v2154_v16 }
 0x1c6   : > { %v2169_v25 = vadd.f32 %v4614_v13, %v2156_v27  ;;  %v2207_v13 = vmul.f32 %v4621_v46, %v4263_v24 }
 0x1c7   : > { %v2190_v27 = vadd.f32 %v2182_v63, %v2167_v34 }
 0x1c8   : > { %v1006_v15 = vpop.f32.mrf.mxu2  ;;  %v1025_v50 = vpop.f32.mrf.mxu3  ;;  %v2192_v6 = vadd.f32 %v2184_v35, %v2169_v25 }
 0x1c9   : > { %v1090_v47 = vmul.f32 %v1080_v41, %v1006_v15  ;;  %v1091_v56 = vmul.f32 %v1080_v41, %v1025_v50  ;;  %v1209_v52 = vpop.f32.mrf.mxu0  ;;  %v1228_v60 = vpop.f32.mrf.mxu1 }
 0x1ca   : > { %v1368_v49 = vmul.f32 %v4509_v5, %v1209_v52  ;;  %v1369_v26 = vmul.f32 %v4509_v5, %v1228_v60  ;;  %v1061_v5 = vmul.f32 %v4596_v31, %v4263_v24  ;;  %v1068_v31 = vadd.f32 %v1060_v38, %v1052_v58 }
 0x1cb   : > { %v1098_v36 = vadd.f32 %v1090_v47, %v4578_v12  ;;  %v1099_v61 = vadd.f32 %v1091_v56, %v4580_v59  ;;  %v1084_v12 = vpop.permute.xlu0 %1083  ;;  %v3536_v59 = vpop.eup %3535  ;;  %v2215_v47 = vadd.f32 %v2207_v13, %v2192_v6 }
 0x1cc   : > { %v1376_v54 = vadd.f32 %v1368_v49, %v1096_v29  ;;  %v1377_v44 = vadd.f32 %v1369_v26, %v1097_v57  ;;  %v3538_v19 = vpop.eup %3537  ;;  %v1069_v2 = vadd.f32 %v1061_v5, %v4576_v9  ;;  %v2205_v9 = vmul.f32 %v4621_v46, %v4234_v8  ;;  %v1364_v56 = vpop.permute.xlu2 %1363 }
 0x1cd   : > { %v2225_v18 = vpack.c.bf16 %v3538_v19, %v3536_v59  ;;  %3539 = vtanh.f32 %v2215_v47 }
 0x1ce   : > { %v2213_v29 = vadd.f32 %v2205_v9, %v2190_v27 }
 0x1d0   : > { %v1008_v20 = vpop.f32.mrf.mxu2  ;;  %v1027_v57 = vpop.f32.mrf.mxu3  ;;  %3541 = vtanh.f32 %v2213_v29 }
 0x1d1   : > { %v1092_v45 = vmul.f32 %v1084_v12, %v1008_v20  ;;  %v1093_v0 = vmul.f32 %v1084_v12, %v1027_v57  ;;  %v1212_v41 = vpop.f32.mrf.mxu0  ;;  %v1231_v62 = vpop.f32.mrf.mxu1 }
 0x1d2   : > { %v1370_v1 = vmul.f32 %v1360_v17, %v1212_v41  ;;  %v1371_v23 = vmul.f32 %v1360_v17, %v1231_v62 }
 0x1d3   : > { %v1100_v15 = vadd.f32 %v1092_v45, %v1068_v31  ;;  %v1101_v50 = vadd.f32 %v1093_v0, %v1069_v2  ;;  %v3540_v46 = vpop.eup %3539  ;;  %v1392_v57 = vpop.permute.xlu0 %1391 }
 0x1d4   : > { %v1378_v33 = vadd.f32 %v1370_v1, %v1098_v36  ;;  %v1379_v32 = vadd.f32 %v1371_v23, %v1099_v61 }
 0x1d5   : > { %2303 = vmatmul.bf16.vlgmr.msrb.gmra.mxu3 %v2225_v18 }
 0x1d6   : > { %v3542_v17 = vpop.eup %3541 }
 0x1d7   : > { %v2226_v34 = vpack.c.bf16 %v3540_v46, %v3542_v17 }
 0x1d8   : > { %v1245_v52 = vpop.f32.mrf.mxu2  ;;  %v1264_v60 = vpop.f32.mrf.mxu3 }
 0x1d9   : > { %v1398_v49 = vmul.f32 %v4518_v40, %v1245_v52  ;;  %v1399_v26 = vmul.f32 %v4518_v40, %v1264_v60  ;;  %v1214_v28 = vpop.f32.mrf.mxu0  ;;  %v1233_v16 = vpop.f32.mrf.mxu1 }
 0x1da   : > { %v1372_v3 = vmul.f32 %v1364_v56, %v1214_v28  ;;  %v1373_v38 = vmul.f32 %v1364_v56, %v1233_v16 }
 0x1db   : > { %v1406_v24 = vadd.f32 %v1398_v49, %v4638_v39  ;;  %v1407_v36 = vadd.f32 %v1399_v26, %v4640_v55 }
 0x1dc   : > { %v1380_v61 = vadd.f32 %v1372_v3, %v1100_v15  ;;  %v1381_v8 = vadd.f32 %v1373_v38, %v1101_v50 }
 0x1e0   : > { %v1247_v5 = vpop.f32.mrf.mxu2  ;;  %v1266_v25 = vpop.f32.mrf.mxu3 }
 0x1e1   : > { %v1400_v12 = vmul.f32 %v4520_v42, %v1247_v5  ;;  %v1401_v59 = vmul.f32 %v4520_v42, %v1266_v25  ;;  %v1283_v40 = vpop.f32.mrf.mxu0  ;;  %v1302_v58 = vpop.f32.mrf.mxu1 }
 0x1e2   : > { %v1430_v19 = vmul.f32 %v4539_v11, %v1283_v40  ;;  %v1431_v63 = vmul.f32 %v4539_v11, %v1302_v58  ;;  %v1396_v11 = vpop.permute.xlu1 %1395  ;;  %v3285_v40 = vld [vmem:[#allocation8 + $0x78] sm:$0xff] }
 0x1e3   : > { %v4688_v39 = vadd.f32 %v1400_v12, %v1376_v54  ;;  %v4690_v55 = vadd.f32 %v1401_v59, %v1377_v44  ;;  %v1424_v54 = vpop.permute.xlu2 %1423  ;;  %v3277_v59 = vld [vmem:[#allocation8 + $0x38] sm:$0xff]  ;;  %2031 = vmatpush.bf16.msra.mxu1 %v3285_v40 }
 0x1e4   : > { %v1438_v35 = vadd.f32 %v1430_v19, %v1406_v24  ;;  %v1439_v20 = vadd.f32 %v1431_v63, %v1407_v36  ;;  %2012 = vmatpush.bf16.msra.mxu0 %v3277_v59  ;;  %v3276_v19 = vld [vmem:[#allocation8 + $0x30] sm:$0xff] }
 0x1e5   : > { %2308 = vmatmul.bf16.gmra.mxu3 %v2226_v34 }
 0x1e8   : > { %v1250_v31 = vpop.f32.mrf.mxu2  ;;  %v1269_v2 = vpop.f32.mrf.mxu3  ;;  %2013 = vmatpush.bf16.msra.mxu0 %v3276_v19 }
 0x1e9   : > { %v1402_v45 = vmul.f32 %v1392_v57, %v1250_v31  ;;  %v1403_v42 = vmul.f32 %v1392_v57, %v1269_v2  ;;  %v4692_v0 = vpop.f32.mrf.mxu0  ;;  %v4694_v41 = vpop.f32.mrf.mxu1  ;;  %v3283_v57 = vld [vmem:[#allocation8 + $0x68] sm:$0xff]  ;;  %v3274_v31 = vld [vmem:[#allocation8 + $0x20] sm:$0xff] }
 0x1ea   : > { %v1433_v59 = vmul.f32 %v4598_v21, %v4694_v41 }
 0x1eb   : > { %v1410_v62 = vadd.f32 %v1402_v45, %v1378_v33  ;;  %v1411_v6 = vadd.f32 %v1403_v42, %v1379_v32 }
 0x1f0   : > { %v1252_v1 = vpop.f32.mrf.mxu2  ;;  %v1271_v44 = vpop.f32.mrf.mxu3 }
 0x1f1   : > { %v1404_v23 = vmul.f32 %v1396_v11, %v1252_v1  ;;  %v1405_v15 = vmul.f32 %v1396_v11, %v1271_v44  ;;  %v1288_v50 = vpop.f32.mrf.mxu0  ;;  %v1307_v18 = vpop.f32.mrf.mxu1  ;;  %v3273_v11 = vld [vmem:[#allocation8 + $0x18] sm:$0xff] }
 0x1f2   : > { %v1434_v27 = vmul.f32 %v1424_v54, %v1288_v50  ;;  %v1435_v13 = vmul.f32 %v1424_v54, %v1307_v18  ;;  %v3272_v50 = vld [vmem:[#allocation8 + $0x10] sm:$0xff] }
 0x1f3   : > { %v4696_v9 = vadd.f32 %v1404_v23, %v1380_v61  ;;  %v4698_v47 = vadd.f32 %v1405_v15, %v1381_v8  ;;  %v1456_v61 = vpop.permute.xlu2 %1455  ;;  %v3281_v15 = vld [vmem:[#allocation8 + $0x58] sm:$0xff] }
 0x1f4   : > { %v1442_v56 = vadd.f32 %v1434_v27, %v1410_v62  ;;  %v1443_v52 = vadd.f32 %v1435_v13, %v1411_v6  ;;  %v3282_v6 = vld [vmem:[#allocation8 + $0x60] sm:$0xff]  ;;  %v3280_v13 = vld [vmem:[#allocation8 + $0x50] sm:$0xff] }
 0x1f8   : > { %v1321_v60 = vpop.f32.mrf.mxu2  ;;  %v1340_v29 = vpop.f32.mrf.mxu3 }
 0x1f9   : > { %v1462_v33 = vmul.f32 %v4541_v43, %v1321_v60  ;;  %v1463_v32 = vmul.f32 %v4541_v43, %v1340_v29  ;;  %v4702_v49 = vpop.f32.mrf.mxu0  ;;  %v4704_v26 = vpop.f32.mrf.mxu1  ;;  %v3279_v29 = vld [vmem:[#allocation8 + $0x48] sm:$0xff] }
 0x1fb   : > { %v4706_v28 = vadd.f32 %v1462_v33, %v1438_v35  ;;  %v4708_v16 = vadd.f32 %v1463_v32, %v1439_v20  ;;  %v3284_v35 = vld [vmem:[#allocation8 + $0x70] sm:$0xff]  ;;  %v3275_v20 = vld [vmem:[#allocation8 + $0x28] sm:$0xff]  ;;  %v3270_v33 = vld [vmem:[#allocation8] sm:$0xff]  ;;  %v4742_v32 = vpop.permute.xlu1 %1427  ;;  %v4762_v41 = vpop.permute.xlu2 %1739 }
 0x1fc   : > { %2032 = vmatpush.bf16.msra.mxu1 %v3284_v35  ;;  %2014 = vmatpush.bf16.msra.mxu0 %v3275_v20 }
 0x200   : > { %v4710_v3 = vpop.f32.mrf.mxu2  ;;  %v4712_v38 = vpop.f32.mrf.mxu3  ;;  %2033 = vmatpush.bf16.msra.mxu1 %v3283_v57  ;;  %2015 = vmatpush.bf16.msra.mxu0 %v3274_v31 }
 0x201   : > { %v4714_v24 = vpop.f32.mrf.mxu0  ;;  %v4716_v36 = vpop.f32.mrf.mxu1  ;;  %v1464_v57 = vmul.f32 %v4551_v10, %v4710_v3  ;;  %v1465_v31 = vmul.f32 %v4551_v10, %v4712_v38 }
 0x202   : > { %v1742_v40 = vmul.f32 %v4557_v14, %v4714_v24  ;;  %v1743_v19 = vmul.f32 %v4557_v14, %v4716_v36  ;;  %v1441_v14 = vadd.f32 %v1433_v59, %v4690_v55  ;;  %v3316_v36 = vld [vmem:[#allocation16 + $0x70] sm:$0xff] }
 0x204   : > { %2034 = vmatpush.bf16.msra.mxu1 %v3282_v6  ;;  %2016 = vmatpush.bf16.msra.mxu0 %v3273_v11  ;;  %v1750_v11 = vadd.f32 %v1742_v40, %v4706_v28 }
 0x208   : > { %v1326_v8 = vpop.f32.mrf.mxu2  ;;  %v1345_v46 = vpop.f32.mrf.mxu3  ;;  %2035 = vmatpush.bf16.msra.mxu1 %v3281_v15  ;;  %2017 = vmatpush.bf16.msra.mxu0 %v3272_v50  ;;  %v1751_v15 = vadd.f32 %v1743_v19, %v4708_v16  ;;  %v1473_v50 = vadd.f32 %v1465_v31, %v1441_v14 }
 0x209   : > { %v1466_v43 = vmul.f32 %v1456_v61, %v1326_v8  ;;  %v1467_v5 = vmul.f32 %v1456_v61, %v1345_v46  ;;  %v4722_v58 = vpop.f32.mrf.mxu0  ;;  %v4724_v17 = vpop.f32.mrf.mxu1  ;;  %v3278_v61 = vld [vmem:[#allocation8 + $0x40] sm:$0xff] }
 0x20a   : > { %v1744_v3 = vmul.f32 %v4565_v4, %v4722_v58  ;;  %v1745_v10 = vmul.f32 %v4565_v4, %v4724_v17  ;;  %v1854_v4 = vld [vmem:[%s4925_s3] sm:$0x3] }
 0x20b   : > { %v4718_v25 = vadd.f32 %v1466_v43, %v1442_v56  ;;  %v4720_v12 = vadd.f32 %v1467_v5, %v1443_v52  ;;  %v3271_v56 = vld [vmem:[#allocation8 + $0x8] sm:$0xff]  ;;  %v1432_v5 = vmul.f32 %v4598_v21, %v4692_v0  ;;  %v1736_v0 = vpop.permute.xlu1 %1735  ;;  %v4785_v59 = vperm.slane %v1854_v4, 1 }
 0x20c   : > { %2036 = vmatpush.bf16.msra.mxu1 %v3280_v13  ;;  %2018 = vmatpush.bf16.msra.mxu0 %v3271_v56  ;;  %v3317_v43 = vld [vmem:[#allocation16 + $0x78] sm:$0xff] }
 0x20d   : > { %v1440_v24 = vadd.f32 %v1432_v5, %v4688_v39  ;;  %v3315_v39 = vld [vmem:[#allocation16 + $0x68] sm:$0xff]  ;;  %v4783_v5 = vperm.slane %v1854_v4, 0 }
 0x20f   : > { %v1472_v55 = vadd.f32 %v1464_v57, %v1440_v24 }
 0x210   : > { %v4726_v63 = vpop.f32.mrf.mxu2  ;;  %v4728_v34 = vpop.f32.mrf.mxu3  ;;  %2037 = vmatpush.bf16.msra.mxu1 %v3279_v29  ;;  %2019 = vmatpush.bf16.msra.mxu0 %v3270_v33 }
 0x211   : > { %v4730_v2 = vpop.f32.mrf.mxu0  ;;  %v4732_v45 = vpop.f32.mrf.mxu1 }
 0x214   : > { %2038 = vmatpush.bf16.msra.mxu1 %v3278_v61 }
 0x218   : > { %v1621_v42 = vpop.f32.mrf.mxu2  ;;  %v1640_v62 = vpop.f32.mrf.mxu3  ;;  %2477 = vmatpush.bf16.msrb.mxu1 %v3317_v43 }
 0x219   : > { %v4734_v44 = vpop.f32.mrf.mxu0  ;;  %v4736_v23 = vpop.f32.mrf.mxu1  ;;  %v1774_v6 = vmul.f32 %v4642_v51, %v1621_v42  ;;  %v1775_v21 = vmul.f32 %v4642_v51, %v1640_v62 }
 0x21b   : > { %v1782_v13 = vadd.f32 %v1774_v6, %v1750_v11  ;;  %v1783_v28 = vadd.f32 %v1775_v21, %v1751_v15  ;;  %v1436_v21 = vmul.f32 %v4742_v32, %v4702_v49  ;;  %v3313_v15 = vld [vmem:[#allocation16 + $0x58] sm:$0xff] }
 0x21c   : > { %2478 = vmatpush.bf16.msrb.mxu1 %v3316_v36 }
 0x220   : > { %v1623_v54 = vpop.f32.mrf.mxu2  ;;  %v1642_v1 = vpop.f32.mrf.mxu3  ;;  %2479 = vmatpush.bf16.msrb.mxu1 %v3315_v39 }
 0x221   : > { %v1659_v52 = vpop.f32.mrf.mxu0  ;;  %v1678_v60 = vpop.f32.mrf.mxu1  ;;  %v1776_v16 = vmul.f32 %v4567_v7, %v1623_v54  ;;  %v1777_v56 = vmul.f32 %v4567_v7, %v1642_v1  ;;  %v3314_v54 = vld [vmem:[#allocation16 + $0x60] sm:$0xff] }
 0x222   : > { %v1806_v51 = vmul.f32 %v4603_v30, %v1659_v52  ;;  %v1807_v62 = vmul.f32 %v4603_v30, %v1678_v60  ;;  %v1752_v52 = vadd.f32 %v1744_v3, %v1472_v55  ;;  %v1753_v30 = vadd.f32 %v1745_v10, %v1473_v50  ;;  %v1460_v60 = vpop.permute.xlu0 %1459  ;;  %v1768_v7 = vpop.permute.xlu1 %1767 }
 0x223   : > { %v1772_v1 = vpop.permute.xlu2 %1771  ;;  %v1468_v3 = vmul.f32 %v1460_v60, %v4726_v63  ;;  %v3312_v63 = vld [vmem:[#allocation16 + $0x50] sm:$0xff]  ;;  %v1469_v55 = vmul.f32 %v1460_v60, %v4728_v34  ;;  %v1749_v34 = vmul.f32 %v4762_v41, %v4736_v23 }
 0x224   : > { %v1814_v29 = vadd.f32 %v1806_v51, %v1782_v13  ;;  %v1815_v33 = vadd.f32 %v1807_v62, %v1783_v28  ;;  %v1784_v40 = vadd.f32 %v1776_v16, %v1752_v52  ;;  %v1785_v19 = vadd.f32 %v1777_v56, %v1753_v30  ;;  %2480 = vmatpush.bf16.msrb.mxu1 %v3314_v54 }
 0x225   : > { %v1747_v51 = vmul.f32 %v1736_v0, %v4732_v45 }
 0x227   : > { %v1755_v4 = vadd.f32 %v1747_v51, %v4720_v12 }
 0x228   : > { %v4738_v18 = vpop.f32.mrf.mxu2  ;;  %v4740_v27 = vpop.f32.mrf.mxu3  ;;  %2481 = vmatpush.bf16.msrb.mxu1 %v3313_v15 }
 0x229   : > { %v1661_v35 = vpop.f32.mrf.mxu0  ;;  %v1680_v20 = vpop.f32.mrf.mxu1  ;;  %v1778_v13 = vmul.f32 %v1768_v7, %v4738_v18  ;;  %v1779_v28 = vmul.f32 %v1768_v7, %v4740_v27 }
 0x22a   : > { %v1808_v61 = vmul.f32 %v4605_v22, %v1661_v35  ;;  %v1809_v43 = vmul.f32 %v4605_v22, %v1680_v20  ;;  %v1437_v22 = vmul.f32 %v4742_v32, %v4704_v26  ;;  %v1444_v26 = vadd.f32 %v1436_v21, %v4696_v9  ;;  %v1800_v9 = vpop.permute.xlu0 %1799  ;;  %v1804_v16 = vpop.permute.xlu1 %1803  ;;  %v3310_v21 = vld [vmem:[#allocation16 + $0x40] sm:$0xff] }
 0x22b   : > { %v1746_v32 = vmul.f32 %v1736_v0, %v4730_v2  ;;  %v1787_v54 = vadd.f32 %v1779_v28, %v1755_v4  ;;  %v3290_v28 = vld [vmem:[#allocation11 + $0x20] sm:$0xff] }
 0x22c   : > { %v1816_v24 = vadd.f32 %v1808_v61, %v1784_v40  ;;  %v1817_v14 = vadd.f32 %v1809_v43, %v1785_v19  ;;  %v1445_v62 = vadd.f32 %v1437_v22, %v4698_v47  ;;  %v1476_v50 = vadd.f32 %v1468_v3, %v1444_v26  ;;  %v1832_v47 = vpop.permute.xlu2 %1831  ;;  %2482 = vmatpush.bf16.msrb.mxu1 %v3312_v63 }
 0x22e   : > { %v1477_v61 = vadd.f32 %v1469_v55, %v1445_v62  ;;  %v3293_v55 = vld [vmem:[#allocation11 + $0x38] sm:$0xff] }
 0x22f   : > { %2124 = vmatpush.bf16.msrb.mxu2 %v3293_v55 }
 0x230   : > { %v4744_v8 = vpop.f32.mrf.mxu2  ;;  %v4746_v46 = vpop.f32.mrf.mxu3 }
 0x231   : > { %v1683_v57 = vpop.f32.mrf.mxu1 }
 0x232   : > { %v1811_v30 = vmul.f32 %v1800_v9, %v1683_v57  ;;  %v1836_v22 = vpop.permute.xlu1 %1835 }
 0x234   : > { %v1819_v57 = vadd.f32 %v1811_v30, %v1787_v54 }
 0x238   : > { %v1697_v38 = vpop.f32.mrf.mxu2  ;;  %v1716_v42 = vpop.f32.mrf.mxu3 }
 0x239   : > { %v1838_v58 = vmul.f32 %v4648_v53, %v1697_v38  ;;  %v1839_v17 = vmul.f32 %v4648_v53, %v1716_v42  ;;  %v1664_v53 = vpop.f32.mrf.mxu0  ;;  %v1685_v7 = vpop.f32.mrf.mxu1 }
 0x23a   : > { %v1810_v27 = vmul.f32 %v1800_v9, %v1664_v53  ;;  %v3288_v9 = vld [vmem:[#allocation11 + $0x10] sm:$0xff] }
 0x23b   : > { %v1846_v31 = vadd.f32 %v1838_v58, %v1814_v29  ;;  %v1847_v6 = vadd.f32 %v1839_v17, %v1815_v33  ;;  %v1754_v58 = vadd.f32 %v1746_v32, %v4718_v25  ;;  %v1748_v17 = vmul.f32 %v4762_v41, %v4734_v44  ;;  %v3311_v33 = vld [vmem:[#allocation16 + $0x48] sm:$0xff] }
 0x23c   : > { %v1780_v25 = vmul.f32 %v1772_v1, %v4744_v8  ;;  %v1781_v44 = vmul.f32 %v1772_v1, %v4746_v46  ;;  %v1757_v41 = vadd.f32 %v1749_v34, %v1477_v61  ;;  %2483 = vmatpush.bf16.msrb.mxu1 %v3311_v33  ;;  %v3309_v61 = vld [vmem:[#allocation16 + $0x38] sm:$0xff] }
 0x23d   : > { %v1860_v10 = vadd.f32 %v4783_v5, %v1846_v31  ;;  %v1861_v38 = vadd.f32 %v4785_v59, %v1847_v6  ;;  %v1786_v43 = vadd.f32 %v1778_v13, %v1754_v58  ;;  %v1756_v23 = vadd.f32 %v1748_v17, %v1476_v50  ;;  %v3292_v50 = vld [vmem:[#allocation11 + $0x30] sm:$0xff]  ;;  %v3291_v13 = vld [vmem:[#allocation11 + $0x28] sm:$0xff]  ;;  %2458 = vmatpush.bf16.msrb.mxu0 %v3309_v61 }
 0x23e   : > { %v1813_v6 = vmul.f32 %v1804_v16, %v1685_v7  ;;  %2125 = vmatpush.bf16.msrb.mxu2 %v3292_v50 }
 0x23f   : > { %v1868_v2 = vmax.f32 %v1860_v10, 0.0  ;;  %v1869_v56 = vmax.f32 %v1861_v38, 0.0  ;;  %v1818_v53 = vadd.f32 %v1810_v27, %v1786_v43 }
 0x240   : > { %v1699_v35 = vpop.f32.mrf.mxu2  ;;  %v1718_v20 = vpop.f32.mrf.mxu3  ;;  %2484 = vmatpush.bf16.msrb.mxu1 %v3310_v21 }
 0x241   : > { %v1840_v36 = vmul.f32 %v4667_v48, %v1699_v35  ;;  %v1841_v11 = vmul.f32 %v4667_v48, %v1718_v20  ;;  %v1666_v12 = vpop.f32.mrf.mxu0  ;;  %v1788_v35 = vadd.f32 %v1780_v25, %v1756_v23  ;;  %v1789_v20 = vadd.f32 %v1781_v44, %v1757_v41  ;;  %v3306_v41 = vld [vmem:[#allocation16 + $0x20] sm:$0xff] }
 0x242   : > { %v1812_v31 = vmul.f32 %v1804_v16, %v1666_v12  ;;  %2126 = vmatpush.bf16.msrb.mxu2 %v3291_v13  ;;  %v3287_v16 = vld [vmem:[#allocation11 + $0x8] sm:$0xff]  ;;  %v3308_v12 = vld [vmem:[#allocation16 + $0x30] sm:$0xff] }
 0x243   : > { %v1848_v49 = vadd.f32 %v1840_v36, %v1816_v24  ;;  %v1849_v42 = vadd.f32 %v1841_v11, %v1817_v14  ;;  %v1821_v1 = vadd.f32 %v1813_v6, %v1789_v20  ;;  %2459 = vmatpush.bf16.msrb.mxu0 %v3308_v12  ;;  %v3302_v6 = vld [vmem:[#allocation16] sm:$0xff] }
 0x244   : > { %v1820_v46 = vadd.f32 %v1812_v31, %v1788_v35  ;;  %v3303_v31 = vld [vmem:[#allocation16 + $0x8] sm:$0xff]  ;;  %v3515_v35 = vld [vmem:[%s4933_s11] ss:$0 sm:$0xff] }
 0x245   : > { %v1862_v48 = vadd.f32 %v4783_v5, %v1848_v49  ;;  %v1863_v39 = vadd.f32 %v4785_v59, %v1849_v42  ;;  %v3573_v12 = vld [vmem:[%s4188_s26 + $0x10] sm:$0xff] }
 0x246   : > { %2127 = vmatpush.bf16.msrb.mxu2 %v3290_v28 }
 0x247   : > { %v1870_v45 = vmax.f32 %v1862_v48, 0.0  ;;  %v1871_v0 = vmax.f32 %v1863_v39, 0.0 }
 0x248   : > { %v1702_v18 = vpop.f32.mrf.mxu2  ;;  %v1721_v52 = vpop.f32.mrf.mxu3 }
 0x249   : > { %v1876_v60 = vpack.c.bf16 %v1870_v45, %v1868_v2  ;;  %v1877_v29 = vpack.c.bf16 %v1871_v0, %v1869_v56  ;;  %v1842_v40 = vmul.f32 %v1832_v47, %v1702_v18  ;;  %v1843_v19 = vmul.f32 %v1832_v47, %v1721_v52  ;;  %v3286_v2 = vld [vmem:[#allocation11] sm:$0xff]  ;;  %v3516_v0 = vld [vmem:[#allocation10] ss:$0 sm:$0xff] }
 0x24b   : > { %2020 = vmatmul.bf16.vlgmr.msra.gmra.mxu0 %v1876_v60  ;;  %2039 = vmatmul.bf16.vlgmr.msra.gmra.mxu1 %v1877_v29  ;;  %v1850_v8 = vadd.f32 %v1842_v40, %v1818_v53  ;;  %v1851_v24 = vadd.f32 %v1843_v19, %v1819_v57  ;;  %v3307_v19 = vld [vmem:[#allocation16 + $0x28] sm:$0xff]  ;;  %v3305_v53 = vld [vmem:[#allocation16 + $0x18] sm:$0xff]  ;;  %v3304_v57 = vld [vmem:[#allocation16 + $0x10] sm:$0xff] }
 0x24c   : > { %2460 = vmatpush.bf16.msrb.mxu0 %v3307_v19 }
 0x24d   : > { %v1864_v3 = vadd.f32 %v4783_v5, %v1850_v8  ;;  %v1865_v10 = vadd.f32 %v4785_v59, %v1851_v24 }
 0x24f   : > { %v1872_v32 = vmax.f32 %v1864_v3, 0.0  ;;  %v1873_v51 = vmax.f32 %v1865_v10, 0.0 }
 0x250   : > { %v1704_v14 = vpop.f32.mrf.mxu2  ;;  %v1723_v36 = vpop.f32.mrf.mxu3  ;;  %2461 = vmatpush.bf16.msrb.mxu0 %v3306_v41 }
 0x251   : > { %v1844_v11 = vmul.f32 %v1836_v22, %v1704_v14  ;;  %v1845_v15 = vmul.f32 %v1836_v22, %v1723_v36  ;;  %v3517_v36 = vld [vmem:[%s4929_s7] ss:$0 sm:$0xff] }
 0x253   : > { %v1852_v38 = vadd.f32 %v1844_v11, %v1820_v46  ;;  %v1853_v49 = vadd.f32 %v1845_v15, %v1821_v1 }
 0x254   : > { %2462 = vmatpush.bf16.msrb.mxu0 %v3305_v53 }
 0x255   : > { %v1866_v42 = vadd.f32 %v4783_v5, %v1852_v38  ;;  %v1867_v26 = vadd.f32 %v4785_v59, %v1853_v49  ;;  %v4962_v5 = vld [vmem:[#allocation24_spill] sm:$0xff]  ;;  %v3289_v59 = vld [vmem:[#allocation11 + $0x18] sm:$0xff] }
 0x256   : > { %2128 = vmatpush.bf16.msrb.mxu2 %v3289_v59 }
 0x257   : > { %v1874_v62 = vmax.f32 %v1866_v42, 0.0  ;;  %v1875_v48 = vmax.f32 %v1867_v26, 0.0 }
 0x258   : > { %2463 = vmatpush.bf16.msrb.mxu0 %v3304_v57  ;;  %v2304_v21 = vpop.f32.mrf.mxu3 }
 0x259   : > { %v1878_v39 = vpack.c.bf16 %v1874_v62, %v1872_v32  ;;  %v1879_v63 = vpack.c.bf16 %v1875_v48, %v1873_v51  ;;  %v2305_v20 = vadd.f32 %v3515_v35, %v2304_v21 }
 0x25a   : > { %2129 = vmatpush.bf16.msrb.mxu2 %v3288_v9 }
 0x25b   : > { %2025 = vmatmul.bf16.gmra.mxu0 %v1878_v39  ;;  %2044 = vmatmul.bf16.gmra.mxu1 %v1879_v63  ;;  %3543 = vtanh.f32 %v2305_v20 }
 0x25c   : > { %2464 = vmatpush.bf16.msrb.mxu0 %v3303_v31  ;;  %v3574_v31 = vld [vmem:[%s4188_s26 + $0x18] sm:$0xff] }
 0x25e   : > { %2130 = vmatpush.bf16.msrb.mxu2 %v3287_v16  ;;  %v3518_v16 = vld [vmem:[%s4963_s8] ss:$0 sm:$0xff] }
 0x260   : > { %2465 = vmatpush.bf16.msrb.mxu0 %v3302_v6  ;;  %v2306_v22 = vpop.f32.mrf.mxu3 }
 0x261   : > { %v2307_v8 = vadd.f32 %v3515_v35, %v2306_v22  ;;  %v3544_v11 = vpop.eup %3543 }
 0x262   : > { %2131 = vmatpush.bf16.msrb.mxu2 %v3286_v2 }
 0x263   : > { %3545 = vtanh.f32 %v2307_v8 }
 0x268   : > { %v2309_v14 = vpop.f32.mrf.mxu3 }
 0x269   : > { %v3546_v3 = vpop.eup %3545  ;;  %v2310_v26 = vadd.f32 %v3515_v35, %v2309_v14 }
 0x26b   : > { %2485 = vmatmul.bf16.vlgmr.msrb.gmra.mxu1 %v4348_v37  ;;  %3547 = vtanh.f32 %v2310_v26 }
 0x270   : > { %v2311_v49 = vpop.f32.mrf.mxu3 }
 0x271   : > { %v2312_v32 = vadd.f32 %v3515_v35, %v2311_v49  ;;  %v3548_v39 = vpop.eup %3547 }
 0x273   : > { %3549 = vtanh.f32 %v2312_v32 }
 0x279   : > { %v3550_v55 = vpop.eup %3549 }
 0x27b   : > { %2490 = vmatmul.bf16.gmra.mxu1 %v4962_v5  ;;  %v2496_v5 = vlaneseq }
 0x27d   : > { %v2497_v59 = vand.u32 127, %v2496_v5 }
 0x27f   : > { %vm2498_vm9 = vcmp.lt.s32.totalorder %v2497_v59, 8  ;;  %vm2507_vm10 = vcmp.ge.s32.totalorder %v2497_v59, 3  ;;  %vm2508_vm11 = vcmp.lt.s32.totalorder %v2497_v59, 7 }
 0x280   : > { %vm4832_vm12 = vmand %vm2507_vm10, %vm2508_vm11  ;;  %v2502_v6 = vsel %vm2498_vm9, %v3574_v31, 0.0 }
 0x2c8   : > { %v2021_v56 = vpop.f32.mrf.mxu0  ;;  %v2040_v45 = vpop.f32.mrf.mxu1 }
 0x2c9   : > { %v2022_v47 = vadd.f32 %v3516_v0, %v2021_v56 }
 0x2cb   : > { %v2041_v17 = vadd.f32 %v2040_v45, %v2022_v47  ;;  %v3571_v45 = vld [vmem:[%s4188_s26] sm:$0xff] }
 0x2cd   : > { %v2050_v37 = vmax.f32 %v2041_v17, 0.0 }
 0x2d0   : > { %v2023_v58 = vpop.f32.mrf.mxu0  ;;  %v2042_v4 = vpop.f32.mrf.mxu1 }
 0x2d1   : > { %v2024_v34 = vadd.f32 %v3516_v0, %v2023_v58 }
 0x2d3   : > { %v2043_v18 = vadd.f32 %v2042_v4, %v2024_v34 }
 0x2d5   : > { %v2051_v52 = vmax.f32 %v2043_v18, 0.0 }
 0x2d7   : > { %v2054_v27 = vpack.c.bf16 %v2051_v52, %v2050_v37 }
 0x2d8   : > { %v2026_v30 = vpop.f32.mrf.mxu0  ;;  %v2045_v60 = vpop.f32.mrf.mxu1 }
 0x2d9   : > { %2132 = vmatmul.bf16.vlgmr.msrb.gmra.mxu2 %v2054_v27  ;;  %v2027_v29 = vadd.f32 %v3516_v0, %v2026_v30  ;;  %v3572_v27 = vld [vmem:[%s4188_s26 + $0x8] sm:$0xff]  ;;  %s4870_s26 = scalar_lea.vmem [#allocation17], %s2774_s5  ;;  %s3318_s5 = sshll.u32 %s4056_s20, 5 }
 0x2da   : > { %v2500_v30 = vsel %vm2498_vm9, %v3572_v27, 0.0  ;;  %s2606_s14 = scalar_lea.hbm %s4966_s10, %s3318_s5  ;;  %s2607_s28 = sshll.u32 %s4870_s26, 4  ;;  %s2608_s28 = int_to_ptr.vmem [resolvable:$true] %s2607_s28 }
 0x2db   : > { %v2046_v43 = vadd.f32 %v2045_v60, %v2027_v29  ;;  %s2609_s23 = sshll.u32 %s2606_s14, 4  ;;  %s2595_s20 = scalar_lea.sflag [#allocation4], %s4182_s2  ;;  %s2610_s23 = int_to_ptr.hbm [resolvable:$true] %s2609_s23 }
 0x2dc   : > { %s3859_s4 = sshra.s32 %s2610_s23, 4  ;;  %s3860_s4 = int_to_ptr.hbm [resolvable:$true] %s3859_s4 }
 0x2dd   : > { %v2052_v44 = vmax.f32 %v2046_v43, 0.0  ;;  %s3861_s6 = scalar_lea.hbm %s3860_s4, 32  ;;  %p3866_p12 = scmp.lt.s32.totalorder %s3860_s4, %s4966_s10 }
 0x2de   : > { %p3862_p1 = scmp.ne.s32.totalorder %s3860_s4, %s3861_s6  ;;  %p3867_p7 = scmp.lt.s32.totalorder %s3865_s22, %s3861_s6 }
 0x2e0   : > { %v2028_v33 = vpop.f32.mrf.mxu0  ;;  %v2047_v25 = vpop.f32.mrf.mxu1  ;;  %p3863_p3 = pnand %p3862_p1, %p4151_p5  ;;  %p3868_p8 = por %p3867_p7, %p3866_p12 }
 0x2e1   : > { %v2029_v54 = vadd.f32 %v3516_v0, %v2028_v33  ;;  %v2499_v0 = vsel %vm2498_vm9, %v3571_v45, 0.0 }
 0x2e2   : > { %p3864_p4 = pneg %p3863_p3 }
 0x2e3   : > { %v2048_v7 = vadd.f32 %v2047_v25, %v2029_v54 }
 0x2e4   : > { %p3869_p9 = pnand %p3868_p8, %p3864_p4 }
 0x2e5   : > { %v2053_v40 = vmax.f32 %v2048_v7, 0.0  ;;  %v2501_v7 = vsel %vm2498_vm9, %v3573_v12, 0.0 }
 0x2e7   : > { %v2055_v23 = vpack.c.bf16 %v2053_v40, %v2052_v44 }
 0x2e8   : > { %v2486_v9 = vpop.f32.mrf.mxu1 }
 0x2e9   : > { %2137 = vmatmul.bf16.gmra.mxu2 %v2055_v23 }
 0x2f0   : > { %v2488_v4 = vpop.f32.mrf.mxu1 }
 0x2f8   : > { %v2491_v61 = vpop.f32.mrf.mxu1 }
 0x300   : > { %v2493_v57 = vpop.f32.mrf.mxu1 }
 0x35c   : > { %v2133_v24 = vpop.f32.mrf.mxu2 }
 0x35d   : > { %v2134_v46 = vadd.f32 %v3517_v36, %v2133_v24 }
 0x35f   : > { %v2318_v10 = vmul.f32 %v3544_v11, %v2134_v46 }
 0x364   : > { %v2135_v1 = vpop.f32.mrf.mxu2 }
 0x365   : > { %v2136_v15 = vadd.f32 %v3517_v36, %v2135_v1 }
 0x367   : > { %v2319_v38 = vmul.f32 %v3546_v3, %v2136_v15 }
 0x369   : > { %v2322_v42 = vpack.c.bf16 %v2319_v38, %v2318_v10 }
 0x36b   : > { %2466 = vmatmul.bf16.vlgmr.msrb.gmra.mxu0 %v2322_v42 }
 0x36c   : > { %v2138_v51 = vpop.f32.mrf.mxu2 }
 0x36d   : > { %v2139_v62 = vadd.f32 %v3517_v36, %v2138_v51 }
 0x36f   : > { %v2320_v50 = vmul.f32 %v3548_v39, %v2139_v62 }
 0x374   : > { %v2140_v48 = vpop.f32.mrf.mxu2 }
 0x375   : > { %v2141_v63 = vadd.f32 %v3517_v36, %v2140_v48 }
 0x377   : > { %v2321_v13 = vmul.f32 %v3550_v55, %v2141_v63 }
 0x379   : > { %v2324_v28 = vpack.c.bf16 %v2321_v13, %v2320_v50 }
 0x37b   : > { %2471 = vmatmul.bf16.gmra.mxu0 %v2324_v28 }
 0x3e8   : > { %v2467_v2 = vpop.f32.mrf.mxu0 }
 0x3e9   : > { %v2468_v56 = vadd.f32 %v3518_v16, %v2467_v2 }
 0x3eb   : > { %v2487_v47 = vadd.f32 %v2486_v9, %v2468_v56 }
 0x3ed   : > { %v4830_v58 = vadd.f32 %v2499_v0, %v2487_v47 }
 0x3ef   : > { %v2510_v34 = vmul.f32 %v4830_v58, %v4830_v58 }
 0x3f0   : > { %v2469_v18 = vpop.f32.mrf.mxu0 }
 0x3f1   : > { %v2470_v37 = vadd.f32 %v3518_v16, %v2469_v18  ;;  %v2514_v52 = vsel %vm4832_vm12, %v2510_v34, 0.0 }
 0x3f2   : > { %2518 = vadd.xlane.f32.xlu2 %v2514_v52 }
 0x3f3   : > { %v2489_v60 = vadd.f32 %v2488_v4, %v2470_v37 }
 0x3f5   : > { %v4842_v29 = vadd.f32 %v2500_v30, %v2489_v60 }
 0x3f7   : > { %v2511_v33 = vmul.f32 %v4842_v29, %v4842_v29 }
 0x3f8   : > { %v2472_v43 = vpop.f32.mrf.mxu0 }
 0x3f9   : > { %v2473_v54 = vadd.f32 %v3518_v16, %v2472_v43  ;;  %v2515_v25 = vsel %vm4832_vm12, %v2511_v33, 0.0 }
 0x3fa   : > { %2520 = vadd.xlane.f32.xlu0 %v2515_v25 }
 0x3fb   : > { %v2492_v44 = vadd.f32 %v2491_v61, %v2473_v54 }
 0x3fd   : > { %v4850_v40 = vadd.f32 %v2501_v7, %v2492_v44 }
 0x3ff   : > { %v2512_v19 = vmul.f32 %v4850_v40, %v4850_v40 }
 0x400   : > { %v2474_v23 = vpop.f32.mrf.mxu0 }
 0x401   : > { %v2475_v41 = vadd.f32 %v3518_v16, %v2474_v23  ;;  %v2516_v53 = vsel %vm4832_vm12, %v2512_v19, 0.0 }
 0x402   : > { %2522 = vadd.xlane.f32.xlu1 %v2516_v53 }
 0x403   : > { %v2494_v21 = vadd.f32 %v2493_v57, %v2475_v41 }
 0x405   : > { %v4858_v22 = vadd.f32 %v2502_v6, %v2494_v21 }
 0x407   : > { %v2513_v35 = vmul.f32 %v4858_v22, %v4858_v22 }
 0x409   : > { %v2517_v20 = vsel %vm4832_vm12, %v2513_v35, 0.0 }
 0x40a   : > { %2524 = vadd.xlane.f32.xlu2 %v2517_v20 }
 0x465   : > { %v2519_v8 = vpop.xlane.xlu2 %2518 }
 0x466   : > { %3551 = vrsqrt.f32 %v2519_v8  ;;  %vm2533_vm13 = vcmp.eq.f32.partialorder %v2519_v8, inf  ;;  %v2536_v26 = vand.u32 2147483648, %v2519_v8  ;;  %vm2535_vm14 = vcmp.eq.f32.partialorder %v2519_v8, 0.0 }
 0x46c   : > { %v3552_v24 = vpop.eup %3551 }
 0x46d   : > { %v2527_v14 = vmul.f32 %v3552_v24, %v2519_v8  ;;  %v2521_v36 = vpop.xlane.xlu0 %2520 }
 0x46e   : > { %3553 = vrsqrt.f32 %v2521_v36  ;;  %vm2545_vm15 = vcmp.eq.f32.partialorder %v2521_v36, inf  ;;  %v2548_v59 = vand.u32 2147483648, %v2521_v36  ;;  %vm2547_vm0 = vcmp.eq.f32.partialorder %v2521_v36, 0.0 }
 0x46f   : > { %v2528_v46 = vmul.f32 %v3552_v24, %v2527_v14 }
 0x471   : > { %v2529_v1 = vmul.f32 0.5, %v2528_v46 }
 0x473   : > { %v2530_v11 = vsub.f32 1.5, %v2529_v1 }
 0x474   : > { %v3554_v15 = vpop.eup %3553 }
 0x475   : > { %v2531_v3 = vmul.f32 %v3552_v24, %v2530_v11  ;;  %v2539_v10 = vmul.f32 %v3554_v15, %v2521_v36  ;;  %v2523_v38 = vpop.xlane.xlu1 %2522 }
 0x476   : > { %3555 = vrsqrt.f32 %v2523_v38  ;;  %vm2557_vm1 = vcmp.eq.f32.partialorder %v2523_v38, inf  ;;  %v2560_v30 = vand.u32 2147483648, %v2523_v38  ;;  %vm2559_vm2 = vcmp.eq.f32.partialorder %v2523_v38, 0.0 }
 0x477   : > { %v2532_v49 = vmul.f32 %v2531_v3, %v2519_v8  ;;  %v2540_v42 = vmul.f32 %v3554_v15, %v2539_v10 }
 0x479   : > { %v2534_v32 = vsel %vm2533_vm13, %v2519_v8, %v2532_v49  ;;  %v2541_v51 = vmul.f32 0.5, %v2540_v42 }
 0x47a   : > { %v2537_v62 = vsel %vm2535_vm14, %v2536_v26, %v2534_v32 }
 0x47b   : > { %v2574_v48 = vadd.f32 1e-08, %v2537_v62  ;;  %v2542_v39 = vsub.f32 1.5, %v2541_v51 }
 0x47c   : > { %v3556_v63 = vpop.eup %3555 }
 0x47d   : > { %3557 = vrcp.f32 %v2574_v48  ;;  %v2543_v55 = vmul.f32 %v3554_v15, %v2542_v39  ;;  %v2551_v50 = vmul.f32 %v3556_v63, %v2523_v38  ;;  %v2525_v13 = vpop.xlane.xlu2 %2524 }
 0x47e   : > { %3559 = vrsqrt.f32 %v2525_v13  ;;  %vm2569_vm3 = vcmp.eq.f32.partialorder %v2525_v13, inf  ;;  %v2572_v19 = vand.u32 2147483648, %v2525_v13  ;;  %vm2571_vm4 = vcmp.eq.f32.partialorder %v2525_v13, 0.0 }
 0x47f   : > { %v2544_v28 = vmul.f32 %v2543_v55, %v2521_v36  ;;  %v2552_v5 = vmul.f32 %v3556_v63, %v2551_v50 }
 0x481   : > { %v2546_v9 = vsel %vm2545_vm15, %v2521_v36, %v2544_v28  ;;  %v2553_v16 = vmul.f32 0.5, %v2552_v5 }
 0x482   : > { %v2549_v2 = vsel %vm2547_vm0, %v2548_v59, %v2546_v9 }
 0x483   : > { %v3558_v56 = vpop.eup %3557  ;;  %v2575_v45 = vadd.f32 1e-08, %v2549_v2  ;;  %v2554_v0 = vsub.f32 1.5, %v2553_v16 }
 0x484   : > { %v3560_v47 = vpop.eup %3559  ;;  %v2582_v4 = vmul.f32 %v3558_v56, %v4830_v58 }
 0x485   : > { %3561 = vrcp.f32 %v2575_v45  ;;  %v2555_v34 = vmul.f32 %v3556_v63, %v2554_v0  ;;  %v2563_v18 = vmul.f32 %v3560_v47, %v2525_v13 }
 0x486   : > { %v2586_v37 = vsel %vm4832_vm12, %v2582_v4, %v4830_v58 }
 0x487   : > { %v2556_v52 = vmul.f32 %v2555_v34, %v2523_v38  ;;  %v2564_v27 = vmul.f32 %v3560_v47, %v2563_v18  ;;  %2590 = vst [vmem:[%s4870_s26] sm:$0xff] %v2586_v37 }
 0x489   : > { %v2558_v60 = vsel %vm2557_vm1, %v2523_v38, %v2556_v52  ;;  %v2565_v33 = vmul.f32 0.5, %v2564_v27 }
 0x48a   : > { %v2561_v61 = vsel %vm2559_vm2, %v2560_v30, %v2558_v60 }
 0x48b   : > { %v3562_v43 = vpop.eup %3561  ;;  %v2576_v54 = vadd.f32 1e-08, %v2561_v61  ;;  %v2566_v25 = vsub.f32 1.5, %v2565_v33 }
 0x48c   : > { %v2583_v58 = vmul.f32 %v3562_v43, %v4842_v29 }
 0x48d   : > { %3563 = vrcp.f32 %v2576_v54  ;;  %v2567_v12 = vmul.f32 %v3560_v47, %v2566_v25 }
 0x48e   : > { %v2587_v7 = vsel %vm4832_vm12, %v2583_v58, %v4842_v29 }
 0x48f   : > { %v2568_v44 = vmul.f32 %v2567_v12, %v2525_v13  ;;  %2591 = vst [vmem:[%s4870_s26 + $0x8] sm:$0xff] %v2587_v7 }
 0x491   : > { %v2570_v23 = vsel %vm2569_vm3, %v2525_v13, %v2568_v44 }
 0x492   : > { %v2573_v41 = vsel %vm2571_vm4, %v2572_v19, %v2570_v23 }
 0x493   : > { %v3564_v53 = vpop.eup %3563  ;;  %v2577_v57 = vadd.f32 1e-08, %v2573_v41 }
 0x494   : > { %v2584_v31 = vmul.f32 %v3564_v53, %v4850_v40 }
 0x495   : > { %3565 = vrcp.f32 %v2577_v57 }
 0x496   : > { %v2588_v29 = vsel %vm4832_vm12, %v2584_v31, %v4850_v40 }
 0x497   : > { %2592 = vst [vmem:[%s4870_s26 + $0x10] sm:$0xff] %v2588_v29 }
 0x49b   : > { %v3566_v6 = vpop.eup %3565 }
 0x49c   : > { %v2585_v21 = vmul.f32 %v3566_v6, %v4858_v22 }
 0x49e   : > { %v2589_v35 = vsel %vm4832_vm12, %v2585_v21, %v4858_v22 }
 0x49f   : > { %2593 = vst [vmem:[%s4870_s26 + $0x18] sm:$0xff] %v2589_v35 }
 0x4a0   : > { %3872 = shalt.err (!%p3869_p9)
}
 0x4a1   : > { %s3955_s2 = smov 128   ;;  %s3956_s26 = smov 8  }
 0x4a2   : > { %3357 = dma.vmem_to_hbm [thread:$0]  (%p4151_p5), %s2608_s28, 512, %s2610_s23, %s2595_s20, %s3955_s2, %s3955_s2, %s3956_s26  }
 0x4a3 PF: > { %s2624_s5 = sand.u32 1, %s3915_s29   ;;  %p4967_p10 = scmp.ge.s32.totalorder %s3927_s16, 2 }
 0x4a4   : > { %s2625_s21 = scalar_lea.sflag [#allocation4], %s2624_s5 }
 0x4a5   : > { %p3389_p13 = pnand %p4967_p10, %p4155_p6 }
 0x4a7   : > { %p3390_p11 = pneg %p3389_p13 }
 0x4a9   : > { %3910 = dma.done.wait (%p3390_p11), %s2625_s21, 512  }
 0x4aa   : > { %3912 = vsyncadd (%p3390_p11), %s2625_s21, 4294966784  ;;  %p31_p0 = scmp.ge.s32.totalorder %s4125_s1, 4   ;;  %s4968_s29 = smov %s3919_s30 }
 0x4ab   : > { %s4969_s30 = smov %s3923_s15  ;;  %s4970_s15 = smov %s4136_s17 }
 0x4ac   : > { %s4971_s16 = smov %s4125_s1  ;;  %33 = sbr.rel (!%p31_p0) target bundleno = 19 (0x13), region = 155 }
 0x4b1   :  { %2631 = vsyncpa [#allocation3], 1 }
 0x4b2   :  { %2633 = vsyncpa [#allocation3 + $0x1], 1 }
 0x4b3   :  { %2634 = vsyncpa [#allocation6], 1 }
 0x4b4   :  { %2635 = vsyncpa [#allocation9], 1 }
 0x4b5   :  { %2636 = vsyncpa [#allocation12], 1 }
 0x4b6   :  { %2637 = vsyncpa [#allocation15], 1 }
 0x4b7   :  { %2638 = vsyncpa [#allocation4], 1 }
 0x4b8   :  { %2640 = vsyncpa [#allocation4 + $0x1], 1 }

// kernel: tpu_custom_call.1
= control target key start
LH: loop header
LB: loop body
LE: loop exit
PB: predicated region body
PF: predicated region fallthrough
CT: control target
= control target key end

     0   :  { %s4922_s0 = inlined_call_operand.hbm [shape: f32[64,128], index: 0, kind: input, shape index: {}]   ;;  %s4923_s1 = inlined_call_operand.hbm [shape: f32[3,32], index: 1, kind: input, shape index: {}]   ;;  %s4924_s2 = inlined_call_operand.hbm [shape: bf16[32,3072], index: 2, kind: input, shape index: {}]   ;;  %s4925_s3 = inlined_call_operand.vmem [shape: f32[1,256], index: 3, kind: input, shape index: {}]   ;;  %s4926_s4 = inlined_call_operand.hbm [shape: bf16[256,128], index: 4, kind: input, shape index: {}]   ;;  %s4927_s5 = inlined_call_operand.hbm [shape: f32[1,128], index: 5, kind: input, shape index: {}]   ;;  %s4928_s6 = inlined_call_operand.hbm [shape: bf16[128,128], index: 6, kind: input, shape index: {}]   ;;  %s4929_s7 = inlined_call_operand.vmem [shape: f32[1,128], index: 7, kind: input, shape index: {}]   ;;  %s4930_s8 = inlined_call_operand.hbm [shape: f32[3,256], index: 8, kind: input, shape index: {}]   ;;  %s4931_s9 = inlined_call_operand.vmem [shape: f32[1,256], index: 9, kind: input, shape index: {}]   ;;  %s4932_s10 = inlined_call_operand.hbm [shape: bf16[128,128], index: 10, kind: input, shape index: {}]   ;;  %s4933_s11 = inlined_call_operand.vmem [shape: f32[1,128], index: 11, kind: input, shape index: {}]   ;;  %s4934_s12 = inlined_call_operand.hbm [shape: bf16[256,128], index: 12, kind: input, shape index: {}]   ;;  %s4935_s13 = inlined_call_operand.vmem [shape: f32[1,128], index: 13, kind: input, shape index: {}]   ;;  %s4936_s14 = inlined_call_operand.hbm [shape: f32[64,128], index: 14, kind: output, shape index: {}]  }
   0x1   :  { %4938 = sst [smem:[#allocation25_spill]] %s4923_s1 }
   0x2   :  { %4939 = sst [smem:[#allocation26_spill]] %s4924_s2 }
   0x3   :  { %4940 = sst [smem:[#allocation27_spill]] %s4926_s4 }
   0x4   :  { %4941 = sst [smem:[#allocation28_spill]] %s4927_s5 }
   0x5   :  { %4942 = sst [smem:[#allocation29_spill]] %s4928_s6 }
   0x6   :  { %4943 = sst [smem:[#allocation30_spill]] %s4930_s8 }
   0x7   :  { %4944 = sst [smem:[#allocation31_spill]] %s4932_s10 }
   0x8   :  { %4945 = sst [smem:[#allocation32_spill]] %s4935_s13 }
   0x9   :  { %4946 = sst [smem:[#allocation33_spill]] %s4936_s14 }
   0xa   :  { %19 = vsyncpa [#allocation3], 0 }
   0xb   :  { %21 = vsyncpa [#allocation3 + $0x1], 0 }
   0xc   :  { %22 = vsyncpa [#allocation6], 0 }
   0xd   :  { %23 = vsyncpa [#allocation9], 0 }
   0xe   :  { %24 = vsyncpa [#allocation12], 0 }
   0xf   :  { %25 = vsyncpa [#allocation15], 0 }
  0x10   :  { %26 = vsyncpa [#allocation4], 0 }
  0x11   :  { %28 = vsyncpa [#allocation4 + $0x1], 0  ;;  %s4032_s29 = smov 0   ;;  %s4034_s30 = smov 0  }
  0x12   :  { %s4036_s15 = smov 0   ;;  %s4038_s16 = smov 0  }
  0x13 LB: > { %s4947_s1 = sld [smem:[#allocation25_spill]]  ;;  %s4056_s20 = sadd.s32 4294967295, %s3927_s16   ;;  %s3927_s16 = sphi %s4038_s16, %s4971_s16   ;;  %s3923_s15 = sphi %s4036_s15, %s4970_s15   ;;  %s3919_s30 = sphi %s4034_s30, %s4969_s30   ;;  %s3915_s29 = sphi %s4032_s29, %s4968_s29  }
  0x14   : > { %p2760_p0 = scmp.ge.s32.totalorder %s3927_s16, 1  ;;  %p55_p1 = scmp.eq.s32.totalorder %s4056_s20, 0 }
  0x15   : > { %p364_p2 = scmp.lt.s32.totalorder %s3927_s16, 3  ;;  %s3929_s22 = smov [#allocation5]  }
  0x16   : > { %s378_s23 = sshll.u32 %s3929_s22, 4  ;;  %s4949_s4 = sld [smem:[#allocation27_spill]]  ;;  %s379_s23 = int_to_ptr.vmem [resolvable:$true] %s378_s23 }
  0x17   : > { %p4061_p3 = pnand %p2760_p0, %p364_p2  ;;  %s3930_s28 = smov [#allocation8]  }
  0x18   : > { %s406_s17 = sshll.u32 %s3930_s28, 4  ;;  %s3931_s18 = smov 64   ;;  %s407_s17 = int_to_ptr.vmem [resolvable:$true] %s406_s17 }
  0x19   : > { %s376_s19 = sshll.u32 %s4947_s1, 4  ;;  %p3359_p5 = pneg %p4061_p3  ;;  %s377_s19 = int_to_ptr.hbm [resolvable:$true] %s376_s19 }
  0x1a   : > { %s3932_s22 = smov 4   ;;  %s4951_s6 = sld [smem:[#allocation29_spill]] }
  0x1b   : > { %p4073_p6 = pnand %p3359_p5, %p55_p1  ;;  %s4952_s10 = sld [smem:[#allocation31_spill]] }
  0x1c   : > { %s404_s26 = sshll.u32 %s4949_s4, 4  ;;  %s3933_s4 = smov [#allocation11]   ;;  %s405_s26 = int_to_ptr.hbm [resolvable:$true] %s404_s26 }
  0x1d   : > { %3362 = dma.hbm_to_vmem [thread:$0]  (!%p4073_p6), %s377_s19, 64, %s379_s23, [#allocation6]  }
  0x1e   : > { %3368 = dma.hbm_to_vmem [thread:$0]  (!%p4073_p6), %s405_s26, 2048, %s407_s17, [#allocation9], %s3931_s18, %s3931_s18, %s3932_s22  }
  0x1f   : > { %s432_s14 = sshll.u32 %s3933_s4, 4  ;;  %s3934_s23 = smov [#allocation14]   ;;  %s433_s14 = int_to_ptr.vmem [resolvable:$true] %s432_s14 }
  0x20   : > { %s430_s1 = sshll.u32 %s4951_s6, 4  ;;  %s464_s26 = sshll.u32 %s3934_s23, 4  ;;  %s431_s1 = int_to_ptr.hbm [resolvable:$true] %s430_s1  ;;  %s465_s26 = int_to_ptr.vmem [resolvable:$true] %s464_s26 }
  0x21   : > { %s462_s19 = sshll.u32 %s4952_s10, 4  ;;  %s4953_s2 = sld [smem:[#allocation26_spill]]  ;;  %s463_s19 = int_to_ptr.hbm [resolvable:$true] %s462_s19 }
  0x22   : > { %3374 = dma.hbm_to_vmem [thread:$0]  (!%p4073_p6), %s431_s1, 1024, %s433_s14, [#allocation12], %s3931_s18, %s3931_s18, %s3932_s22  }
  0x23   : > { %3380 = dma.hbm_to_vmem [thread:$0]  (!%p4073_p6), %s463_s19, 1024, %s465_s26, [#allocation15], %s3931_s18, %s3931_s18, %s3932_s22  }
  0x24   : > { %s3935_s4 = smov [#allocation7]   ;;  %s4954_s5 = sld [smem:[#allocation28_spill]] }
  0x25   : > { %s389_s13 = sshll.u32 %s3935_s4, 4  ;;  %s3936_s23 = smov 1536   ;;  %s390_s13 = int_to_ptr.vmem [resolvable:$true] %s389_s13 }
  0x26   : > { %s3937_s6 = smov 96   ;;  %s3938_s17 = smov [#allocation10]  }
  0x27   : > { %s387_s25 = sshll.u32 %s4953_s2, 4  ;;  %s421_s24 = sshll.u32 %s3938_s17, 4  ;;  %s388_s25 = int_to_ptr.hbm [resolvable:$true] %s387_s25  ;;  %s422_s24 = int_to_ptr.vmem [resolvable:$true] %s421_s24 }
  0x28   : > { %3365 = dma.hbm_to_vmem [thread:$0]  (!%p4073_p6), %s388_s25, 6144, %s390_s13, [#allocation6], %s3936_s23, %s3936_s23, %s3937_s6  }
  0x29   : > { %s4955_s8 = sld [smem:[#allocation30_spill]]  ;;  %s479_s6 = sshll.u32 %s4934_s12, 4  ;;  %s480_s6 = int_to_ptr.hbm [resolvable:$true] %s479_s6 }
  0x2a   : > { %s419_s14 = sshll.u32 %s4954_s5, 4  ;;  %s3939_s25 = smov [#allocation13]   ;;  %s420_s14 = int_to_ptr.hbm [resolvable:$true] %s419_s14 }
  0x2b   : > { %3371 = dma.hbm_to_vmem [thread:$0]  (!%p4073_p6), %s420_s14, 16, %s422_s24, [#allocation9]  }
  0x2c   : > { %s450_s13 = sshll.u32 %s3939_s25, 4  ;;  %s3940_s2 = smov [#allocation16]   ;;  %s451_s13 = int_to_ptr.vmem [resolvable:$true] %s450_s13 }
  0x2d   : > { %s481_s10 = sshll.u32 %s3940_s2, 4  ;;  %s2759_s28 = sadd.s32 4294967294, %s3927_s16   ;;  %s482_s10 = int_to_ptr.vmem [resolvable:$true] %s481_s10 }
  0x2e   : > { %3383 = dma.hbm_to_vmem [thread:$0]  (!%p4073_p6), %s480_s6, 2048, %s482_s10, [#allocation15], %s3931_s18, %s3931_s18, %s3932_s22  }
  0x2f   : > { %s448_s19 = sshll.u32 %s4955_s8, 4  ;;  %s4125_s1 = sadd.s32 1, %s3927_s16   ;;  %s449_s19 = int_to_ptr.hbm [resolvable:$true] %s448_s19 }
  0x30   : > { %3377 = dma.hbm_to_vmem [thread:$0]  (!%p4073_p6), %s449_s19, 128, %s451_s13, [#allocation12]  }
  0x31   : > { %s38_s14 = ssub.s32 %s3927_s16, %s4125_s1  ;;  %s41_s23 = sadd.s32 1, %s3923_s15 }
  0x32   : > { %p39_p7 = scmp.eq.s32.totalorder %s38_s14, 0  ;;  %p48_p8 = scmp.ne.s32.totalorder %s3923_s15, %s3919_s30 }
  0x33   : > { %p49_p9 = scmp.eq.s32.totalorder %s3927_s16, 0  ;;  %p54_p10 = scmp.ne.s32.totalorder %s3919_s30, %s3915_s29 }
  0x34   : > { %s4136_s17 = scalar_select %p39_p7, %s3923_s15, %s41_s23  }
  0x35   : > { %p4138_p11 = por %p49_p9, %p48_p8  ;;  %p4144_p12 = por %p55_p1, %p54_p10 }
  0x36   : > { %p351_p13 = scmp.eq.s32.totalorder %s4056_s20, 1  ;;  %p357_p0 = scmp.eq.s32.totalorder %s2759_s28, 1 }
  0x37   : > { %p3400_p2 = scmp.lt.s32.totalorder %s3927_s16, 2  ;;  %s498_s22 = sand.u32 1, %s3923_s15  }
  0x38   : > { %p4151_p5 = por %p351_p13, %p48_p8  ;;  %p4155_p6 = por %p357_p0, %p54_p10 }
  0x39   : > { %s2770_s26 = sshll.u32 %s498_s22, 5  ;;  %s3221_s4 = sshll.u32 %s3927_s16, 5 }
  0x3a   : > { %s507_s13 = scalar_lea.hbm %s4922_s0, %s3221_s4  ;;  %s502_s2 = scalar_lea.vmem [#allocation2], %s2770_s26 }
  0x3b   : > { %s510_s10 = sshll.u32 %s502_s2, 4  ;;  %s508_s14 = sshll.u32 %s507_s13, 4  ;;  %s511_s10 = int_to_ptr.vmem [resolvable:$true] %s510_s10  ;;  %s509_s14 = int_to_ptr.hbm [resolvable:$true] %s508_s14 }
  0x3c   : > { %p4165_p7 = pnand %p3400_p2, %p4138_p11  ;;  %s499_s23 = scalar_lea.sflag [#allocation3], %s498_s22 }
  0x3d   : > { %s3815_s5 = sshra.s32 %s509_s14, 4  ;;  %s3822_s6 = scalar_lea.hbm %s4922_s0, 64  ;;  %s3816_s5 = int_to_ptr.hbm [resolvable:$true] %s3815_s5 }
  0x3e   : > { %s3817_s8 = scalar_lea.hbm %s3816_s5, 32  ;;  %p3819_p9 = pneg %p4165_p7 }
  0x3f   : > { %p3818_p8 = scmp.ne.s32.totalorder %s3816_s5, %s3817_s8  ;;  %p3823_p11 = scmp.lt.s32.totalorder %s3816_s5, %s4922_s0 }
  0x40   : > { %p3824_p0 = scmp.lt.s32.totalorder %s3822_s6, %s3817_s8 }
  0x41   : > { %p3820_p10 = pnand %p3819_p9, %p3818_p8 }
  0x42   : > { %p3825_p2 = por %p3824_p0, %p3823_p11 }
  0x43   : > { %p3821_p13 = pneg %p3820_p10 }
  0x45   : > { %p3826_p4 = pnand %p3825_p2, %p3821_p13 }
  0x47   : > { %3829 = shalt.err (!%p3826_p4)
}
  0x48   : > { %s3941_s22 = smov 128   ;;  %s3942_s13 = smov 8  }
  0x49   : > { %3387 = dma.hbm_to_vmem [thread:$0]  (!%p4165_p7), %s509_s14, 512, %s511_s10, %s499_s23, %s3941_s22, %s3941_s22, %s3942_s13  }
  0x4a   : > { %522 = sbr.rel (%p4061_p3) target bundleno = 1187 (0x4a3), region = 76 }
  0x4f   : > { %s4182_s2 = sand.u32 1, %s3919_s30  }
  0x50   : > { %s2774_s5 = sshll.u32 %s4182_s2, 5  ;;  %s525_s8 = scalar_lea.sflag [#allocation3], %s4182_s2 }
  0x51   : > { %s4188_s26 = scalar_lea.vmem [#allocation2], %s2774_s5 }
  0x52   : > { %3890 = dma.done.wait (%p4144_p12), %s525_s8, 512  }
  0x53   : > { %3892 = vsyncadd (%p4144_p12), %s525_s8, 4294966784 }
  0x54   : > { %3894 = dma.done.wait (%p55_p1), [#allocation6], 6208  }
  0x55   : > { %3896 = vsyncadd (%p55_p1), [#allocation6], 4294961088 }
  0x56   : > { %3898 = dma.done.wait (%p55_p1), [#allocation9], 2064  }
  0x57   : > { %3900 = vsyncadd (%p55_p1), [#allocation9], 4294965232 }
  0x58   : > { %3902 = dma.done.wait (%p55_p1), [#allocation12], 1152  }
  0x59   : > { %3904 = vsyncadd (%p55_p1), [#allocation12], 4294966144 }
  0x5a   : > { %3906 = dma.done.wait (%p55_p1), [#allocation15], 3072  }
  0x5b   : > { %3908 = vsyncadd (%p55_p1), [#allocation15], 4294964224  ;;  %v3943_v0 = vmov 1   ;;  %v3944_v1 = vmov 0   ;;  %v3945_v2 = vmov 2   ;;  %v4211_v3 = vld [vmem:[%s4188_s26 + $0x10] sm:$0xff] }
  0x5c   : > { %3471 = vset.pattern.permute.xlu1 %v3943_v0  ;;  %3470 = vset.pattern.permute.xlu0 %v3944_v1  ;;  %v4217_v4 = vld [vmem:[%s4188_s26 + $0x18] sm:$0xff]  ;;  %v4223_v5 = vld [vmem:[%s4188_s26] sm:$0xff]  ;;  %v4226_v6 = vld [vmem:[%s4188_s26 + $0x8] sm:$0xff]  ;;  %vm871_vm4 = vcmask 261120   ;;  %s4963_s8 = sld [smem:[#allocation32_spill]] }
  0x5d   : > { %3472 = vset.pattern.permute.xlu2 %v3945_v2  ;;  %665 = vperm.xlu1 %3471, %v4211_v3   ;;  %v621_v7 = vld [vmem:[#allocation5] sm:$0x7]  ;;  %v2144_v10 = vld [vmem:[#allocation13] ss:$4 sm:$0x3]  ;;  %s4966_s10 = sld [smem:[#allocation33_spill]] }
  0x5e   : > { %635 = vperm.xlu0 %3470, %v4211_v3   ;;  %694 = vperm.xlu2 %3472, %v4211_v3   ;;  %v4236_v9 = vperm.slane %v621_v7, 2  ;;  %v2172_v11 = vld [vmem:[#allocation13 + $0x1] ss:$4 sm:$0x3]  ;;  %v4238_v12 = vperm.slane %v621_v7, 1  ;;  %v4240_v13 = vperm.slane %v621_v7, 0 }
  0x5f   : > { %v2143_v14 = vld [vmem:[%s4931_s9] sm:$0x3]  ;;  %v4245_v15 = vperm.slane %v2144_v10, 1  ;;  %v4249_v17 = vperm.slane %v2172_v11, 1  ;;  %v2818_v42 = vld [vmem:[#allocation7 + $0xc0] sm:$0xf] }
  0x60   : > { %v4259_v22 = vperm.slane %v2143_v14, 1  ;;  %v3234_v43 = vld [vmem:[#allocation7 + $0x11c] sm:$0xf0]  ;;  %v3230_v44 = vld [vmem:[#allocation7 + $0xc4] sm:$0xf] }
  0x61   : > { %v2819_v46 = vor.u32 %v3234_v43, %v2818_v42  ;;  %v2820_v47 = vld [vmem:[#allocation7 + $0x120] sm:$0xf0]  ;;  %v2786_v58 = vld [vmem:[#allocation7] sm:$0xf] }
  0x62   : > { %v2823_v51 = vor.u32 %v3230_v44, %v2820_v47  ;;  %v2195_v53 = vld [vmem:[#allocation13 + $0x2] ss:$4 sm:$0x3]  ;;  %v3226_v59 = vld [vmem:[#allocation7 + $0x5c] sm:$0xf0] }
  0x63   : > { %3319 = vmatpush.bf16.msra.mxu2 %v2819_v46  ;;  %884 = vmatpush.bf16.msra.mxu0 %v2819_v46  ;;  %v2787_v63 = vor.u32 %v3226_v59, %v2786_v58  ;;  %v2788_v7 = vld [vmem:[#allocation7 + $0x60] sm:$0xf0]  ;;  %v2198_v11 = vperm.slane %v2195_v53, 1  ;;  %s3865_s22 = scalar_lea.hbm %s4966_s10, 64 }
  0x64   : > { %3321 = vmatpush.bf16.msra.mxu3 %v2823_v51  ;;  %903 = vmatpush.bf16.msra.mxu1 %v2823_v51 }
  0x65   : > { %669 = vperm.xlu1 %3471, %v4217_v4  }
  0x66   : > { %640 = vperm.xlu0 %3470, %v4217_v4   ;;  %698 = vperm.xlu2 %3472, %v4217_v4  }
  0x67   : > { %3320 = vmatpush.bf16.msra.mxu2 %v2787_v63  ;;  %885 = vmatpush.bf16.msra.mxu0 %v2787_v63 }
  0x6d   : > { %3473 = vset.pattern.permute.xlu1 %v3944_v1 }
  0x6e   : > { %625 = vperm.xlu0 %3470, %v4223_v5   ;;  %630 = vperm.xlu1 %3473, %v4226_v6  }
  0x6f   : > { %3474 = vset.pattern.permute.xlu2 %v3943_v0 }
  0x70   : > { %657 = vperm.xlu2 %3474, %v4223_v5  }
  0x76   : > { %3475 = vset.pattern.permute.xlu0 %v3943_v0  ;;  %3476 = vset.pattern.permute.xlu1 %v3945_v2 }
  0x77   : > { %661 = vperm.xlu0 %3475, %v4226_v6   ;;  %686 = vperm.xlu1 %3476, %v4223_v5  }
  0x78   : > { %3477 = vset.pattern.permute.xlu2 %v3945_v2  ;;  %v3222_v2 = vld [vmem:[#allocation7 + $0x4] sm:$0xf] }
  0x79   : > { %690 = vperm.xlu2 %3477, %v4226_v6  }
  0xb8   : > { %v4234_v8 = vpop.permute.xlu2 %694 }
  0xb9   : > { %v703_v16 = vsub.f32 %v4236_v9, %v4234_v8 }
  0xbb   : > { %v707_v25 = vmul.f32 %v703_v16, %v703_v16 }
  0xc0   : > { %v4263_v24 = vpop.permute.xlu2 %698 }
  0xc1   : > { %v704_v35 = vsub.f32 %v4236_v9, %v4263_v24 }
  0xc3   : > { %v708_v49 = vmul.f32 %v704_v35, %v704_v35 }
  0xca   : > { %v4283_v38 = vpop.permute.xlu2 %657 }
  0xcb   : > { %v2179_v60 = vmul.f32 %v4249_v17, %v4283_v38  ;;  %v672_v16 = vsub.f32 %v4238_v12, %v4283_v38 }
  0xcf   : > { %v4251_v18 = vpop.permute.xlu1 %665 }
  0xd0   : > { %v4253_v19 = vpop.permute.xlu0 %635  ;;  %v674_v20 = vsub.f32 %v4238_v12, %v4251_v18  ;;  %v2183_v27 = vmul.f32 %v4249_v17, %v4251_v18 }
  0xd1   : > { %v645_v21 = vsub.f32 %v4240_v13, %v4253_v19  ;;  %v2155_v23 = vmul.f32 %v4245_v15, %v4253_v19 }
  0xd2   : > { %v678_v26 = vmul.f32 %v674_v20, %v674_v20 }
  0xd3   : > { %v649_v28 = vmul.f32 %v645_v21, %v645_v21  ;;  %v2168_v30 = vadd.f32 %v4259_v22, %v2155_v23  ;;  %v4302_v1 = vpop.permute.xlu2 %690 }
  0xd5   : > { %v682_v29 = vadd.f32 %v678_v26, %v649_v28  ;;  %v4270_v32 = vadd.f32 %v2183_v27, %v2168_v30  ;;  %v2791_v26 = vor.u32 %v3222_v2, %v2788_v7 }
  0xd7   : > { %v4268_v31 = vadd.f32 %v707_v25, %v682_v29  ;;  %v4272_v33 = vpop.permute.xlu1 %669  ;;  %v702_v25 = vsub.f32 %v4236_v9, %v4302_v1  ;;  %3322 = vmatpush.bf16.msra.mxu3 %v2791_v26  ;;  %904 = vmatpush.bf16.msra.mxu1 %v2791_v26  ;;  %v2206_v29 = vmul.f32 %v2198_v11, %v4234_v8 }
  0xd8   : > { %v4274_v34 = vpop.permute.xlu0 %640  ;;  %v675_v36 = vsub.f32 %v4238_v12, %v4272_v33  ;;  %v2185_v45 = vmul.f32 %v4249_v17, %v4272_v33 }
  0xd9   : > { %3519 = vrsqrt.f32 %v4268_v31  ;;  %v646_v37 = vsub.f32 %v4240_v13, %v4274_v34  ;;  %v2157_v39 = vmul.f32 %v4245_v15, %v4274_v34  ;;  %v706_v42 = vmul.f32 %v702_v25, %v702_v25  ;;  %v3227_v25 = vld [vmem:[#allocation7 + $0x64] sm:$0xf0] }
  0xda   : > { %v679_v40 = vmul.f32 %v675_v36, %v675_v36  ;;  %v676_v36 = vmul.f32 %v672_v16, %v672_v16  ;;  %vm744_vm0 = vcmp.eq.f32.partialorder %v4268_v31, inf  ;;  %v747_v46 = vand.u32 2147483648, %v4268_v31 }
  0xdb   : > { %v650_v41 = vmul.f32 %v646_v37, %v646_v37  ;;  %v2170_v48 = vadd.f32 %v4259_v22, %v2157_v39  ;;  %v2208_v37 = vmul.f32 %v2198_v11, %v4263_v24  ;;  %vm746_vm1 = vcmp.eq.f32.partialorder %v4268_v31, 0.0 }
  0xdd   : > { %v683_v50 = vadd.f32 %v679_v40, %v650_v41  ;;  %v2193_v54 = vadd.f32 %v2185_v45, %v2170_v48 }
  0xdf   : > { %v3520_v52 = vpop.eup %3519  ;;  %v4291_v56 = vadd.f32 %v708_v49, %v683_v50  ;;  %v2216_v59 = vadd.f32 %v2208_v37, %v2193_v54  ;;  %v3231_v54 = vld [vmem:[#allocation7 + $0xcc] sm:$0xf] }
  0xe0   : > { %v738_v55 = vmul.f32 %v3520_v52, %v4268_v31  ;;  %v4293_v57 = vpop.permute.xlu0 %625  ;;  %v4299_v62 = vpop.permute.xlu1 %630 }
  0xe1   : > { %v2151_v61 = vmul.f32 %v4245_v15, %v4293_v57  ;;  %3521 = vrsqrt.f32 %v4291_v56  ;;  %v2153_v20 = vmul.f32 %v4245_v15, %v4299_v62  ;;  %v643_v21 = vsub.f32 %v4240_v13, %v4293_v57 }
  0xe2   : > { %v739_v0 = vmul.f32 %v3520_v52, %v738_v55  ;;  %v644_v15 = vsub.f32 %v4240_v13, %v4299_v62  ;;  %vm756_vm2 = vcmp.eq.f32.partialorder %v4291_v56, inf  ;;  %vm758_vm3 = vcmp.eq.f32.partialorder %v4291_v56, 0.0 }
  0xe3   : > { %v2164_v10 = vadd.f32 %v4259_v22, %v2151_v61  ;;  %v2166_v28 = vadd.f32 %v4259_v22, %v2153_v20  ;;  %v647_v40 = vmul.f32 %v643_v21, %v643_v21  ;;  %v2204_v22 = vmul.f32 %v2198_v11, %v4302_v1  ;;  %v2828_v20 = vld [vmem:[#allocation7 + $0x128] sm:$0xf0] }
  0xe4   : > { %v740_v14 = vmul.f32 0.5, %v739_v0  ;;  %v648_v51 = vmul.f32 %v644_v15, %v644_v15  ;;  %v2214_v61 = vadd.f32 %v2206_v29, %v4270_v32 }
  0xe5   : > { %v2187_v23 = vadd.f32 %v2179_v60, %v2164_v10  ;;  %v2826_v10 = vld [vmem:[#allocation7 + $0xc8] sm:$0xf] }
  0xe6   : > { %v741_v27 = vsub.f32 1.5, %v740_v14  ;;  %v2223_v29 = vmax.f32 %v2214_v61, 0.0  ;;  %v2804_v61 = vld [vmem:[#allocation7 + $0x70] sm:$0xf0] }
  0xe7   : > { %v3522_v30 = vpop.eup %3521 }
  0xe8   : > { %v742_v35 = vmul.f32 %v3520_v52, %v741_v27  ;;  %v750_v39 = vmul.f32 %v3522_v30, %v4291_v56  ;;  %v3223_v27 = vld [vmem:[#allocation7 + $0xc] sm:$0xf] }
  0xe9   : > { %v4319_v41 = vpop.permute.xlu0 %661  ;;  %v4328_v45 = vpop.permute.xlu1 %686 }
  0xea   : > { %v743_v43 = vmul.f32 %v742_v35, %v4268_v31  ;;  %v673_v44 = vsub.f32 %v4238_v12, %v4319_v41  ;;  %v2181_v13 = vmul.f32 %v4249_v17, %v4319_v41  ;;  %v751_v47 = vmul.f32 %v3522_v30, %v750_v39 }
  0xeb   : > { %v701_v48 = vsub.f32 %v4236_v9, %v4328_v45  ;;  %v2202_v49 = vmul.f32 %v2198_v11, %v4328_v45  ;;  %v680_v12 = vadd.f32 %v676_v36, %v647_v40  ;;  %v3235_v11 = vld [vmem:[#allocation7 + $0x124] sm:$0xf0]  ;;  %v2831_v36 = vor.u32 %v3231_v54, %v2828_v20 }
  0xec   : > { %v745_v50 = vsel %vm744_vm0, %v4268_v31, %v743_v43  ;;  %v677_v52 = vmul.f32 %v673_v44, %v673_v44  ;;  %v2189_v53 = vadd.f32 %v2181_v13, %v2166_v28  ;;  %v752_v55 = vmul.f32 0.5, %v751_v47  ;;  %v2796_v28 = vld [vmem:[#allocation7 + $0x68] sm:$0xf0] }
  0xed   : > { %v705_v58 = vmul.f32 %v701_v48, %v701_v48  ;;  %v2210_v60 = vadd.f32 %v2202_v49, %v2187_v23  ;;  %v748_v63 = vsel %vm746_vm1, %v747_v46, %v745_v50  ;;  %v2224_v31 = vmax.f32 %v2216_v59, 0.0  ;;  %v2794_v23 = vld [vmem:[#allocation7 + $0x8] sm:$0xf]  ;;  %941 = vmatpush.bf16.msrb.mxu3 %v2831_v36  ;;  %v2834_v46 = vld [vmem:[#allocation7 + $0xd0] sm:$0xf] }
  0xee   : > { %v681_v17 = vadd.f32 %v677_v52, %v648_v51  ;;  %v753_v0 = vsub.f32 1.5, %v752_v55  ;;  %v2212_v2 = vadd.f32 %v2204_v22, %v2189_v53  ;;  %v763_v21 = vmul.f32 -2.0, %v748_v63  ;;  %v3236_v49 = vld [vmem:[#allocation7 + $0x12c] sm:$0xf0]  ;;  %v2836_v50 = vld [vmem:[#allocation7 + $0x130] sm:$0xf0] }
  0xef   : > { %v4337_v9 = vadd.f32 %v705_v58, %v680_v12  ;;  %v2221_v16 = vmax.f32 %v2210_v60, 0.0  ;;  %v2827_v35 = vor.u32 %v3235_v11, %v2826_v10  ;;  %v4350_v39 = vpack.c.bf16 %v2224_v31, %v2223_v29  ;;  %v2802_v12 = vld [vmem:[#allocation7 + $0x10] sm:$0xf]  ;;  %v3224_v60 = vld [vmem:[#allocation7 + $0x14] sm:$0xf] }
  0xf0   : > { %v4339_v7 = vadd.f32 %v706_v42, %v681_v17  ;;  %v754_v14 = vmul.f32 %v3522_v30, %v753_v0  ;;  %v2222_v26 = vmax.f32 %v2212_v2, 0.0  ;;  %v759_v30 = vand.u32 2147483648, %v4291_v56  ;;  %v3228_v17 = vld [vmem:[#allocation7 + $0x6c] sm:$0xf0]  ;;  %v3233_v31 = vld [vmem:[#allocation7 + $0xdc] sm:$0xf] }
  0xf1   : > { %3523 = vrsqrt.f32 %v4337_v9  ;;  %4961 = vst [vmem:[#allocation24_spill] sm:$0xff] %v4350_v39  ;;  %v769_v40 = vmul.f32 1.442695, %v763_v21  ;;  %922 = vmatpush.bf16.msrb.mxu2 %v2827_v35  ;;  %v2795_v22 = vor.u32 %v3227_v25, %v2794_v23  ;;  %v2799_v43 = vor.u32 %v3223_v27, %v2796_v28  ;;  %v2844_v21 = vld [vmem:[#allocation7 + $0x138] sm:$0xf0] }
  0xf2   : > { %v755_v32 = vmul.f32 %v754_v14, %v4291_v56  ;;  %3525 = vrsqrt.f32 %v4339_v7  ;;  %v4348_v37 = vpack.c.bf16 %v2222_v26, %v2221_v16  ;;  %v3946_v48 = vmov 3   ;;  %v2842_v14 = vld [vmem:[#allocation7 + $0xd8] sm:$0xf] }
  0xf3   : > { %3478 = vset.pattern.permute.xlu1 %v3946_v48  ;;  %3479 = vset.pattern.permute.xlu2 %v3946_v48  ;;  %v2835_v53 = vor.u32 %v3236_v49, %v2834_v46  ;;  %3527 = vpow2.f32 %v769_v40  ;;  %v2803_v63 = vor.u32 %v3228_v17, %v2802_v12  ;;  %v2807_v0 = vor.u32 %v3224_v60, %v2804_v61  ;;  %v3237_v16 = vld [vmem:[#allocation7 + $0x134] sm:$0xf0]  ;;  %v3225_v49 = vld [vmem:[#allocation7 + $0x1c] sm:$0xf]  ;;  %v2906_v17 = vld [vmem:[#allocation7 + $0xe8] sm:$0xf] }
  0xf4   : > { %v757_v15 = vsel %vm756_vm2, %v4291_v56, %v755_v32  ;;  %v3232_v56 = vld [vmem:[#allocation7 + $0xd4] sm:$0xf]  ;;  %1071 = vperm.xlu1 %3478, %v4223_v5   ;;  %1075 = vperm.xlu2 %3479, %v4226_v6   ;;  %v3947_v11 = vmov 4   ;;  %v2843_v27 = vor.u32 %v3237_v16, %v2842_v14  ;;  %v2847_v28 = vor.u32 %v3233_v31, %v2844_v21  ;;  %v3251_v60 = vld [vmem:[#allocation7 + $0x144] sm:$0xf0] }
  0xf5   : > { %v760_v42 = vsel %vm758_vm3, %v759_v30, %v757_v15  ;;  %v2839_v55 = vor.u32 %v3232_v56, %v2836_v50  ;;  %923 = vmatpush.bf16.msrb.mxu2 %v2795_v22  ;;  %942 = vmatpush.bf16.msrb.mxu3 %v2799_v43  ;;  %vm720_vm5 = vcmp.eq.f32.partialorder %v4337_v9, inf  ;;  %v723_v36 = vand.u32 2147483648, %v4337_v9  ;;  %v2812_v56 = vld [vmem:[#allocation7 + $0x78] sm:$0xf0]  ;;  %v3247_v61 = vld [vmem:[#allocation7 + $0xec] sm:$0xf] }
  0xf6   : > { %v764_v13 = vmul.f32 -2.0, %v760_v42  ;;  %960 = vmatpush.bf16.msrb.mxu0 %v2835_v53  ;;  %3480 = vset.pattern.permute.xlu0 %v3947_v11  ;;  %vm722_vm6 = vcmp.eq.f32.partialorder %v4337_v9, 0.0  ;;  %vm732_vm7 = vcmp.eq.f32.partialorder %v4339_v7, inf  ;;  %vm734_vm8 = vcmp.eq.f32.partialorder %v4339_v7, 0.0  ;;  %v2866_v21 = vld [vmem:[#allocation7 + $0x20] sm:$0xf] }
  0xf7   : > { %v3524_v44 = vpop.eup %3523  ;;  %979 = vmatpush.bf16.msrb.mxu1 %v2839_v55  ;;  %1351 = vperm.xlu0 %3480, %v4223_v5   ;;  %v735_v22 = vand.u32 2147483648, %v4339_v7  ;;  %v3948_v50 = vmov 5   ;;  %v2815_v53 = vor.u32 %v3225_v49, %v2812_v56  ;;  %v2924_v49 = vld [vmem:[#allocation7 + $0x158] sm:$0xf0]  ;;  %v2914_v56 = vld [vmem:[#allocation7 + $0xf0] sm:$0xf] }
  0xf8   : > { %v714_v47 = vmul.f32 %v3524_v44, %v4337_v9  ;;  %v3526_v51 = vpop.eup %3525  ;;  %v771_v52 = vmul.f32 1.442695, %v764_v13  ;;  %v3229_v13 = vld [vmem:[#allocation7 + $0x74] sm:$0xf0] }
  0xf9   : > { %v726_v59 = vmul.f32 %v3526_v51, %v4339_v7  ;;  %v3528_v23 = vpop.eup %3527 }
  0xfa   : > { %v715_v58 = vmul.f32 %v3524_v44, %v714_v47  ;;  %3529 = vpow2.f32 %v771_v52  ;;  %961 = vmatpush.bf16.msrb.mxu0 %v2803_v63  ;;  %v2907_v63 = vor.u32 %v3251_v60, %v2906_v17  ;;  %v2882_v60 = vld [vmem:[#allocation7 + $0x30] sm:$0xf] }
  0xfb   : > { %v727_v10 = vmul.f32 %v3526_v51, %v726_v59  ;;  %980 = vmatpush.bf16.msrb.mxu1 %v2807_v0  ;;  %v3949_v59 = vmov 7   ;;  %v2908_v0 = vld [vmem:[#allocation7 + $0x148] sm:$0xf0] }
  0xfc   : > { %v716_v2 = vmul.f32 0.5, %v715_v58  ;;  %3481 = vset.pattern.permute.xlu1 %v3947_v11  ;;  %3482 = vset.pattern.permute.xlu2 %v3948_v50  ;;  %v2911_v14 = vor.u32 %v3247_v61, %v2908_v0  ;;  %v3244_v61 = vld [vmem:[#allocation7 + $0x8c] sm:$0xf0]  ;;  %v2884_v0 = vld [vmem:[#allocation7 + $0x90] sm:$0xf0] }
  0xfd   : > { %v728_v20 = vmul.f32 0.5, %v727_v10  ;;  %1355 = vperm.xlu1 %3481, %v4226_v6   ;;  %1383 = vperm.xlu2 %3482, %v4223_v5   ;;  %v3250_v10 = vld [vmem:[#allocation7 + $0x13c] sm:$0xf0] }
  0xfe   : > { %v717_v54 = vsub.f32 1.5, %v716_v2  ;;  %v2898_v2 = vld [vmem:[#allocation7 + $0xe0] sm:$0xf] }
  0xff   : > { %v729_v32 = vsub.f32 1.5, %v728_v20  ;;  %v2899_v16 = vor.u32 %v3250_v10, %v2898_v2  ;;  %v2900_v20 = vld [vmem:[#allocation7 + $0x140] sm:$0xf0]  ;;  %v2883_v2 = vor.u32 %v3244_v61, %v2882_v60  ;;  %v2994_v60 = vld [vmem:[#allocation7 + $0x110] sm:$0xf] }
 0x100   : > { %v718_v25 = vmul.f32 %v3524_v44, %v717_v54  ;;  %v3530_v26 = vpop.eup %3529  ;;  %v2810_v44 = vld [vmem:[#allocation7 + $0x18] sm:$0xf]  ;;  %v3246_v54 = vld [vmem:[#allocation7 + $0xe4] sm:$0xf]  ;;  %v3268_v61 = vld [vmem:[#allocation7 + $0x16c] sm:$0xf0] }
 0x101   : > { %v4361_v29 = vpack.c.bf16 %v3530_v26, %v3528_v23  ;;  %v730_v35 = vmul.f32 %v3526_v51, %v729_v32  ;;  %v2811_v47 = vor.u32 %v3229_v13, %v2810_v44  ;;  %v2903_v31 = vor.u32 %v3246_v54, %v2900_v20  ;;  %v3242_v23 = vld [vmem:[#allocation7 + $0x7c] sm:$0xf0]  ;;  %v2868_v26 = vld [vmem:[#allocation7 + $0x80] sm:$0xf0]  ;;  %v2922_v44 = vld [vmem:[#allocation7 + $0xf8] sm:$0xf] }
 0x102   : > { %v719_v30 = vmul.f32 %v718_v25, %v4337_v9  ;;  %v3238_v25 = vld [vmem:[#allocation7 + $0x24] sm:$0xf]  ;;  %v2867_v32 = vor.u32 %v3242_v23, %v2866_v21  ;;  %v3253_v13 = vld [vmem:[#allocation7 + $0x154] sm:$0xf0]  ;;  %v3241_v54 = vld [vmem:[#allocation7 + $0x3c] sm:$0xf] }
 0x103   : > { %v731_v40 = vmul.f32 %v730_v35, %v4339_v7  ;;  %2849 = vmatmul.msk.bf16.vlgmr.msra.gmra.mxu2 %vm871_vm4, %v4361_v29  ;;  %2851 = vmatmul.msk.bf16.vlgmr.msra.gmra.mxu3 %vm871_vm4, %v4361_v29  ;;  %v3243_v35 = vld [vmem:[#allocation7 + $0x84] sm:$0xf0] }
 0x104   : > { %v721_v15 = vsel %vm720_vm5, %v4337_v9, %v719_v30  ;;  %998 = vmatpush.bf16.msra.mxu2 %v2843_v27  ;;  %1017 = vmatpush.bf16.msra.mxu3 %v2847_v28  ;;  %v2871_v27 = vor.u32 %v3238_v25, %v2868_v26  ;;  %v3950_v28 = vmov 8   ;;  %v2874_v30 = vld [vmem:[#allocation7 + $0x28] sm:$0xf]  ;;  %v2988_v25 = vld [vmem:[#allocation7 + $0x168] sm:$0xf0] }
 0x105   : > { %v724_v42 = vsel %vm722_vm6, %v723_v36, %v721_v15  ;;  %v733_v9 = vsel %vm732_vm7, %v4339_v7, %v731_v40  ;;  %3483 = vset.pattern.permute.xlu1 %v3948_v50  ;;  %v3239_v36 = vld [vmem:[#allocation7 + $0x2c] sm:$0xf]  ;;  %v3951_v15 = vmov 9   ;;  %v2875_v40 = vor.u32 %v3243_v35, %v2874_v30  ;;  %v3266_v26 = vld [vmem:[#allocation7 + $0x15c] sm:$0xf0] }
 0x106   : > { %v761_v43 = vmul.f32 -2.0, %v724_v42  ;;  %v736_v46 = vsel %vm734_vm8, %v735_v22, %v733_v9  ;;  %1387 = vperm.xlu1 %3483, %v4226_v6   ;;  %v2876_v42 = vld [vmem:[#allocation7 + $0x88] sm:$0xf0]  ;;  %v3953_v9 = vmov 10   ;;  %v3262_v35 = vld [vmem:[#allocation7 + $0x104] sm:$0xf] }
 0x107   : > { %v762_v52 = vmul.f32 -2.0, %v736_v46  ;;  %v2879_v22 = vor.u32 %v3239_v36, %v2876_v42  ;;  %v2923_v46 = vor.u32 %v3253_v13, %v2922_v44  ;;  %v2980_v36 = vld [vmem:[#allocation7 + $0x160] sm:$0xf0] }
 0x108   : > { %v765_v51 = vmul.f32 1.442695, %v761_v43  ;;  %999 = vmatpush.bf16.msra.mxu2 %v2811_v47  ;;  %1018 = vmatpush.bf16.msra.mxu3 %v2815_v53  ;;  %v3952_v43 = vmov 6   ;;  %v3249_v47 = vld [vmem:[#allocation7 + $0xfc] sm:$0xf]  ;;  %v2983_v42 = vor.u32 %v3262_v35, %v2980_v36 }
 0x109   : > { %v767_v55 = vmul.f32 1.442695, %v762_v52  ;;  %3484 = vset.pattern.permute.xlu2 %v3952_v43  ;;  %3485 = vset.pattern.permute.xlu0 %v3952_v43  ;;  %v3252_v52 = vld [vmem:[#allocation7 + $0x14c] sm:$0xf0]  ;;  %v3248_v53 = vld [vmem:[#allocation7 + $0xf4] sm:$0xf] }
 0x10a   : > { %3531 = vpow2.f32 %v765_v51  ;;  %1415 = vperm.xlu2 %3484, %v4223_v5   ;;  %1419 = vperm.xlu0 %3485, %v4226_v6   ;;  %v2927_v51 = vor.u32 %v3249_v47, %v2924_v49  ;;  %v3254_v44 = vld [vmem:[#allocation7 + $0x44] sm:$0xf]  ;;  %v3259_v49 = vld [vmem:[#allocation7 + $0xa4] sm:$0xf0] }
 0x10b   : > { %3533 = vpow2.f32 %v767_v55  ;;  %v2916_v55 = vld [vmem:[#allocation7 + $0x150] sm:$0xf0]  ;;  %v2948_v13 = vld [vmem:[#allocation7 + $0xa0] sm:$0xf0] }
 0x10c   : > { %v2919_v17 = vor.u32 %v3248_v53, %v2916_v55  ;;  %v2951_v47 = vor.u32 %v3254_v44, %v2948_v13  ;;  %v3265_v53 = vld [vmem:[#allocation7 + $0x11c] sm:$0xf] }
 0x10e   : > { %3486 = vset.pattern.permute.xlu1 %v3949_v59 }
 0x10f   : > { %1447 = vperm.xlu1 %3486, %v4223_v5  }
 0x110   : > { %v3532_v7 = vpop.eup %3531 }
 0x111   : > { %v3534_v12 = vpop.eup %3533 }
 0x112   : > { %v4382_v58 = vpack.c.bf16 %v3534_v12, %v3532_v7  ;;  %3487 = vset.pattern.permute.xlu2 %v3949_v59  ;;  %3490 = vset.pattern.permute.xlu0 %v3951_v15  ;;  %v3954_v7 = vmov 11   ;;  %v2915_v12 = vor.u32 %v3252_v52, %v2914_v56 }
 0x113   : > { %1451 = vperm.xlu2 %3487, %v4226_v6   ;;  %1759 = vperm.xlu0 %3490, %v4223_v5  }
 0x114   : > { %2848 = vmatmul.msk.bf16.vlgmr.msra.gmra.mxu0 %vm871_vm4, %v4382_v58  ;;  %2850 = vmatmul.msk.bf16.vlgmr.msra.gmra.mxu1 %vm871_vm4, %v4382_v58 }
 0x115   : > { %2852 = vmatmul.msk.bf16.vlgmr.msrb.gmra.mxu2 %vm871_vm4, %v4382_v58  ;;  %2854 = vmatmul.msk.bf16.vlgmr.msrb.gmra.mxu3 %vm871_vm4, %v4382_v58 }
 0x116   : > { %1242 = vmatpush.bf16.msrb.mxu2 %v2907_v63  ;;  %1261 = vmatpush.bf16.msrb.mxu3 %v2911_v14  ;;  %v3240_v63 = vld [vmem:[#allocation7 + $0x34] sm:$0xf]  ;;  %v2890_v14 = vld [vmem:[#allocation7 + $0x38] sm:$0xf] }
 0x117   : > { %1204 = vmatpush.bf16.msra.mxu0 %v2899_v16  ;;  %1223 = vmatpush.bf16.msra.mxu1 %v2903_v31  ;;  %v2887_v10 = vor.u32 %v3240_v63, %v2884_v0  ;;  %v3245_v16 = vld [vmem:[#allocation7 + $0x94] sm:$0xf0]  ;;  %v2892_v31 = vld [vmem:[#allocation7 + $0x98] sm:$0xf0]  ;;  %v3264_v63 = vld [vmem:[#allocation7 + $0x114] sm:$0xf]  ;;  %v2995_v0 = vor.u32 %v3268_v61, %v2994_v60 }
 0x118   : > { %3488 = vset.pattern.permute.xlu1 %v3950_v28  ;;  %v2891_v20 = vor.u32 %v3245_v16, %v2890_v14  ;;  %v2895_v21 = vor.u32 %v3241_v54, %v2892_v31  ;;  %v2962_v14 = vld [vmem:[#allocation7 + $0x50] sm:$0xf]  ;;  %v3256_v54 = vld [vmem:[#allocation7 + $0x54] sm:$0xf] }
 0x119   : > { %1727 = vperm.xlu1 %3488, %v4223_v5   ;;  %v3260_v16 = vld [vmem:[#allocation7 + $0xac] sm:$0xf0]  ;;  %v2964_v31 = vld [vmem:[#allocation7 + $0xb0] sm:$0xf0] }
 0x11a   : > { %1243 = vmatpush.bf16.msrb.mxu2 %v2875_v40  ;;  %1262 = vmatpush.bf16.msrb.mxu3 %v2879_v22  ;;  %v2946_v40 = vld [vmem:[#allocation7 + $0x40] sm:$0xf]  ;;  %v3298_v60 = vld [vmem:[#allocation14 + $0x20] sm:$0xff] }
 0x11b   : > { %1205 = vmatpush.bf16.msra.mxu0 %v2867_v32  ;;  %1224 = vmatpush.bf16.msra.mxu1 %v2871_v27  ;;  %v2978_v32 = vld [vmem:[#allocation7 + $0x100] sm:$0xf] }
 0x11c   : > { %3489 = vset.pattern.permute.xlu2 %v3950_v28  ;;  %3495 = vset.pattern.permute.xlu0 %v3946_v48  ;;  %v2979_v30 = vor.u32 %v3266_v26, %v2978_v32  ;;  %v3258_v22 = vld [vmem:[#allocation7 + $0x9c] sm:$0xf0] }
 0x11d   : > { %1731 = vperm.xlu2 %3489, %v4226_v6   ;;  %1083 = vperm.xlu0 %3495, %v4217_v4  }
 0x121   : > { %3491 = vset.pattern.permute.xlu1 %v3951_v15 }
 0x122   : > { %1763 = vperm.xlu1 %3491, %v4226_v6  }
 0x124   : > { %2856 = vmatmul.msk.bf16.vlgmr.msrb.gmra.mxu0 %vm871_vm4, %v4382_v58  ;;  %2858 = vmatmul.msk.bf16.vlgmr.msrb.gmra.mxu1 %vm871_vm4, %v4382_v58 }
 0x125   : > { %2853 = vmatmul.msk.bf16.gmra.mxu2 %vm871_vm4, %v4361_v29  ;;  %2855 = vmatmul.msk.bf16.gmra.mxu3 %vm871_vm4, %v4361_v29 }
 0x126   : > { %1280 = vmatpush.bf16.msrb.mxu0 %v2915_v12  ;;  %1299 = vmatpush.bf16.msrb.mxu1 %v2919_v17  ;;  %v3004_v12 = vld [vmem:[#allocation7 + $0x178] sm:$0xf0] }
 0x127   : > { %3492 = vset.pattern.permute.xlu2 %v3953_v9  ;;  %3500 = vset.pattern.permute.xlu0 %v3948_v50 }
 0x128   : > { %1791 = vperm.xlu2 %3492, %v4223_v5   ;;  %1391 = vperm.xlu0 %3500, %v4211_v3  }
 0x12a   : > { %3493 = vset.pattern.permute.xlu1 %v3953_v9  ;;  %1281 = vmatpush.bf16.msrb.mxu0 %v2883_v2  ;;  %v2996_v2 = vld [vmem:[#allocation7 + $0x170] sm:$0xf0] }
 0x12b   : > { %1795 = vperm.xlu1 %3493, %v4226_v6   ;;  %1300 = vmatpush.bf16.msrb.mxu1 %v2887_v10  ;;  %v2999_v10 = vor.u32 %v3264_v63, %v2996_v2 }
 0x130   : > { %3494 = vset.pattern.permute.xlu2 %v3946_v48  ;;  %3505 = vset.pattern.permute.xlu0 %v3949_v59  ;;  %v3267_v48 = vld [vmem:[#allocation7 + $0x164] sm:$0xf0] }
 0x131   : > { %1079 = vperm.xlu2 %3494, %v4211_v3   ;;  %1459 = vperm.xlu0 %3505, %v4217_v4  }
 0x133   : > { %3496 = vset.pattern.permute.xlu1 %v3954_v7 }
 0x134   : > { %2857 = vmatmul.msk.bf16.gmra.mxu0 %vm871_vm4, %v4361_v29  ;;  %2859 = vmatmul.msk.bf16.gmra.mxu1 %vm871_vm4, %v4361_v29 }
 0x135   : > { %2860 = vmatmul.msk.bf16.vlgmr.msra.gmra.mxu2 %vm871_vm4, %v4382_v58  ;;  %2862 = vmatmul.msk.bf16.vlgmr.msra.gmra.mxu3 %vm871_vm4, %v4382_v58 }
 0x136   : > { %1318 = vmatpush.bf16.msra.mxu2 %v2923_v46  ;;  %1823 = vperm.xlu1 %3496, %v4223_v5   ;;  %v2986_v5 = vld [vmem:[#allocation7 + $0x108] sm:$0xf]  ;;  %v2947_v46 = vor.u32 %v3258_v22, %v2946_v40 }
 0x137   : > { %1337 = vmatpush.bf16.msra.mxu3 %v2927_v51  ;;  %v2987_v23 = vor.u32 %v3267_v48, %v2986_v5  ;;  %v2956_v51 = vld [vmem:[#allocation7 + $0xa8] sm:$0xf0]  ;;  %v2970_v48 = vld [vmem:[#allocation7 + $0x58] sm:$0xf] }
 0x139   : > { %3497 = vset.pattern.permute.xlu2 %v3954_v7  ;;  %3510 = vset.pattern.permute.xlu0 %v3953_v9 }
 0x13a   : > { %1319 = vmatpush.bf16.msra.mxu2 %v2891_v20  ;;  %1827 = vperm.xlu2 %3497, %v4226_v6   ;;  %v2954_v6 = vld [vmem:[#allocation7 + $0x48] sm:$0xf]  ;;  %v2963_v20 = vor.u32 %v3260_v16, %v2962_v14 }
 0x13b   : > { %1338 = vmatpush.bf16.msra.mxu3 %v2895_v21  ;;  %1799 = vperm.xlu0 %3510, %v4211_v3   ;;  %v2955_v56 = vor.u32 %v3259_v49, %v2954_v6  ;;  %v2967_v21 = vor.u32 %v3256_v54, %v2964_v31  ;;  %v3297_v16 = vld [vmem:[#allocation14 + $0x18] sm:$0xff] }
 0x13e   : > { %3498 = vset.pattern.permute.xlu1 %v3947_v11 }
 0x13f   : > { %1359 = vperm.xlu1 %3498, %v4211_v3  }
 0x142   : > { %3499 = vset.pattern.permute.xlu2 %v3947_v11  ;;  %v3255_v11 = vld [vmem:[#allocation7 + $0x4c] sm:$0xf] }
 0x143   : > { %1363 = vperm.xlu2 %3499, %v4217_v4   ;;  %3514 = vset.pattern.permute.xlu0 %v3954_v7  ;;  %v2959_v52 = vor.u32 %v3255_v11, %v2956_v51 }
 0x144   : > { %2928 = vmatmul.msk.bf16.vlgmr.msra.gmra.mxu0 %vm871_vm4, %v4382_v58  ;;  %2930 = vmatmul.msk.bf16.vlgmr.msra.gmra.mxu1 %vm871_vm4, %v4382_v58 }
 0x145   : > { %2861 = vmatmul.msk.bf16.gmra.mxu2 %vm871_vm4, %v4361_v29  ;;  %2863 = vmatmul.msk.bf16.gmra.mxu3 %vm871_vm4, %v4361_v29 }
 0x146   : > { %1580 = vmatpush.bf16.msra.mxu0 %v2979_v30  ;;  %1599 = vmatpush.bf16.msra.mxu1 %v2983_v42 }
 0x147   : > { %3501 = vset.pattern.permute.xlu1 %v3948_v50  ;;  %v3263_v50 = vld [vmem:[#allocation7 + $0x10c] sm:$0xf] }
 0x148   : > { %1395 = vperm.xlu1 %3501, %v4217_v4   ;;  %v2991_v27 = vor.u32 %v3263_v50, %v2988_v25  ;;  %v3261_v50 = vld [vmem:[#allocation7 + $0xb4] sm:$0xf0] }
 0x149   : > { %v2971_v26 = vor.u32 %v3261_v50, %v2970_v48 }
 0x14a   : > { %1581 = vmatpush.bf16.msra.mxu0 %v2947_v46  ;;  %1600 = vmatpush.bf16.msra.mxu1 %v2951_v47 }
 0x14b   : > { %3502 = vset.pattern.permute.xlu2 %v3952_v43 }
 0x14c   : > { %1423 = vperm.xlu2 %3502, %v4211_v3  }
 0x150   : > { %3503 = vset.pattern.permute.xlu1 %v3952_v43  ;;  %v3002_v43 = vld [vmem:[#allocation7 + $0x118] sm:$0xf] }
 0x151   : > { %1427 = vperm.xlu1 %3503, %v4217_v4  }
 0x154   : > { %2929 = vmatmul.msk.bf16.gmra.mxu0 %vm871_vm4, %v4361_v29  ;;  %2931 = vmatmul.msk.bf16.gmra.mxu1 %vm871_vm4, %v4361_v29 }
 0x155   : > { %2932 = vmatmul.msk.bf16.vlgmr.msrb.gmra.mxu2 %vm871_vm4, %v4382_v58  ;;  %2934 = vmatmul.msk.bf16.vlgmr.msrb.gmra.mxu3 %vm871_vm4, %v4382_v58 }
 0x156   : > { %1618 = vmatpush.bf16.msrb.mxu2 %v2987_v23  ;;  %1637 = vmatpush.bf16.msrb.mxu3 %v2991_v27  ;;  %v3257_v23 = vld [vmem:[#allocation7 + $0x5c] sm:$0xf] }
 0x157   : > { %3504 = vset.pattern.permute.xlu2 %v3949_v59  ;;  %v3007_v59 = vor.u32 %v3265_v53, %v3004_v12  ;;  %v2972_v27 = vld [vmem:[#allocation7 + $0xb8] sm:$0xf0] }
 0x158   : > { %1455 = vperm.xlu2 %3504, %v4211_v3   ;;  %v2975_v30 = vor.u32 %v3257_v23, %v2972_v27  ;;  %v3296_v27 = vld [vmem:[#allocation14 + $0x10] sm:$0xff] }
 0x159   : > { %3506 = vset.pattern.permute.xlu1 %v3950_v28 }
 0x15a   : > { %1735 = vperm.xlu1 %3506, %v4211_v3   ;;  %1619 = vmatpush.bf16.msrb.mxu2 %v2955_v56  ;;  %v3300_v56 = vld [vmem:[#allocation14 + $0x30] sm:$0xff] }
 0x15b   : > { %1638 = vmatpush.bf16.msrb.mxu3 %v2959_v52 }
 0x160   : > { %3507 = vset.pattern.permute.xlu2 %v3950_v28  ;;  %v4507_v28 = vpop.permute.xlu2 %1075 }
 0x161   : > { %1739 = vperm.xlu2 %3507, %v4217_v4  }
 0x162   : > { %3508 = vset.pattern.permute.xlu1 %v3951_v15 }
 0x163   : > { %1767 = vperm.xlu1 %3508, %v4211_v3  }
 0x164   : > { %2936 = vmatmul.msk.bf16.vlgmr.msrb.gmra.mxu0 %vm871_vm4, %v4382_v58  ;;  %2938 = vmatmul.msk.bf16.vlgmr.msrb.gmra.mxu1 %vm871_vm4, %v4382_v58 }
 0x165   : > { %2933 = vmatmul.msk.bf16.gmra.mxu2 %vm871_vm4, %v4361_v29  ;;  %2935 = vmatmul.msk.bf16.gmra.mxu3 %vm871_vm4, %v4361_v29 }
 0x166   : > { %v4495_v17 = vpop.permute.xlu1 %1071  ;;  %1656 = vmatpush.bf16.msrb.mxu0 %v2995_v0  ;;  %1675 = vmatpush.bf16.msrb.mxu1 %v2999_v10 }
 0x168   : > { %v4518_v40 = vpop.permute.xlu2 %1383 }
 0x169   : > { %3509 = vset.pattern.permute.xlu2 %v3951_v15 }
 0x16a   : > { %1657 = vmatpush.bf16.msrb.mxu0 %v2963_v20  ;;  %1676 = vmatpush.bf16.msrb.mxu1 %v2967_v21 }
 0x16b   : > { %3511 = vset.pattern.permute.xlu1 %v3953_v9  ;;  %v3269_v9 = vld [vmem:[#allocation7 + $0x174] sm:$0xf0]  ;;  %1771 = vperm.xlu2 %3509, %v4217_v4  }
 0x16c   : > { %1803 = vperm.xlu1 %3511, %v4217_v4   ;;  %v3003_v55 = vor.u32 %v3269_v9, %v3002_v43  ;;  %v3299_v9 = vld [vmem:[#allocation14 + $0x28] sm:$0xff] }
 0x16f   : > { %v4509_v5 = vpop.permute.xlu1 %1355 }
 0x170   : > { %v4539_v11 = vpop.permute.xlu2 %1415 }
 0x173   : > { %3512 = vset.pattern.permute.xlu2 %v3954_v7 }
 0x174   : > { %2937 = vmatmul.msk.bf16.gmra.mxu0 %vm871_vm4, %v4361_v29  ;;  %2939 = vmatmul.msk.bf16.gmra.mxu1 %vm871_vm4, %v4361_v29 }
 0x175   : > { %2940 = vmatmul.msk.bf16.vlgmr.msra.gmra.mxu2 %vm871_vm4, %v4382_v58  ;;  %2942 = vmatmul.msk.bf16.vlgmr.msra.gmra.mxu3 %vm871_vm4, %v4382_v58 }
 0x176   : > { %1694 = vmatpush.bf16.msra.mxu2 %v3003_v55  ;;  %1713 = vmatpush.bf16.msra.mxu3 %v3007_v59 }
 0x177   : > { %3513 = vset.pattern.permute.xlu1 %v3954_v7  ;;  %1831 = vperm.xlu2 %3512, %v4211_v3  }
 0x178   : > { %1835 = vperm.xlu1 %3513, %v4217_v4   ;;  %v4520_v42 = vpop.permute.xlu1 %1387  ;;  %v3301_v4 = vld [vmem:[#allocation14 + $0x38] sm:$0xff]  ;;  %v4551_v10 = vpop.permute.xlu2 %1451 }
 0x17a   : > { %1695 = vmatpush.bf16.msra.mxu2 %v2971_v26  ;;  %1714 = vmatpush.bf16.msra.mxu3 %v2975_v30 }
 0x181   : > { %v4541_v43 = vpop.permute.xlu1 %1447 }
 0x184   : > { %3008 = vmatmul.msk.bf16.vlgmr.msra.gmra.mxu0 %vm871_vm4, %v4382_v58  ;;  %3010 = vmatmul.msk.bf16.vlgmr.msra.gmra.mxu1 %vm871_vm4, %v4382_v58 }
 0x185   : > { %2941 = vmatmul.msk.bf16.gmra.mxu2 %vm871_vm4, %v4361_v29  ;;  %2943 = vmatmul.msk.bf16.gmra.mxu3 %vm871_vm4, %v4361_v29 }
 0x186   : > { %v892_v25 = vpop.f32.mrf.mxu2  ;;  %v911_v32 = vpop.f32.mrf.mxu3 }
 0x187   : > { %v1034_v31 = vmul.f32 %v892_v25, %v4253_v19  ;;  %v1035_v21 = vmul.f32 %v911_v32, %v4253_v19 }
 0x18b   : > { %v4557_v14 = vpop.permute.xlu1 %1727 }
 0x18e   : > { %v4513_v35 = vpop.f32.mrf.mxu2  ;;  %v4515_v36 = vpop.f32.mrf.mxu3 }
 0x191   : > { %v887_v22 = vpop.f32.mrf.mxu0  ;;  %v906_v44 = vpop.f32.mrf.mxu1 }
 0x192   : > { %v1030_v3 = vmul.f32 %v887_v22, %v4293_v57  ;;  %v1031_v13 = vmul.f32 %v906_v44, %v4293_v57  ;;  %v3295_v44 = vld [vmem:[#allocation14 + $0x8] sm:$0xff] }
 0x194   : > { %3009 = vmatmul.msk.bf16.gmra.mxu0 %vm871_vm4, %v4361_v29  ;;  %3011 = vmatmul.msk.bf16.gmra.mxu1 %vm871_vm4, %v4361_v29 }
 0x195   : > { %3012 = vmatmul.msk.bf16.vlgmr.msrb.gmra.mxu2 %vm871_vm4, %v4382_v58  ;;  %3014 = vmatmul.msk.bf16.vlgmr.msrb.gmra.mxu3 %vm871_vm4, %v4382_v58 }
 0x196   : > { %2295 = vmatpush.bf16.msrb.mxu3 %v3301_v4  ;;  %v4565_v4 = vpop.permute.xlu2 %1731 }
 0x198   : > { %v925_v15 = vpop.f32.mrf.mxu2  ;;  %v944_v7 = vpop.f32.mrf.mxu3 }
 0x199   : > { %v1038_v46 = vmul.f32 %v925_v15, %v4283_v38  ;;  %v1039_v47 = vmul.f32 %v944_v7, %v4283_v38  ;;  %v4535_v6 = vpop.f32.mrf.mxu0  ;;  %v4537_v49 = vpop.f32.mrf.mxu1 }
 0x19a   : > { %2296 = vmatpush.bf16.msrb.mxu3 %v3300_v56  ;;  %v1352_v15 = vpop.permute.xlu0 %1351  ;;  %v4567_v7 = vpop.permute.xlu1 %1763  ;;  %v3294_v56 = vld [vmem:[#allocation14] sm:$0xff] }
 0x19b   : > { %v1046_v51 = vadd.f32 %v1038_v46, %v1030_v3  ;;  %v1047_v52 = vadd.f32 %v1039_v47, %v1031_v13  ;;  %v1037_v3 = vmul.f32 %v4515_v36, %v4274_v34 }
 0x19e   : > { %2297 = vmatpush.bf16.msrb.mxu3 %v3299_v9 }
 0x1a0   : > { %v4543_v53 = vpop.f32.mrf.mxu2  ;;  %v946_v55 = vpop.f32.mrf.mxu3 }
 0x1a1   : > { %v963_v12 = vpop.f32.mrf.mxu0  ;;  %v982_v59 = vpop.f32.mrf.mxu1 }
 0x1a2   : > { %v1054_v61 = vmul.f32 %v963_v12, %v4328_v45  ;;  %v1055_v63 = vmul.f32 %v982_v59, %v4328_v45  ;;  %2298 = vmatpush.bf16.msrb.mxu3 %v3298_v60 }
 0x1a4   : > { %v1062_v0 = vadd.f32 %v1054_v61, %v1046_v51  ;;  %v1063_v2 = vadd.f32 %v1055_v63, %v1047_v52  ;;  %3016 = vmatmul.msk.bf16.vlgmr.msrb.gmra.mxu0 %vm871_vm4, %v4382_v58  ;;  %3018 = vmatmul.msk.bf16.vlgmr.msrb.gmra.mxu1 %vm871_vm4, %v4382_v58  ;;  %v3567_v61 = vld [vmem:[#allocation13] ss:$4 sm:$0x3] }
 0x1a5   : > { %3013 = vmatmul.msk.bf16.gmra.mxu2 %vm871_vm4, %v4361_v29  ;;  %3015 = vmatmul.msk.bf16.gmra.mxu3 %vm871_vm4, %v4361_v29  ;;  %v4590_v63 = vperm.slane %v3567_v61, 0 }
 0x1a6   : > { %2299 = vmatpush.bf16.msrb.mxu3 %v3297_v16 }
 0x1a8   : > { %v930_v54 = vpop.f32.mrf.mxu2  ;;  %v949_v20 = vpop.f32.mrf.mxu3 }
 0x1a9   : > { %v1042_v48 = vmul.f32 %v930_v54, %v4251_v18  ;;  %v1043_v50 = vmul.f32 %v949_v20, %v4251_v18  ;;  %v4563_v23 = vpop.f32.mrf.mxu0  ;;  %v984_v26 = vpop.f32.mrf.mxu1 }
 0x1aa   : > { %2300 = vmatpush.bf16.msrb.mxu3 %v3296_v27 }
 0x1ab   : > { %v1050_v30 = vadd.f32 %v1042_v48, %v1034_v31  ;;  %v1051_v22 = vadd.f32 %v1043_v50, %v1035_v21  ;;  %v4598_v21 = vpop.permute.xlu0 %1419  ;;  %v2150_v48 = vmul.f32 %v4590_v63, %v4293_v57  ;;  %v1033_v57 = vmul.f32 %v4537_v49, %v4299_v62 }
 0x1ae   : > { %2301 = vmatpush.bf16.msrb.mxu3 %v3295_v44  ;;  %v3568_v44 = vld [vmem:[#allocation13 + $0x1] ss:$4 sm:$0x3] }
 0x1b0   : > { %v4569_v25 = vpop.f32.mrf.mxu2  ;;  %v951_v32 = vpop.f32.mrf.mxu3 }
 0x1b1   : > { %v1045_v13 = vmul.f32 %v951_v32, %v4272_v33  ;;  %v968_v46 = vpop.f32.mrf.mxu0  ;;  %v987_v47 = vpop.f32.mrf.mxu1  ;;  %v4607_v32 = vperm.slane %v3568_v44, 0 }
 0x1b2   : > { %v1058_v51 = vmul.f32 %v968_v46, %v4234_v8  ;;  %v1059_v52 = vmul.f32 %v987_v47, %v4234_v8  ;;  %2302 = vmatpush.bf16.msrb.mxu3 %v3294_v56 }
 0x1b3   : > { %v4576_v9 = vadd.f32 %v1045_v13, %v1037_v3  ;;  %v3569_v3 = vld [vmem:[%s4931_s9] sm:$0x3]  ;;  %v2178_v47 = vmul.f32 %v4607_v32, %v4283_v38  ;;  %v1040_v38 = vmul.f32 %v4543_v53, %v4319_v41 }
 0x1b4   : > { %v4578_v12 = vadd.f32 %v1058_v51, %v1050_v30  ;;  %v4580_v59 = vadd.f32 %v1059_v52, %v1051_v22  ;;  %3017 = vmatmul.msk.bf16.gmra.mxu0 %vm871_vm4, %v4361_v29  ;;  %3019 = vmatmul.msk.bf16.gmra.mxu1 %vm871_vm4, %v4361_v29  ;;  %v4603_v30 = vpop.permute.xlu2 %1791  ;;  %v4605_v22 = vpop.permute.xlu1 %1795  ;;  %v4614_v13 = vperm.slane %v3569_v3, 0 }
 0x1b5   : > { %3020 = vmatmul.msk.bf16.vlgmr.msra.gmra.mxu2 %vm871_vm4, %v4382_v58  ;;  %3022 = vmatmul.msk.bf16.vlgmr.msra.gmra.mxu3 %vm871_vm4, %v4382_v58  ;;  %v1041_v58 = vmul.f32 %v946_v55, %v4319_v41  ;;  %v1057_v55 = vmul.f32 %v984_v26, %v4302_v1 }
 0x1b6   : > { %v2163_v56 = vadd.f32 %v4614_v13, %v2150_v48 }
 0x1b7   : > { %v1049_v51 = vadd.f32 %v1041_v58, %v1033_v57 }
 0x1b8   : > { %v1001_v36 = vpop.f32.mrf.mxu2  ;;  %v1020_v60 = vpop.f32.mrf.mxu3 }
 0x1b9   : > { %v1086_v16 = vmul.f32 %v4495_v17, %v1001_v36  ;;  %v1087_v54 = vmul.f32 %v4495_v17, %v1020_v60  ;;  %v4594_v20 = vpop.f32.mrf.mxu0  ;;  %v4596_v31 = vpop.f32.mrf.mxu1  ;;  %v2152_v17 = vmul.f32 %v4590_v63, %v4299_v62  ;;  %v1065_v61 = vadd.f32 %v1057_v55, %v1049_v51 }
 0x1ba   : > { %v4642_v51 = vpop.permute.xlu0 %1759 }
 0x1bb   : > { %v1094_v50 = vadd.f32 %v1086_v16, %v1062_v0  ;;  %v1095_v27 = vadd.f32 %v1087_v54, %v1063_v2  ;;  %v2180_v0 = vmul.f32 %v4607_v32, %v4319_v41  ;;  %v3570_v2 = vld [vmem:[#allocation13 + $0x2] ss:$4 sm:$0x3]  ;;  %v2165_v52 = vadd.f32 %v4614_v13, %v2152_v17 }
 0x1bc   : > { %v4621_v46 = vperm.slane %v3570_v2, 0  ;;  %v2186_v17 = vadd.f32 %v2178_v47, %v2163_v56  ;;  %v1032_v2 = vmul.f32 %v4535_v6, %v4299_v62  ;;  %v1080_v41 = vpop.permute.xlu2 %1079  ;;  %v4648_v53 = vpop.permute.xlu1 %1823 }
 0x1bd   : > { %v2188_v3 = vadd.f32 %v2180_v0, %v2165_v52 }
 0x1be   : > { %v2201_v49 = vmul.f32 %v4621_v46, %v4328_v45  ;;  %v2203_v26 = vmul.f32 %v4621_v46, %v4302_v1  ;;  %v1056_v45 = vmul.f32 %v4563_v23, %v4302_v1  ;;  %v1048_v6 = vadd.f32 %v1040_v38, %v1032_v2 }
 0x1bf   : > { %v1060_v38 = vmul.f32 %v4594_v20, %v4263_v24 }
 0x1c0   : > { %v1003_v36 = vpop.f32.mrf.mxu2  ;;  %v1022_v60 = vpop.f32.mrf.mxu3  ;;  %v2209_v0 = vadd.f32 %v2201_v49, %v2186_v17  ;;  %v2211_v62 = vadd.f32 %v2203_v26, %v2188_v3  ;;  %v1064_v23 = vadd.f32 %v1056_v45, %v1048_v6  ;;  %v1036_v3 = vmul.f32 %v4513_v35, %v4274_v34 }
 0x1c1   : > { %v1089_v16 = vmul.f32 %v4507_v28, %v1022_v60  ;;  %v1207_v54 = vpop.f32.mrf.mxu0  ;;  %v1226_v44 = vpop.f32.mrf.mxu1  ;;  %v1088_v1 = vmul.f32 %v4507_v28, %v1003_v36  ;;  %v1044_v28 = vmul.f32 %v4569_v25, %v4272_v33  ;;  %v2184_v35 = vmul.f32 %v4607_v32, %v4272_v33 }
 0x1c2   : > { %v1366_v48 = vmul.f32 %v1352_v15, %v1207_v54  ;;  %v1367_v58 = vmul.f32 %v1352_v15, %v1226_v44  ;;  %3535 = vtanh.f32 %v2209_v0 }
 0x1c3   : > { %v1097_v57 = vadd.f32 %v1089_v16, %v1065_v61  ;;  %3537 = vtanh.f32 %v2211_v62  ;;  %v2154_v16 = vmul.f32 %v4590_v63, %v4253_v19 }
 0x1c4   : > { %v4638_v39 = vadd.f32 %v1366_v48, %v1094_v50  ;;  %v4640_v55 = vadd.f32 %v1367_v58, %v1095_v27  ;;  %v2156_v27 = vmul.f32 %v4590_v63, %v4274_v34  ;;  %v4667_v48 = vpop.permute.xlu2 %1827  ;;  %v1052_v58 = vadd.f32 %v1044_v28, %v1036_v3  ;;  %v1360_v17 = vpop.permute.xlu1 %1359 }
 0x1c5   : > { %3021 = vmatmul.msk.bf16.gmra.mxu2 %vm871_vm4, %v4361_v29  ;;  %3023 = vmatmul.msk.bf16.gmra.mxu3 %vm871_vm4, %v4361_v29  ;;  %v1096_v29 = vadd.f32 %v1088_v1, %v1064_v23  ;;  %v2182_v63 = vmul.f32 %v4607_v32, %v4251_v18  ;;  %v2167_v34 = vadd.f32 %v4614_v13, %v2154_v16 }
 0x1c6   : > { %v2169_v25 = vadd.f32 %v4614_v13, %v2156_v27  ;;  %v2207_v13 = vmul.f32 %v4621_v46, %v4263_v24 }
 0x1c7   : > { %v2190_v27 = vadd.f32 %v2182_v63, %v2167_v34 }
 0x1c8   : > { %v1006_v15 = vpop.f32.mrf.mxu2  ;;  %v1025_v50 = vpop.f32.mrf.mxu3  ;;  %v2192_v6 = vadd.f32 %v2184_v35, %v2169_v25 }
 0x1c9   : > { %v1090_v47 = vmul.f32 %v1080_v41, %v1006_v15  ;;  %v1091_v56 = vmul.f32 %v1080_v41, %v1025_v50  ;;  %v1209_v52 = vpop.f32.mrf.mxu0  ;;  %v1228_v60 = vpop.f32.mrf.mxu1 }
 0x1ca   : > { %v1368_v49 = vmul.f32 %v4509_v5, %v1209_v52  ;;  %v1369_v26 = vmul.f32 %v4509_v5, %v1228_v60  ;;  %v1061_v5 = vmul.f32 %v4596_v31, %v4263_v24  ;;  %v1068_v31 = vadd.f32 %v1060_v38, %v1052_v58 }
 0x1cb   : > { %v1098_v36 = vadd.f32 %v1090_v47, %v4578_v12  ;;  %v1099_v61 = vadd.f32 %v1091_v56, %v4580_v59  ;;  %v1084_v12 = vpop.permute.xlu0 %1083  ;;  %v3536_v59 = vpop.eup %3535  ;;  %v2215_v47 = vadd.f32 %v2207_v13, %v2192_v6 }
 0x1cc   : > { %v1376_v54 = vadd.f32 %v1368_v49, %v1096_v29  ;;  %v1377_v44 = vadd.f32 %v1369_v26, %v1097_v57  ;;  %v3538_v19 = vpop.eup %3537  ;;  %v1069_v2 = vadd.f32 %v1061_v5, %v4576_v9  ;;  %v2205_v9 = vmul.f32 %v4621_v46, %v4234_v8  ;;  %v1364_v56 = vpop.permute.xlu2 %1363 }
 0x1cd   : > { %v2225_v18 = vpack.c.bf16 %v3538_v19, %v3536_v59  ;;  %3539 = vtanh.f32 %v2215_v47 }
 0x1ce   : > { %v2213_v29 = vadd.f32 %v2205_v9, %v2190_v27 }
 0x1d0   : > { %v1008_v20 = vpop.f32.mrf.mxu2  ;;  %v1027_v57 = vpop.f32.mrf.mxu3  ;;  %3541 = vtanh.f32 %v2213_v29 }
 0x1d1   : > { %v1092_v45 = vmul.f32 %v1084_v12, %v1008_v20  ;;  %v1093_v0 = vmul.f32 %v1084_v12, %v1027_v57  ;;  %v1212_v41 = vpop.f32.mrf.mxu0  ;;  %v1231_v62 = vpop.f32.mrf.mxu1 }
 0x1d2   : > { %v1370_v1 = vmul.f32 %v1360_v17, %v1212_v41  ;;  %v1371_v23 = vmul.f32 %v1360_v17, %v1231_v62 }
 0x1d3   : > { %v1100_v15 = vadd.f32 %v1092_v45, %v1068_v31  ;;  %v1101_v50 = vadd.f32 %v1093_v0, %v1069_v2  ;;  %v3540_v46 = vpop.eup %3539  ;;  %v1392_v57 = vpop.permute.xlu0 %1391 }
 0x1d4   : > { %v1378_v33 = vadd.f32 %v1370_v1, %v1098_v36  ;;  %v1379_v32 = vadd.f32 %v1371_v23, %v1099_v61 }
 0x1d5   : > { %2303 = vmatmul.bf16.vlgmr.msrb.gmra.mxu3 %v2225_v18 }
 0x1d6   : > { %v3542_v17 = vpop.eup %3541 }
 0x1d7   : > { %v2226_v34 = vpack.c.bf16 %v3540_v46, %v3542_v17 }
 0x1d8   : > { %v1245_v52 = vpop.f32.mrf.mxu2  ;;  %v1264_v60 = vpop.f32.mrf.mxu3 }
 0x1d9   : > { %v1398_v49 = vmul.f32 %v4518_v40, %v1245_v52  ;;  %v1399_v26 = vmul.f32 %v4518_v40, %v1264_v60  ;;  %v1214_v28 = vpop.f32.mrf.mxu0  ;;  %v1233_v16 = vpop.f32.mrf.mxu1 }
 0x1da   : > { %v1372_v3 = vmul.f32 %v1364_v56, %v1214_v28  ;;  %v1373_v38 = vmul.f32 %v1364_v56, %v1233_v16 }
 0x1db   : > { %v1406_v24 = vadd.f32 %v1398_v49, %v4638_v39  ;;  %v1407_v36 = vadd.f32 %v1399_v26, %v4640_v55 }
 0x1dc   : > { %v1380_v61 = vadd.f32 %v1372_v3, %v1100_v15  ;;  %v1381_v8 = vadd.f32 %v1373_v38, %v1101_v50 }
 0x1e0   : > { %v1247_v5 = vpop.f32.mrf.mxu2  ;;  %v1266_v25 = vpop.f32.mrf.mxu3 }
 0x1e1   : > { %v1400_v12 = vmul.f32 %v4520_v42, %v1247_v5  ;;  %v1401_v59 = vmul.f32 %v4520_v42, %v1266_v25  ;;  %v1283_v40 = vpop.f32.mrf.mxu0  ;;  %v1302_v58 = vpop.f32.mrf.mxu1 }
 0x1e2   : > { %v1430_v19 = vmul.f32 %v4539_v11, %v1283_v40  ;;  %v1431_v63 = vmul.f32 %v4539_v11, %v1302_v58  ;;  %v1396_v11 = vpop.permute.xlu1 %1395  ;;  %v3285_v40 = vld [vmem:[#allocation8 + $0x78] sm:$0xff] }
 0x1e3   : > { %v4688_v39 = vadd.f32 %v1400_v12, %v1376_v54  ;;  %v4690_v55 = vadd.f32 %v1401_v59, %v1377_v44  ;;  %v1424_v54 = vpop.permute.xlu2 %1423  ;;  %v3277_v59 = vld [vmem:[#allocation8 + $0x38] sm:$0xff]  ;;  %2031 = vmatpush.bf16.msra.mxu1 %v3285_v40 }
 0x1e4   : > { %v1438_v35 = vadd.f32 %v1430_v19, %v1406_v24  ;;  %v1439_v20 = vadd.f32 %v1431_v63, %v1407_v36  ;;  %2012 = vmatpush.bf16.msra.mxu0 %v3277_v59  ;;  %v3276_v19 = vld [vmem:[#allocation8 + $0x30] sm:$0xff] }
 0x1e5   : > { %2308 = vmatmul.bf16.gmra.mxu3 %v2226_v34 }
 0x1e8   : > { %v1250_v31 = vpop.f32.mrf.mxu2  ;;  %v1269_v2 = vpop.f32.mrf.mxu3  ;;  %2013 = vmatpush.bf16.msra.mxu0 %v3276_v19 }
 0x1e9   : > { %v1402_v45 = vmul.f32 %v1392_v57, %v1250_v31  ;;  %v1403_v42 = vmul.f32 %v1392_v57, %v1269_v2  ;;  %v4692_v0 = vpop.f32.mrf.mxu0  ;;  %v4694_v41 = vpop.f32.mrf.mxu1  ;;  %v3283_v57 = vld [vmem:[#allocation8 + $0x68] sm:$0xff]  ;;  %v3274_v31 = vld [vmem:[#allocation8 + $0x20] sm:$0xff] }
 0x1ea   : > { %v1433_v59 = vmul.f32 %v4598_v21, %v4694_v41 }
 0x1eb   : > { %v1410_v62 = vadd.f32 %v1402_v45, %v1378_v33  ;;  %v1411_v6 = vadd.f32 %v1403_v42, %v1379_v32 }
 0x1f0   : > { %v1252_v1 = vpop.f32.mrf.mxu2  ;;  %v1271_v44 = vpop.f32.mrf.mxu3 }
 0x1f1   : > { %v1404_v23 = vmul.f32 %v1396_v11, %v1252_v1  ;;  %v1405_v15 = vmul.f32 %v1396_v11, %v1271_v44  ;;  %v1288_v50 = vpop.f32.mrf.mxu0  ;;  %v1307_v18 = vpop.f32.mrf.mxu1  ;;  %v3273_v11 = vld [vmem:[#allocation8 + $0x18] sm:$0xff] }
 0x1f2   : > { %v1434_v27 = vmul.f32 %v1424_v54, %v1288_v50  ;;  %v1435_v13 = vmul.f32 %v1424_v54, %v1307_v18  ;;  %v3272_v50 = vld [vmem:[#allocation8 + $0x10] sm:$0xff] }
 0x1f3   : > { %v4696_v9 = vadd.f32 %v1404_v23, %v1380_v61  ;;  %v4698_v47 = vadd.f32 %v1405_v15, %v1381_v8  ;;  %v1456_v61 = vpop.permute.xlu2 %1455  ;;  %v3281_v15 = vld [vmem:[#allocation8 + $0x58] sm:$0xff] }
 0x1f4   : > { %v1442_v56 = vadd.f32 %v1434_v27, %v1410_v62  ;;  %v1443_v52 = vadd.f32 %v1435_v13, %v1411_v6  ;;  %v3282_v6 = vld [vmem:[#allocation8 + $0x60] sm:$0xff]  ;;  %v3280_v13 = vld [vmem:[#allocation8 + $0x50] sm:$0xff] }
 0x1f8   : > { %v1321_v60 = vpop.f32.mrf.mxu2  ;;  %v1340_v29 = vpop.f32.mrf.mxu3 }
 0x1f9   : > { %v1462_v33 = vmul.f32 %v4541_v43, %v1321_v60  ;;  %v1463_v32 = vmul.f32 %v4541_v43, %v1340_v29  ;;  %v4702_v49 = vpop.f32.mrf.mxu0  ;;  %v4704_v26 = vpop.f32.mrf.mxu1  ;;  %v3279_v29 = vld [vmem:[#allocation8 + $0x48] sm:$0xff] }
 0x1fb   : > { %v4706_v28 = vadd.f32 %v1462_v33, %v1438_v35  ;;  %v4708_v16 = vadd.f32 %v1463_v32, %v1439_v20  ;;  %v3284_v35 = vld [vmem:[#allocation8 + $0x70] sm:$0xff]  ;;  %v3275_v20 = vld [vmem:[#allocation8 + $0x28] sm:$0xff]  ;;  %v3270_v33 = vld [vmem:[#allocation8] sm:$0xff]  ;;  %v4742_v32 = vpop.permute.xlu1 %1427  ;;  %v4762_v41 = vpop.permute.xlu2 %1739 }
 0x1fc   : > { %2032 = vmatpush.bf16.msra.mxu1 %v3284_v35  ;;  %2014 = vmatpush.bf16.msra.mxu0 %v3275_v20 }
 0x200   : > { %v4710_v3 = vpop.f32.mrf.mxu2  ;;  %v4712_v38 = vpop.f32.mrf.mxu3  ;;  %2033 = vmatpush.bf16.msra.mxu1 %v3283_v57  ;;  %2015 = vmatpush.bf16.msra.mxu0 %v3274_v31 }
 0x201   : > { %v4714_v24 = vpop.f32.mrf.mxu0  ;;  %v4716_v36 = vpop.f32.mrf.mxu1  ;;  %v1464_v57 = vmul.f32 %v4551_v10, %v4710_v3  ;;  %v1465_v31 = vmul.f32 %v4551_v10, %v4712_v38 }
 0x202   : > { %v1742_v40 = vmul.f32 %v4557_v14, %v4714_v24  ;;  %v1743_v19 = vmul.f32 %v4557_v14, %v4716_v36  ;;  %v1441_v14 = vadd.f32 %v1433_v59, %v4690_v55  ;;  %v3316_v36 = vld [vmem:[#allocation16 + $0x70] sm:$0xff] }
 0x204   : > { %2034 = vmatpush.bf16.msra.mxu1 %v3282_v6  ;;  %2016 = vmatpush.bf16.msra.mxu0 %v3273_v11  ;;  %v1750_v11 = vadd.f32 %v1742_v40, %v4706_v28 }
 0x208   : > { %v1326_v8 = vpop.f32.mrf.mxu2  ;;  %v1345_v46 = vpop.f32.mrf.mxu3  ;;  %2035 = vmatpush.bf16.msra.mxu1 %v3281_v15  ;;  %2017 = vmatpush.bf16.msra.mxu0 %v3272_v50  ;;  %v1751_v15 = vadd.f32 %v1743_v19, %v4708_v16  ;;  %v1473_v50 = vadd.f32 %v1465_v31, %v1441_v14 }
 0x209   : > { %v1466_v43 = vmul.f32 %v1456_v61, %v1326_v8  ;;  %v1467_v5 = vmul.f32 %v1456_v61, %v1345_v46  ;;  %v4722_v58 = vpop.f32.mrf.mxu0  ;;  %v4724_v17 = vpop.f32.mrf.mxu1  ;;  %v3278_v61 = vld [vmem:[#allocation8 + $0x40] sm:$0xff] }
 0x20a   : > { %v1744_v3 = vmul.f32 %v4565_v4, %v4722_v58  ;;  %v1745_v10 = vmul.f32 %v4565_v4, %v4724_v17  ;;  %v1854_v4 = vld [vmem:[%s4925_s3] sm:$0x3] }
 0x20b   : > { %v4718_v25 = vadd.f32 %v1466_v43, %v1442_v56  ;;  %v4720_v12 = vadd.f32 %v1467_v5, %v1443_v52  ;;  %v3271_v56 = vld [vmem:[#allocation8 + $0x8] sm:$0xff]  ;;  %v1432_v5 = vmul.f32 %v4598_v21, %v4692_v0  ;;  %v1736_v0 = vpop.permute.xlu1 %1735  ;;  %v4785_v59 = vperm.slane %v1854_v4, 1 }
 0x20c   : > { %2036 = vmatpush.bf16.msra.mxu1 %v3280_v13  ;;  %2018 = vmatpush.bf16.msra.mxu0 %v3271_v56  ;;  %v3317_v43 = vld [vmem:[#allocation16 + $0x78] sm:$0xff] }
 0x20d   : > { %v1440_v24 = vadd.f32 %v1432_v5, %v4688_v39  ;;  %v3315_v39 = vld [vmem:[#allocation16 + $0x68] sm:$0xff]  ;;  %v4783_v5 = vperm.slane %v1854_v4, 0 }
 0x20f   : > { %v1472_v55 = vadd.f32 %v1464_v57, %v1440_v24 }
 0x210   : > { %v4726_v63 = vpop.f32.mrf.mxu2  ;;  %v4728_v34 = vpop.f32.mrf.mxu3  ;;  %2037 = vmatpush.bf16.msra.mxu1 %v3279_v29  ;;  %2019 = vmatpush.bf16.msra.mxu0 %v3270_v33 }
 0x211   : > { %v4730_v2 = vpop.f32.mrf.mxu0  ;;  %v4732_v45 = vpop.f32.mrf.mxu1 }
 0x214   : > { %2038 = vmatpush.bf16.msra.mxu1 %v3278_v61 }
 0x218   : > { %v1621_v42 = vpop.f32.mrf.mxu2  ;;  %v1640_v62 = vpop.f32.mrf.mxu3  ;;  %2477 = vmatpush.bf16.msrb.mxu1 %v3317_v43 }
 0x219   : > { %v4734_v44 = vpop.f32.mrf.mxu0  ;;  %v4736_v23 = vpop.f32.mrf.mxu1  ;;  %v1774_v6 = vmul.f32 %v4642_v51, %v1621_v42  ;;  %v1775_v21 = vmul.f32 %v4642_v51, %v1640_v62 }
 0x21b   : > { %v1782_v13 = vadd.f32 %v1774_v6, %v1750_v11  ;;  %v1783_v28 = vadd.f32 %v1775_v21, %v1751_v15  ;;  %v1436_v21 = vmul.f32 %v4742_v32, %v4702_v49  ;;  %v3313_v15 = vld [vmem:[#allocation16 + $0x58] sm:$0xff] }
 0x21c   : > { %2478 = vmatpush.bf16.msrb.mxu1 %v3316_v36 }
 0x220   : > { %v1623_v54 = vpop.f32.mrf.mxu2  ;;  %v1642_v1 = vpop.f32.mrf.mxu3  ;;  %2479 = vmatpush.bf16.msrb.mxu1 %v3315_v39 }
 0x221   : > { %v1659_v52 = vpop.f32.mrf.mxu0  ;;  %v1678_v60 = vpop.f32.mrf.mxu1  ;;  %v1776_v16 = vmul.f32 %v4567_v7, %v1623_v54  ;;  %v1777_v56 = vmul.f32 %v4567_v7, %v1642_v1  ;;  %v3314_v54 = vld [vmem:[#allocation16 + $0x60] sm:$0xff] }
 0x222   : > { %v1806_v51 = vmul.f32 %v4603_v30, %v1659_v52  ;;  %v1807_v62 = vmul.f32 %v4603_v30, %v1678_v60  ;;  %v1752_v52 = vadd.f32 %v1744_v3, %v1472_v55  ;;  %v1753_v30 = vadd.f32 %v1745_v10, %v1473_v50  ;;  %v1460_v60 = vpop.permute.xlu0 %1459  ;;  %v1768_v7 = vpop.permute.xlu1 %1767 }
 0x223   : > { %v1772_v1 = vpop.permute.xlu2 %1771  ;;  %v1468_v3 = vmul.f32 %v1460_v60, %v4726_v63  ;;  %v3312_v63 = vld [vmem:[#allocation16 + $0x50] sm:$0xff]  ;;  %v1469_v55 = vmul.f32 %v1460_v60, %v4728_v34  ;;  %v1749_v34 = vmul.f32 %v4762_v41, %v4736_v23 }
 0x224   : > { %v1814_v29 = vadd.f32 %v1806_v51, %v1782_v13  ;;  %v1815_v33 = vadd.f32 %v1807_v62, %v1783_v28  ;;  %v1784_v40 = vadd.f32 %v1776_v16, %v1752_v52  ;;  %v1785_v19 = vadd.f32 %v1777_v56, %v1753_v30  ;;  %2480 = vmatpush.bf16.msrb.mxu1 %v3314_v54 }
 0x225   : > { %v1747_v51 = vmul.f32 %v1736_v0, %v4732_v45 }
 0x227   : > { %v1755_v4 = vadd.f32 %v1747_v51, %v4720_v12 }
 0x228   : > { %v4738_v18 = vpop.f32.mrf.mxu2  ;;  %v4740_v27 = vpop.f32.mrf.mxu3  ;;  %2481 = vmatpush.bf16.msrb.mxu1 %v3313_v15 }
 0x229   : > { %v1661_v35 = vpop.f32.mrf.mxu0  ;;  %v1680_v20 = vpop.f32.mrf.mxu1  ;;  %v1778_v13 = vmul.f32 %v1768_v7, %v4738_v18  ;;  %v1779_v28 = vmul.f32 %v1768_v7, %v4740_v27 }
 0x22a   : > { %v1808_v61 = vmul.f32 %v4605_v22, %v1661_v35  ;;  %v1809_v43 = vmul.f32 %v4605_v22, %v1680_v20  ;;  %v1437_v22 = vmul.f32 %v4742_v32, %v4704_v26  ;;  %v1444_v26 = vadd.f32 %v1436_v21, %v4696_v9  ;;  %v1800_v9 = vpop.permute.xlu0 %1799  ;;  %v1804_v16 = vpop.permute.xlu1 %1803  ;;  %v3310_v21 = vld [vmem:[#allocation16 + $0x40] sm:$0xff] }
 0x22b   : > { %v1746_v32 = vmul.f32 %v1736_v0, %v4730_v2  ;;  %v1787_v54 = vadd.f32 %v1779_v28, %v1755_v4  ;;  %v3290_v28 = vld [vmem:[#allocation11 + $0x20] sm:$0xff] }
 0x22c   : > { %v1816_v24 = vadd.f32 %v1808_v61, %v1784_v40  ;;  %v1817_v14 = vadd.f32 %v1809_v43, %v1785_v19  ;;  %v1445_v62 = vadd.f32 %v1437_v22, %v4698_v47  ;;  %v1476_v50 = vadd.f32 %v1468_v3, %v1444_v26  ;;  %v1832_v47 = vpop.permute.xlu2 %1831  ;;  %2482 = vmatpush.bf16.msrb.mxu1 %v3312_v63 }
 0x22e   : > { %v1477_v61 = vadd.f32 %v1469_v55, %v1445_v62  ;;  %v3293_v55 = vld [vmem:[#allocation11 + $0x38] sm:$0xff] }
 0x22f   : > { %2124 = vmatpush.bf16.msrb.mxu2 %v3293_v55 }
 0x230   : > { %v4744_v8 = vpop.f32.mrf.mxu2  ;;  %v4746_v46 = vpop.f32.mrf.mxu3 }
 0x231   : > { %v1683_v57 = vpop.f32.mrf.mxu1 }
 0x232   : > { %v1811_v30 = vmul.f32 %v1800_v9, %v1683_v57  ;;  %v1836_v22 = vpop.permute.xlu1 %1835 }
 0x234   : > { %v1819_v57 = vadd.f32 %v1811_v30, %v1787_v54 }
 0x238   : > { %v1697_v38 = vpop.f32.mrf.mxu2  ;;  %v1716_v42 = vpop.f32.mrf.mxu3 }
 0x239   : > { %v1838_v58 = vmul.f32 %v4648_v53, %v1697_v38  ;;  %v1839_v17 = vmul.f32 %v4648_v53, %v1716_v42  ;;  %v1664_v53 = vpop.f32.mrf.mxu0  ;;  %v1685_v7 = vpop.f32.mrf.mxu1 }
 0x23a   : > { %v1810_v27 = vmul.f32 %v1800_v9, %v1664_v53  ;;  %v3288_v9 = vld [vmem:[#allocation11 + $0x10] sm:$0xff] }
 0x23b   : > { %v1846_v31 = vadd.f32 %v1838_v58, %v1814_v29  ;;  %v1847_v6 = vadd.f32 %v1839_v17, %v1815_v33  ;;  %v1754_v58 = vadd.f32 %v1746_v32, %v4718_v25  ;;  %v1748_v17 = vmul.f32 %v4762_v41, %v4734_v44  ;;  %v3311_v33 = vld [vmem:[#allocation16 + $0x48] sm:$0xff] }
 0x23c   : > { %v1780_v25 = vmul.f32 %v1772_v1, %v4744_v8  ;;  %v1781_v44 = vmul.f32 %v1772_v1, %v4746_v46  ;;  %v1757_v41 = vadd.f32 %v1749_v34, %v1477_v61  ;;  %2483 = vmatpush.bf16.msrb.mxu1 %v3311_v33  ;;  %v3309_v61 = vld [vmem:[#allocation16 + $0x38] sm:$0xff] }
 0x23d   : > { %v1860_v10 = vadd.f32 %v4783_v5, %v1846_v31  ;;  %v1861_v38 = vadd.f32 %v4785_v59, %v1847_v6  ;;  %v1786_v43 = vadd.f32 %v1778_v13, %v1754_v58  ;;  %v1756_v23 = vadd.f32 %v1748_v17, %v1476_v50  ;;  %v3292_v50 = vld [vmem:[#allocation11 + $0x30] sm:$0xff]  ;;  %v3291_v13 = vld [vmem:[#allocation11 + $0x28] sm:$0xff]  ;;  %2458 = vmatpush.bf16.msrb.mxu0 %v3309_v61 }
 0x23e   : > { %v1813_v6 = vmul.f32 %v1804_v16, %v1685_v7  ;;  %2125 = vmatpush.bf16.msrb.mxu2 %v3292_v50 }
 0x23f   : > { %v1868_v2 = vmax.f32 %v1860_v10, 0.0  ;;  %v1869_v56 = vmax.f32 %v1861_v38, 0.0  ;;  %v1818_v53 = vadd.f32 %v1810_v27, %v1786_v43 }
 0x240   : > { %v1699_v35 = vpop.f32.mrf.mxu2  ;;  %v1718_v20 = vpop.f32.mrf.mxu3  ;;  %2484 = vmatpush.bf16.msrb.mxu1 %v3310_v21 }
 0x241   : > { %v1840_v36 = vmul.f32 %v4667_v48, %v1699_v35  ;;  %v1841_v11 = vmul.f32 %v4667_v48, %v1718_v20  ;;  %v1666_v12 = vpop.f32.mrf.mxu0  ;;  %v1788_v35 = vadd.f32 %v1780_v25, %v1756_v23  ;;  %v1789_v20 = vadd.f32 %v1781_v44, %v1757_v41  ;;  %v3306_v41 = vld [vmem:[#allocation16 + $0x20] sm:$0xff] }
 0x242   : > { %v1812_v31 = vmul.f32 %v1804_v16, %v1666_v12  ;;  %2126 = vmatpush.bf16.msrb.mxu2 %v3291_v13  ;;  %v3287_v16 = vld [vmem:[#allocation11 + $0x8] sm:$0xff]  ;;  %v3308_v12 = vld [vmem:[#allocation16 + $0x30] sm:$0xff] }
 0x243   : > { %v1848_v49 = vadd.f32 %v1840_v36, %v1816_v24  ;;  %v1849_v42 = vadd.f32 %v1841_v11, %v1817_v14  ;;  %v1821_v1 = vadd.f32 %v1813_v6, %v1789_v20  ;;  %2459 = vmatpush.bf16.msrb.mxu0 %v3308_v12  ;;  %v3302_v6 = vld [vmem:[#allocation16] sm:$0xff] }
 0x244   : > { %v1820_v46 = vadd.f32 %v1812_v31, %v1788_v35  ;;  %v3303_v31 = vld [vmem:[#allocation16 + $0x8] sm:$0xff]  ;;  %v3515_v35 = vld [vmem:[%s4933_s11] ss:$0 sm:$0xff] }
 0x245   : > { %v1862_v48 = vadd.f32 %v4783_v5, %v1848_v49  ;;  %v1863_v39 = vadd.f32 %v4785_v59, %v1849_v42  ;;  %v3573_v12 = vld [vmem:[%s4188_s26 + $0x10] sm:$0xff] }
 0x246   : > { %2127 = vmatpush.bf16.msrb.mxu2 %v3290_v28 }
 0x247   : > { %v1870_v45 = vmax.f32 %v1862_v48, 0.0  ;;  %v1871_v0 = vmax.f32 %v1863_v39, 0.0 }
 0x248   : > { %v1702_v18 = vpop.f32.mrf.mxu2  ;;  %v1721_v52 = vpop.f32.mrf.mxu3 }
 0x249   : > { %v1876_v60 = vpack.c.bf16 %v1870_v45, %v1868_v2  ;;  %v1877_v29 = vpack.c.bf16 %v1871_v0, %v1869_v56  ;;  %v1842_v40 = vmul.f32 %v1832_v47, %v1702_v18  ;;  %v1843_v19 = vmul.f32 %v1832_v47, %v1721_v52  ;;  %v3286_v2 = vld [vmem:[#allocation11] sm:$0xff]  ;;  %v3516_v0 = vld [vmem:[#allocation10] ss:$0 sm:$0xff] }
 0x24b   : > { %2020 = vmatmul.bf16.vlgmr.msra.gmra.mxu0 %v1876_v60  ;;  %2039 = vmatmul.bf16.vlgmr.msra.gmra.mxu1 %v1877_v29  ;;  %v1850_v8 = vadd.f32 %v1842_v40, %v1818_v53  ;;  %v1851_v24 = vadd.f32 %v1843_v19, %v1819_v57  ;;  %v3307_v19 = vld [vmem:[#allocation16 + $0x28] sm:$0xff]  ;;  %v3305_v53 = vld [vmem:[#allocation16 + $0x18] sm:$0xff]  ;;  %v3304_v57 = vld [vmem:[#allocation16 + $0x10] sm:$0xff] }
 0x24c   : > { %2460 = vmatpush.bf16.msrb.mxu0 %v3307_v19 }
 0x24d   : > { %v1864_v3 = vadd.f32 %v4783_v5, %v1850_v8  ;;  %v1865_v10 = vadd.f32 %v4785_v59, %v1851_v24 }
 0x24f   : > { %v1872_v32 = vmax.f32 %v1864_v3, 0.0  ;;  %v1873_v51 = vmax.f32 %v1865_v10, 0.0 }
 0x250   : > { %v1704_v14 = vpop.f32.mrf.mxu2  ;;  %v1723_v36 = vpop.f32.mrf.mxu3  ;;  %2461 = vmatpush.bf16.msrb.mxu0 %v3306_v41 }
 0x251   : > { %v1844_v11 = vmul.f32 %v1836_v22, %v1704_v14  ;;  %v1845_v15 = vmul.f32 %v1836_v22, %v1723_v36  ;;  %v3517_v36 = vld [vmem:[%s4929_s7] ss:$0 sm:$0xff] }
 0x253   : > { %v1852_v38 = vadd.f32 %v1844_v11, %v1820_v46  ;;  %v1853_v49 = vadd.f32 %v1845_v15, %v1821_v1 }
 0x254   : > { %2462 = vmatpush.bf16.msrb.mxu0 %v3305_v53 }
 0x255   : > { %v1866_v42 = vadd.f32 %v4783_v5, %v1852_v38  ;;  %v1867_v26 = vadd.f32 %v4785_v59, %v1853_v49  ;;  %v4962_v5 = vld [vmem:[#allocation24_spill] sm:$0xff]  ;;  %v3289_v59 = vld [vmem:[#allocation11 + $0x18] sm:$0xff] }
 0x256   : > { %2128 = vmatpush.bf16.msrb.mxu2 %v3289_v59 }
 0x257   : > { %v1874_v62 = vmax.f32 %v1866_v42, 0.0  ;;  %v1875_v48 = vmax.f32 %v1867_v26, 0.0 }
 0x258   : > { %2463 = vmatpush.bf16.msrb.mxu0 %v3304_v57  ;;  %v2304_v21 = vpop.f32.mrf.mxu3 }
 0x259   : > { %v1878_v39 = vpack.c.bf16 %v1874_v62, %v1872_v32  ;;  %v1879_v63 = vpack.c.bf16 %v1875_v48, %v1873_v51  ;;  %v2305_v20 = vadd.f32 %v3515_v35, %v2304_v21 }
 0x25a   : > { %2129 = vmatpush.bf16.msrb.mxu2 %v3288_v9 }
 0x25b   : > { %2025 = vmatmul.bf16.gmra.mxu0 %v1878_v39  ;;  %2044 = vmatmul.bf16.gmra.mxu1 %v1879_v63  ;;  %3543 = vtanh.f32 %v2305_v20 }
 0x25c   : > { %2464 = vmatpush.bf16.msrb.mxu0 %v3303_v31  ;;  %v3574_v31 = vld [vmem:[%s4188_s26 + $0x18] sm:$0xff] }
 0x25e   : > { %2130 = vmatpush.bf16.msrb.mxu2 %v3287_v16  ;;  %v3518_v16 = vld [vmem:[%s4963_s8] ss:$0 sm:$0xff] }
 0x260   : > { %2465 = vmatpush.bf16.msrb.mxu0 %v3302_v6  ;;  %v2306_v22 = vpop.f32.mrf.mxu3 }
 0x261   : > { %v2307_v8 = vadd.f32 %v3515_v35, %v2306_v22  ;;  %v3544_v11 = vpop.eup %3543 }
 0x262   : > { %2131 = vmatpush.bf16.msrb.mxu2 %v3286_v2 }
 0x263   : > { %3545 = vtanh.f32 %v2307_v8 }
 0x268   : > { %v2309_v14 = vpop.f32.mrf.mxu3 }
 0x269   : > { %v3546_v3 = vpop.eup %3545  ;;  %v2310_v26 = vadd.f32 %v3515_v35, %v2309_v14 }
 0x26b   : > { %2485 = vmatmul.bf16.vlgmr.msrb.gmra.mxu1 %v4348_v37  ;;  %3547 = vtanh.f32 %v2310_v26 }
 0x270   : > { %v2311_v49 = vpop.f32.mrf.mxu3 }
 0x271   : > { %v2312_v32 = vadd.f32 %v3515_v35, %v2311_v49  ;;  %v3548_v39 = vpop.eup %3547 }
 0x273   : > { %3549 = vtanh.f32 %v2312_v32 }
 0x279   : > { %v3550_v55 = vpop.eup %3549 }
 0x27b   : > { %2490 = vmatmul.bf16.gmra.mxu1 %v4962_v5  ;;  %v2496_v5 = vlaneseq }
 0x27d   : > { %v2497_v59 = vand.u32 127, %v2496_v5 }
 0x27f   : > { %vm2498_vm9 = vcmp.lt.s32.totalorder %v2497_v59, 8  ;;  %vm2507_vm10 = vcmp.ge.s32.totalorder %v2497_v59, 3  ;;  %vm2508_vm11 = vcmp.lt.s32.totalorder %v2497_v59, 7 }
 0x280   : > { %vm4832_vm12 = vmand %vm2507_vm10, %vm2508_vm11  ;;  %v2502_v6 = vsel %vm2498_vm9, %v3574_v31, 0.0 }
 0x2c8   : > { %v2021_v56 = vpop.f32.mrf.mxu0  ;;  %v2040_v45 = vpop.f32.mrf.mxu1 }
 0x2c9   : > { %v2022_v47 = vadd.f32 %v3516_v0, %v2021_v56 }
 0x2cb   : > { %v2041_v17 = vadd.f32 %v2040_v45, %v2022_v47  ;;  %v3571_v45 = vld [vmem:[%s4188_s26] sm:$0xff] }
 0x2cd   : > { %v2050_v37 = vmax.f32 %v2041_v17, 0.0 }
 0x2d0   : > { %v2023_v58 = vpop.f32.mrf.mxu0  ;;  %v2042_v4 = vpop.f32.mrf.mxu1 }
 0x2d1   : > { %v2024_v34 = vadd.f32 %v3516_v0, %v2023_v58 }
 0x2d3   : > { %v2043_v18 = vadd.f32 %v2042_v4, %v2024_v34 }
 0x2d5   : > { %v2051_v52 = vmax.f32 %v2043_v18, 0.0 }
 0x2d7   : > { %v2054_v27 = vpack.c.bf16 %v2051_v52, %v2050_v37 }
 0x2d8   : > { %v2026_v30 = vpop.f32.mrf.mxu0  ;;  %v2045_v60 = vpop.f32.mrf.mxu1 }
 0x2d9   : > { %2132 = vmatmul.bf16.vlgmr.msrb.gmra.mxu2 %v2054_v27  ;;  %v2027_v29 = vadd.f32 %v3516_v0, %v2026_v30  ;;  %v3572_v27 = vld [vmem:[%s4188_s26 + $0x8] sm:$0xff]  ;;  %s4870_s26 = scalar_lea.vmem [#allocation17], %s2774_s5  ;;  %s3318_s5 = sshll.u32 %s4056_s20, 5 }
 0x2da   : > { %v2500_v30 = vsel %vm2498_vm9, %v3572_v27, 0.0  ;;  %s2606_s14 = scalar_lea.hbm %s4966_s10, %s3318_s5  ;;  %s2607_s28 = sshll.u32 %s4870_s26, 4  ;;  %s2608_s28 = int_to_ptr.vmem [resolvable:$true] %s2607_s28 }
 0x2db   : > { %v2046_v43 = vadd.f32 %v2045_v60, %v2027_v29  ;;  %s2609_s23 = sshll.u32 %s2606_s14, 4  ;;  %s2595_s20 = scalar_lea.sflag [#allocation4], %s4182_s2  ;;  %s2610_s23 = int_to_ptr.hbm [resolvable:$true] %s2609_s23 }
 0x2dc   : > { %s3859_s4 = sshra.s32 %s2610_s23, 4  ;;  %s3860_s4 = int_to_ptr.hbm [resolvable:$true] %s3859_s4 }
 0x2dd   : > { %v2052_v44 = vmax.f32 %v2046_v43, 0.0  ;;  %s3861_s6 = scalar_lea.hbm %s3860_s4, 32  ;;  %p3866_p12 = scmp.lt.s32.totalorder %s3860_s4, %s4966_s10 }
 0x2de   : > { %p3862_p1 = scmp.ne.s32.totalorder %s3860_s4, %s3861_s6  ;;  %p3867_p7 = scmp.lt.s32.totalorder %s3865_s22, %s3861_s6 }
 0x2e0   : > { %v2028_v33 = vpop.f32.mrf.mxu0  ;;  %v2047_v25 = vpop.f32.mrf.mxu1  ;;  %p3863_p3 = pnand %p3862_p1, %p4151_p5  ;;  %p3868_p8 = por %p3867_p7, %p3866_p12 }
 0x2e1   : > { %v2029_v54 = vadd.f32 %v3516_v0, %v2028_v33  ;;  %v2499_v0 = vsel %vm2498_vm9, %v3571_v45, 0.0 }
 0x2e2   : > { %p3864_p4 = pneg %p3863_p3 }
 0x2e3   : > { %v2048_v7 = vadd.f32 %v2047_v25, %v2029_v54 }
 0x2e4   : > { %p3869_p9 = pnand %p3868_p8, %p3864_p4 }
 0x2e5   : > { %v2053_v40 = vmax.f32 %v2048_v7, 0.0  ;;  %v2501_v7 = vsel %vm2498_vm9, %v3573_v12, 0.0 }
 0x2e7   : > { %v2055_v23 = vpack.c.bf16 %v2053_v40, %v2052_v44 }
 0x2e8   : > { %v2486_v9 = vpop.f32.mrf.mxu1 }
 0x2e9   : > { %2137 = vmatmul.bf16.gmra.mxu2 %v2055_v23 }
 0x2f0   : > { %v2488_v4 = vpop.f32.mrf.mxu1 }
 0x2f8   : > { %v2491_v61 = vpop.f32.mrf.mxu1 }
 0x300   : > { %v2493_v57 = vpop.f32.mrf.mxu1 }
 0x35c   : > { %v2133_v24 = vpop.f32.mrf.mxu2 }
 0x35d   : > { %v2134_v46 = vadd.f32 %v3517_v36, %v2133_v24 }
 0x35f   : > { %v2318_v10 = vmul.f32 %v3544_v11, %v2134_v46 }
 0x364   : > { %v2135_v1 = vpop.f32.mrf.mxu2 }
 0x365   : > { %v2136_v15 = vadd.f32 %v3517_v36, %v2135_v1 }
 0x367   : > { %v2319_v38 = vmul.f32 %v3546_v3, %v2136_v15 }
 0x369   : > { %v2322_v42 = vpack.c.bf16 %v2319_v38, %v2318_v10 }
 0x36b   : > { %2466 = vmatmul.bf16.vlgmr.msrb.gmra.mxu0 %v2322_v42 }
 0x36c   : > { %v2138_v51 = vpop.f32.mrf.mxu2 }
 0x36d   : > { %v2139_v62 = vadd.f32 %v3517_v36, %v2138_v51 }
 0x36f   : > { %v2320_v50 = vmul.f32 %v3548_v39, %v2139_v62 }
 0x374   : > { %v2140_v48 = vpop.f32.mrf.mxu2 }
 0x375   : > { %v2141_v63 = vadd.f32 %v3517_v36, %v2140_v48 }
 0x377   : > { %v2321_v13 = vmul.f32 %v3550_v55, %v2141_v63 }
 0x379   : > { %v2324_v28 = vpack.c.bf16 %v2321_v13, %v2320_v50 }
 0x37b   : > { %2471 = vmatmul.bf16.gmra.mxu0 %v2324_v28 }
 0x3e8   : > { %v2467_v2 = vpop.f32.mrf.mxu0 }
 0x3e9   : > { %v2468_v56 = vadd.f32 %v3518_v16, %v2467_v2 }
 0x3eb   : > { %v2487_v47 = vadd.f32 %v2486_v9, %v2468_v56 }
 0x3ed   : > { %v4830_v58 = vadd.f32 %v2499_v0, %v2487_v47 }
 0x3ef   : > { %v2510_v34 = vmul.f32 %v4830_v58, %v4830_v58 }
 0x3f0   : > { %v2469_v18 = vpop.f32.mrf.mxu0 }
 0x3f1   : > { %v2470_v37 = vadd.f32 %v3518_v16, %v2469_v18  ;;  %v2514_v52 = vsel %vm4832_vm12, %v2510_v34, 0.0 }
 0x3f2   : > { %2518 = vadd.xlane.f32.xlu2 %v2514_v52 }
 0x3f3   : > { %v2489_v60 = vadd.f32 %v2488_v4, %v2470_v37 }
 0x3f5   : > { %v4842_v29 = vadd.f32 %v2500_v30, %v2489_v60 }
 0x3f7   : > { %v2511_v33 = vmul.f32 %v4842_v29, %v4842_v29 }
 0x3f8   : > { %v2472_v43 = vpop.f32.mrf.mxu0 }
 0x3f9   : > { %v2473_v54 = vadd.f32 %v3518_v16, %v2472_v43  ;;  %v2515_v25 = vsel %vm4832_vm12, %v2511_v33, 0.0 }
 0x3fa   : > { %2520 = vadd.xlane.f32.xlu0 %v2515_v25 }
 0x3fb   : > { %v2492_v44 = vadd.f32 %v2491_v61, %v2473_v54 }
 0x3fd   : > { %v4850_v40 = vadd.f32 %v2501_v7, %v2492_v44 }
 0x3ff   : > { %v2512_v19 = vmul.f32 %v4850_v40, %v4850_v40 }
 0x400   : > { %v2474_v23 = vpop.f32.mrf.mxu0 }
 0x401   : > { %v2475_v41 = vadd.f32 %v3518_v16, %v2474_v23  ;;  %v2516_v53 = vsel %vm4832_vm12, %v2512_v19, 0.0 }
 0x402   : > { %2522 = vadd.xlane.f32.xlu1 %v2516_v53 }
 0x403   : > { %v2494_v21 = vadd.f32 %v2493_v57, %v2475_v41 }
 0x405   : > { %v4858_v22 = vadd.f32 %v2502_v6, %v2494_v21 }
 0x407   : > { %v2513_v35 = vmul.f32 %v4858_v22, %v4858_v22 }
 0x409   : > { %v2517_v20 = vsel %vm4832_vm12, %v2513_v35, 0.0 }
 0x40a   : > { %2524 = vadd.xlane.f32.xlu2 %v2517_v20 }
 0x465   : > { %v2519_v8 = vpop.xlane.xlu2 %2518 }
 0x466   : > { %3551 = vrsqrt.f32 %v2519_v8  ;;  %vm2533_vm13 = vcmp.eq.f32.partialorder %v2519_v8, inf  ;;  %v2536_v26 = vand.u32 2147483648, %v2519_v8  ;;  %vm2535_vm14 = vcmp.eq.f32.partialorder %v2519_v8, 0.0 }
 0x46c   : > { %v3552_v24 = vpop.eup %3551 }
 0x46d   : > { %v2527_v14 = vmul.f32 %v3552_v24, %v2519_v8  ;;  %v2521_v36 = vpop.xlane.xlu0 %2520 }
 0x46e   : > { %3553 = vrsqrt.f32 %v2521_v36  ;;  %vm2545_vm15 = vcmp.eq.f32.partialorder %v2521_v36, inf  ;;  %v2548_v59 = vand.u32 2147483648, %v2521_v36  ;;  %vm2547_vm0 = vcmp.eq.f32.partialorder %v2521_v36, 0.0 }
 0x46f   : > { %v2528_v46 = vmul.f32 %v3552_v24, %v2527_v14 }
 0x471   : > { %v2529_v1 = vmul.f32 0.5, %v2528_v46 }
 0x473   : > { %v2530_v11 = vsub.f32 1.5, %v2529_v1 }
 0x474   : > { %v3554_v15 = vpop.eup %3553 }
 0x475   : > { %v2531_v3 = vmul.f32 %v3552_v24, %v2530_v11  ;;  %v2539_v10 = vmul.f32 %v3554_v15, %v2521_v36  ;;  %v2523_v38 = vpop.xlane.xlu1 %2522 }
 0x476   : > { %3555 = vrsqrt.f32 %v2523_v38  ;;  %vm2557_vm1 = vcmp.eq.f32.partialorder %v2523_v38, inf  ;;  %v2560_v30 = vand.u32 2147483648, %v2523_v38  ;;  %vm2559_vm2 = vcmp.eq.f32.partialorder %v2523_v38, 0.0 }
 0x477   : > { %v2532_v49 = vmul.f32 %v2531_v3, %v2519_v8  ;;  %v2540_v42 = vmul.f32 %v3554_v15, %v2539_v10 }
 0x479   : > { %v2534_v32 = vsel %vm2533_vm13, %v2519_v8, %v2532_v49  ;;  %v2541_v51 = vmul.f32 0.5, %v2540_v42 }
 0x47a   : > { %v2537_v62 = vsel %vm2535_vm14, %v2536_v26, %v2534_v32 }
 0x47b   : > { %v2574_v48 = vadd.f32 1e-08, %v2537_v62  ;;  %v2542_v39 = vsub.f32 1.5, %v2541_v51 }
 0x47c   : > { %v3556_v63 = vpop.eup %3555 }
 0x47d   : > { %3557 = vrcp.f32 %v2574_v48  ;;  %v2543_v55 = vmul.f32 %v3554_v15, %v2542_v39  ;;  %v2551_v50 = vmul.f32 %v3556_v63, %v2523_v38  ;;  %v2525_v13 = vpop.xlane.xlu2 %2524 }
 0x47e   : > { %3559 = vrsqrt.f32 %v2525_v13  ;;  %vm2569_vm3 = vcmp.eq.f32.partialorder %v2525_v13, inf  ;;  %v2572_v19 = vand.u32 2147483648, %v2525_v13  ;;  %vm2571_vm4 = vcmp.eq.f32.partialorder %v2525_v13, 0.0 }
 0x47f   : > { %v2544_v28 = vmul.f32 %v2543_v55, %v2521_v36  ;;  %v2552_v5 = vmul.f32 %v3556_v63, %v2551_v50 }
 0x481   : > { %v2546_v9 = vsel %vm2545_vm15, %v2521_v36, %v2544_v28  ;;  %v2553_v16 = vmul.f32 0.5, %v2552_v5 }
 0x482   : > { %v2549_v2 = vsel %vm2547_vm0, %v2548_v59, %v2546_v9 }
 0x483   : > { %v3558_v56 = vpop.eup %3557  ;;  %v2575_v45 = vadd.f32 1e-08, %v2549_v2  ;;  %v2554_v0 = vsub.f32 1.5, %v2553_v16 }
 0x484   : > { %v3560_v47 = vpop.eup %3559  ;;  %v2582_v4 = vmul.f32 %v3558_v56, %v4830_v58 }
 0x485   : > { %3561 = vrcp.f32 %v2575_v45  ;;  %v2555_v34 = vmul.f32 %v3556_v63, %v2554_v0  ;;  %v2563_v18 = vmul.f32 %v3560_v47, %v2525_v13 }
 0x486   : > { %v2586_v37 = vsel %vm4832_vm12, %v2582_v4, %v4830_v58 }
 0x487   : > { %v2556_v52 = vmul.f32 %v2555_v34, %v2523_v38  ;;  %v2564_v27 = vmul.f32 %v3560_v47, %v2563_v18  ;;  %2590 = vst [vmem:[%s4870_s26] sm:$0xff] %v2586_v37 }
 0x489   : > { %v2558_v60 = vsel %vm2557_vm1, %v2523_v38, %v2556_v52  ;;  %v2565_v33 = vmul.f32 0.5, %v2564_v27 }
 0x48a   : > { %v2561_v61 = vsel %vm2559_vm2, %v2560_v30, %v2558_v60 }
 0x48b   : > { %v3562_v43 = vpop.eup %3561  ;;  %v2576_v54 = vadd.f32 1e-08, %v2561_v61  ;;  %v2566_v25 = vsub.f32 1.5, %v2565_v33 }
 0x48c   : > { %v2583_v58 = vmul.f32 %v3562_v43, %v4842_v29 }
 0x48d   : > { %3563 = vrcp.f32 %v2576_v54  ;;  %v2567_v12 = vmul.f32 %v3560_v47, %v2566_v25 }
 0x48e   : > { %v2587_v7 = vsel %vm4832_vm12, %v2583_v58, %v4842_v29 }
 0x48f   : > { %v2568_v44 = vmul.f32 %v2567_v12, %v2525_v13  ;;  %2591 = vst [vmem:[%s4870_s26 + $0x8] sm:$0xff] %v2587_v7 }
 0x491   : > { %v2570_v23 = vsel %vm2569_vm3, %v2525_v13, %v2568_v44 }
 0x492   : > { %v2573_v41 = vsel %vm2571_vm4, %v2572_v19, %v2570_v23 }
 0x493   : > { %v3564_v53 = vpop.eup %3563  ;;  %v2577_v57 = vadd.f32 1e-08, %v2573_v41 }
 0x494   : > { %v2584_v31 = vmul.f32 %v3564_v53, %v4850_v40 }
 0x495   : > { %3565 = vrcp.f32 %v2577_v57 }
 0x496   : > { %v2588_v29 = vsel %vm4832_vm12, %v2584_v31, %v4850_v40 }
 0x497   : > { %2592 = vst [vmem:[%s4870_s26 + $0x10] sm:$0xff] %v2588_v29 }
 0x49b   : > { %v3566_v6 = vpop.eup %3565 }
 0x49c   : > { %v2585_v21 = vmul.f32 %v3566_v6, %v4858_v22 }
 0x49e   : > { %v2589_v35 = vsel %vm4832_vm12, %v2585_v21, %v4858_v22 }
 0x49f   : > { %2593 = vst [vmem:[%s4870_s26 + $0x18] sm:$0xff] %v2589_v35 }
 0x4a0   : > { %3872 = shalt.err (!%p3869_p9)
}
 0x4a1   : > { %s3955_s2 = smov 128   ;;  %s3956_s26 = smov 8  }
 0x4a2   : > { %3357 = dma.vmem_to_hbm [thread:$0]  (%p4151_p5), %s2608_s28, 512, %s2610_s23, %s2595_s20, %s3955_s2, %s3955_s2, %s3956_s26  }
 0x4a3 PF: > { %s2624_s5 = sand.u32 1, %s3915_s29   ;;  %p4967_p10 = scmp.ge.s32.totalorder %s3927_s16, 2 }
 0x4a4   : > { %s2625_s21 = scalar_lea.sflag [#allocation4], %s2624_s5 }
 0x4a5   : > { %p3389_p13 = pnand %p4967_p10, %p4155_p6 }
 0x4a7   : > { %p3390_p11 = pneg %p3389_p13 }
 0x4a9   : > { %3910 = dma.done.wait (%p3390_p11), %s2625_s21, 512  }
 0x4aa   : > { %3912 = vsyncadd (%p3390_p11), %s2625_s21, 4294966784  ;;  %p31_p0 = scmp.ge.s32.totalorder %s4125_s1, 4   ;;  %s4968_s29 = smov %s3919_s30 }
 0x4ab   : > { %s4969_s30 = smov %s3923_s15  ;;  %s4970_s15 = smov %s4136_s17 }
 0x4ac   : > { %s4971_s16 = smov %s4125_s1  ;;  %33 = sbr.rel (!%p31_p0) target bundleno = 19 (0x13), region = 155 }
 0x4b1   :  { %2631 = vsyncpa [#allocation3], 1 }
 0x4b2   :  { %2633 = vsyncpa [#allocation3 + $0x1], 1 }
 0x4b3   :  { %2634 = vsyncpa [#allocation6], 1 }
 0x4b4   :  { %2635 = vsyncpa [#allocation9], 1 }
 0x4b5   :  { %2636 = vsyncpa [#allocation12], 1 }
 0x4b6   :  { %2637 = vsyncpa [#allocation15], 1 }
 0x4b7   :  { %2638 = vsyncpa [#allocation4], 1 }
 0x4b8   :  { %2640 = vsyncpa [#allocation4 + $0x1], 1 }

</bundles_post_ra>
